<compile_context>
chip_gen: v5e
topology: v5e:2x2
jax: 0.10.0
libtpu: 0.0.40
codegen_flags: <defaults>
</compile_context>

<pallas_src>
import functools

import numpy as np
import jax
import jax.numpy as jnp
from jax.experimental import pallas as pl
from jax.experimental.pallas import tpu as pltpu

BN_EPS = 1e-5            # torch.nn.BatchNorm2d default eps
LRELU_SLOPE = 0.2
_SUBLANE = 16            # bf16 sublane packing -> tap slice starts stay tile-aligned
_TILE_ROWS = 256         # MXU-sized M per in-kernel row tile

# Weight/scale/shift blocks are grid-invariant; request single-buffering if the
# installed Pallas supports pl.Buffered, with a safe fallback otherwise.
_SINGLE_BUFFER_CONSTS_OK = hasattr(pl, "Buffered")


def _round_up(v, m):
    return (v + m - 1) // m * m


def _aligned(v, m):
    """pl.multiple_of alignment hint that also tolerates concrete ints."""
    if isinstance(v, (int, np.integer)):
        return int(v)
    return pl.multiple_of(v, m)


# ---------------------------------------------------------------------------
# Pallas kernel: row-tap conv (kx pre-folded into channels) + scale/shift + LeakyReLU
# ---------------------------------------------------------------------------
def _conv_rows_kernel(x_ref, w_ref, scale_ref, shift_ref, o_ref, *,
                      kh, row_pitch, tm, num_tiles, negative_slope):
    """Fused conv (+ folded BN scale/shift) (+ LeakyReLU) for one batch element.

    All horizontal (kx) taps are pre-folded into the channel axis, so only `kh`
    row taps remain and every tap slice starts at a sublane-aligned offset.

    x_ref    : (1, R, CK)      bf16 flattened rows, R = L_pad + (kh-1)*row_pitch
    w_ref    : (kh, CK, Cout)  bf16 per-row-tap weight matrices
    scale_ref: (1, Cout)       f32 folded BN scale (ones if no norm)
    shift_ref: (1, Cout)       f32 folded BN shift / conv bias
    o_ref    : (1, L_pad, Cout)
    """
    scale = scale_ref[...]
    shift = shift_ref[...]

    def tile(t, carry):
        # Row tiles outer, taps inner: the (tm, Cout) f32 accumulator stays hot
        # instead of a full-image accumulator read-modify-write per tap.
        row0 = _aligned(t * tm, _SUBLANE)
        acc = jnp.dot(x_ref[0, pl.ds(row0, tm), :], w_ref[0],
                      preferred_element_type=jnp.float32)
        for ky in range(1, kh):
            start = _aligned(row0 + ky * row_pitch, _SUBLANE)
            acc = acc + jnp.dot(x_ref[0, pl.ds(start, tm), :], w_ref[ky],
                                preferred_element_type=jnp.float32)
        y = acc * scale + shift                         # f32 epilogue, once per tile
        if negative_slope is not None:
            y = jnp.where(y >= 0.0, y, negative_slope * y)
        o_ref[0, pl.ds(row0, tm), :] = y.astype(o_ref.dtype)
        return carry

    jax.lax.fori_loop(0, num_tiles, tile, 0, unroll=num_tiles <= 4)


# ---------------------------------------------------------------------------
# Wrapper glue: padding, space-to-depth, kx-fold, weight re-layout
# ---------------------------------------------------------------------------
def _space_to_depth2(x):
    """(N, H, W, C) -> (N, H//2, W//2, 4C); channel order (py, px, c)."""
    n, h, w, c = x.shape
    x = x.reshape(n, h // 2, 2, w // 2, 2, c)
    x = jnp.transpose(x, (0, 1, 3, 2, 4, 5))
    return x.reshape(n, h // 2, w // 2, 4 * c)


def _conv_layer(x_nhwc, w_oihw, scale, shift, *, stride, negative_slope, out_dtype):
    """Fused Conv(4x4, stride, pad=1) [+ BN scale/shift] [+ LeakyReLU] via one pallas_call."""
    n, h, w_, cin = x_nhwc.shape
    cout = w_oihw.shape[0]

    xp = jnp.pad(x_nhwc, ((0, 0), (1, 1), (1, 1), (0, 0)))            # zero pad=1

    if stride == 2:
        assert h % 2 == 0 and w_ % 2 == 0, "stride-2 layer needs even spatial dims"
        oh, ow = h // 2, w_ // 2
        if 16 * cin <= 128:
            # ---- Type A: full im2col (first layer, tiny Cin) -> single matmul, K = 16*Cin
            xf = jnp.concatenate(
                [xp[:, ky:ky + 2 * oh:2, kx:kx + 2 * ow:2, :]
                 for ky in range(4) for kx in range(4)], axis=-1)
            kh = 1
            wt = jnp.transpose(w_oihw, (2, 3, 1, 0)).reshape(1, 16 * cin, cout)
        else:
            # ---- Type B: space-to-depth + horizontal tap folded -> kh = 2 row taps
            s = _space_to_depth2(xp)                                   # (n, oh+1, ow+1, 4cin)
            xf = jnp.concatenate([s[:, :, tx:tx + ow, :] for tx in range(2)], axis=-1)
            kh = 2
            wt = jnp.transpose(w_oihw, (2, 3, 1, 0)).reshape(2, 2, 2, 2, cin, cout)
            wt = jnp.transpose(wt, (0, 2, 1, 3, 4, 5)).reshape(2, 8 * cin, cout)
    else:
        # ---- Type C: stride 1, horizontal taps folded -> kh = 4 row taps
        oh, ow = h - 1, w_ - 1
        xf = jnp.concatenate([xp[:, :, kx:kx + ow, :] for kx in range(4)], axis=-1)
        kh = 4
        wt = jnp.transpose(w_oihw, (2, 3, 1, 0)).reshape(4, 4 * cin, cout)

    _, rh, rw, ck = xf.shape
    assert rh == oh + kh - 1 and rw == ow

    # Pad row pitch so every tap slice start (ky * row_pitch) is sublane aligned.
    row_pitch = _round_up(max(rw, _SUBLANE), _SUBLANE)
    if row_pitch > rw:
        xf = jnp.pad(xf, ((0, 0), (0, 0), (0, row_pitch - rw), (0, 0)))

    L = oh * row_pitch
    tm = L if L <= _TILE_ROWS else _TILE_ROWS
    l_pad = _round_up(L, tm)
    num_tiles = l_pad // tm
    r_rows = l_pad + (kh - 1) * row_pitch

    xflat = xf.reshape(n, rh * row_pitch, ck)
    if r_rows > rh * row_pitch:
        xflat = jnp.pad(xflat, ((0, 0), (0, r_rows - rh * row_pitch), (0, 0)))
    xflat = xflat.astype(jnp.bfloat16)

    # Pathologically narrow outputs (final Cout=1 layer): pad to 128 lanes with
    # zero weights so every store is full-lane unmasked; wrapper slices back.
    cout_pad = cout if cout >= 8 else 128
    if cout_pad > cout:
        wt = jnp.pad(wt, ((0, 0), (0, 0), (0, cout_pad - cout)))
        scale = jnp.pad(scale, (0, cout_pad - cout), constant_values=1.0)
        shift = jnp.pad(shift, (0, cout_pad - cout))
    wt = wt.astype(jnp.bfloat16)
    scale2 = scale.reshape(1, cout_pad).astype(jnp.float32)
    shift2 = shift.reshape(1, cout_pad).astype(jnp.float32)

    kernel = functools.partial(
        _conv_rows_kernel, kh=kh, row_pitch=row_pitch, tm=tm,
        num_tiles=num_tiles, negative_slope=negative_slope)

    # VMEM budget from the actual (lane-padded) block footprints, with headroom;
    # keeps large-tile pipelining alive on v5e's 16 MiB default scoped VMEM.
    lane = lambda c: _round_up(c, 128)
    out_bytes = 4 if out_dtype == jnp.float32 else 2
    est = (2 * r_rows * lane(ck) * 2                    # double-buffered bf16 input
           + 2 * l_pad * lane(cout_pad) * out_bytes     # double-buffered output
           + 2 * kh * ck * lane(cout_pad) * 2           # weights (worst case 2 bufs)
           + tm * lane(cout_pad) * 4                    # hot f32 accumulator
           + (2 << 20))                                 # slack for compiler scratch
    vmem_limit = max(32 * 2 ** 20, int(est * 1.5))

    def run(single_buffer_consts):
        const_kw = {}
        if single_buffer_consts:
            const_kw = dict(pipeline_mode=pl.Buffered(1))
        return pl.pallas_call(
            kernel,
            out_shape=jax.ShapeDtypeStruct((n, l_pad, cout_pad), out_dtype),
            grid=(n,),
            in_specs=[
                pl.BlockSpec((1, r_rows, ck), lambda i: (i, 0, 0)),
                pl.BlockSpec((kh, ck, cout_pad), lambda i: (0, 0, 0), **const_kw),
                pl.BlockSpec((1, cout_pad), lambda i: (0, 0), **const_kw),
                pl.BlockSpec((1, cout_pad), lambda i: (0, 0), **const_kw),
            ],
            out_specs=pl.BlockSpec((1, l_pad, cout_pad), lambda i: (i, 0, 0)),
            compiler_params=pltpu.CompilerParams(
                dimension_semantics=("parallel",),
                vmem_limit_bytes=vmem_limit),
        )(xflat, wt, scale2, shift2)

    global _SINGLE_BUFFER_CONSTS_OK
    if _SINGLE_BUFFER_CONSTS_OK:
        try:
            out = run(True)
        except Exception:       # fall back if pipeline_mode=Buffered(1) unsupported
            _SINGLE_BUFFER_CONSTS_OK = False
            out = run(False)
    else:
        out = run(False)

    # Drop row padding, wrap-around columns and lane-padded channels.
    out = out[:, :L, :].reshape(n, oh, row_pitch, cout_pad)[:, :, :ow, :cout]
    return out                                                       # (n, oh, ow, cout)


def nlayer_discriminator_forward(x_nchw, layers):
    """Pallas forward of NLayerDiscriminator. x_nchw: (N, C, H, W) float32."""
    x = jnp.transpose(x_nchw, (0, 2, 3, 1)).astype(jnp.bfloat16)     # NHWC, bf16 activations
    nl = len(layers)
    for li, p in enumerate(layers):
        last = li == nl - 1
        x = _conv_layer(
            x, p["w"], p["scale"], p["shift"],
            stride=p["stride"],
            negative_slope=p["neg_slope"],
            out_dtype=jnp.float32 if last else jnp.bfloat16,
        )
    return jnp.transpose(x, (0, 3, 1, 2))                            # NCHW


# ---------------------------------------------------------------------------
# Pure-JAX reference (same precision policy: bf16 matmul operands, f32 accum)
# ---------------------------------------------------------------------------
def _ref_forward(x_nchw, layers):
    y = x_nchw
    for p in layers:
        lhs = y.astype(jnp.bfloat16)
        rhs = p["w"].astype(jnp.bfloat16)
        y = jax.lax.conv_general_dilated(
            lhs, rhs, (p["stride"], p["stride"]), ((1, 1), (1, 1)),
            dimension_numbers=("NCHW", "OIHW", "NCHW"),
            preferred_element_type=jnp.float32)
        if p["bias"] is not None:
            y = y + p["bias"][None, :, None, None]
        if p["bn"] is not None:
            g, b, m, v = p["bn"]
            y = (y - m[None, :, None, None]) / jnp.sqrt(v[None, :, None, None] + BN_EPS)
            y = y * g[None, :, None, None] + b[None, :, None, None]
        if p["neg_slope"] is not None:
            y = jnp.where(y >= 0.0, y, p["neg_slope"] * y)
    return y


# ---------------------------------------------------------------------------
# Parameter construction (deterministic synthetic weights)
# ---------------------------------------------------------------------------
def _make_layer(key, cin, cout, stride, conv_bias, use_bn, use_act):
    kw_, kb, kg, kbe, km, kv = jax.random.split(key, 6)
    w = jax.random.normal(kw_, (cout, cin, 4, 4), jnp.float32) / jnp.sqrt(cin * 16.0)
    b = 0.1 * jax.random.normal(kb, (cout,), jnp.float32) if conv_bias else None
    if use_bn:
        gamma = 1.0 + 0.1 * jax.random.normal(kg, (cout,), jnp.float32)
        beta = 0.1 * jax.random.normal(kbe, (cout,), jnp.float32)
        mean = 0.1 * jax.random.normal(km, (cout,), jnp.float32)
        var = 0.5 + jax.random.uniform(kv, (cout,), jnp.float32)
        scale = gamma / jnp.sqrt(var + BN_EPS)
        shift = beta - mean * scale
        bn = (gamma, beta, mean, var)
    else:
        scale = jnp.ones((cout,), jnp.float32)
        shift = b if b is not None else jnp.zeros((cout,), jnp.float32)
        bn = None
    return dict(w=w, bias=b, bn=bn, scale=scale, shift=shift, stride=stride,
                neg_slope=(LRELU_SLOPE if use_act else None))


def make_discriminator_params(key, input_nc, ndf, n_layers):
    """Mirror NLayerDiscriminator.__init__ with norm_layer=BatchNorm2d (use_bias=False)."""
    layers = []
    keys = jax.random.split(key, n_layers + 2)
    # first conv: bias=True (default), no norm
    layers.append(_make_layer(keys[0], input_nc, ndf, 2, True, False, True))
    nf_mult_prev, nf_mult = 1, 1
    for n in range(1, n_layers):
        nf_mult_prev, nf_mult = nf_mult, min(2 ** n, 8)
        layers.append(_make_layer(keys[n], ndf * nf_mult_prev, ndf * nf_mult,
                                  2, False, True, True))
    nf_mult_prev, nf_mult = nf_mult, min(2 ** n_layers, 8)
    layers.append(_make_layer(keys[n_layers], ndf * nf_mult_prev, ndf * nf_mult,
                              1, False, True, True))
    # final conv: 1 output channel, bias=True, no norm, no activation
    layers.append(_make_layer(keys[n_layers + 1], ndf * nf_mult, 1, 1, True, False, False))
    return layers


# ---------------------------------------------------------------------------
if __name__ == "__main__":
    N, IN_NC, NDF, H, W = 2, 3, 16, 64, 64   # small demo; ndf scaled down from 64
    N_LAYERS = 3

    key = jax.random.PRNGKey(0)
    kx_, kp = jax.random.split(key)
    x = jax.random.normal(kx_, (N, IN_NC, H, W), dtype=jnp.float32)
    layers = make_discriminator_params(kp, IN_NC, NDF, N_LAYERS)

    out = jax.block_until_ready(nlayer_discriminator_forward(x, layers))
    ref = jax.block_until_ready(_ref_forward(x, layers))

    assert out.shape == ref.shape == (N, 1, 6, 6), (out.shape, ref.shape)
    assert bool(jnp.all(jnp.isfinite(out)))
    max_err = float(jnp.max(jnp.abs(out - ref)))
    assert max_err < 5e-2, f"mismatch vs reference: {max_err}"
    print("KERNEL_OK")
</pallas_src>

<mosaic_0001>
module attributes {stable_mosaic.version = 11 : i64} {
  func.func @_conv_rows_kernel(%arg0: i32, %arg1: memref<1x1024x48xbf16, #tpu.memory_space<vmem>>, %arg2: memref<1x48x16xbf16, #tpu.memory_space<vmem>>, %arg3: memref<1x16xf32, #tpu.memory_space<vmem>>, %arg4: memref<1x16xf32, #tpu.memory_space<vmem>>, %arg5: memref<1x1024x16xbf16, #tpu.memory_space<vmem>>) attributes {dimension_semantics = [#tpu.dimension_semantics<parallel>], iteration_bounds = array<i64: 2>, scalar_prefetch = 0 : i64, scratch_operands = 0 : i64, tpu.core_type = #tpu.core_type<tc>, window_params = [{transform_indices = @transform_0, window_bounds = array<i64: 1, 1024, 48>}, {pipeline_mode = #tpu.pipeline_mode<synchronous>, transform_indices = @transform_1, window_bounds = array<i64: 1, 48, 16>}, {pipeline_mode = #tpu.pipeline_mode<synchronous>, transform_indices = @transform_2, window_bounds = array<i64: 1, 16>}, {pipeline_mode = #tpu.pipeline_mode<synchronous>, transform_indices = @transform_3, window_bounds = array<i64: 1, 16>}, {transform_indices = @transform_4, window_bounds = array<i64: 1, 1024, 16>}]} {
    %c0 = arith.constant 0 : index
    %c0_0 = arith.constant 0 : index
    %0 = vector.load %arg3[%c0, %c0_0] : memref<1x16xf32, #tpu.memory_space<vmem>>, vector<1x16xf32>
    %c0_1 = arith.constant 0 : index
    %c0_2 = arith.constant 0 : index
    %1 = vector.load %arg4[%c0_1, %c0_2] : memref<1x16xf32, #tpu.memory_space<vmem>>, vector<1x16xf32>
    %c0_i32 = arith.constant 0 : i32
    %c256_i32 = arith.constant 256 : i32
    %2 = arith.muli %c0_i32, %c256_i32 : i32
    %3 = tpu.assume_multiple %2, 16 : i32
    %c0_3 = arith.constant 0 : index
    %4 = arith.index_cast %3 : i32 to index
    %c0_4 = arith.constant 0 : index
    %5 = vector.load %arg1[%c0_3, %4, %c0_4] : memref<1x1024x48xbf16, #tpu.memory_space<vmem>>, vector<1x256x48xbf16>
    %6 = vector.shape_cast %5 : vector<1x256x48xbf16> to vector<256x48xbf16>
    %c0_5 = arith.constant 0 : index
    %c0_6 = arith.constant 0 : index
    %c0_7 = arith.constant 0 : index
    %7 = vector.load %arg2[%c0_5, %c0_6, %c0_7] : memref<1x48x16xbf16, #tpu.memory_space<vmem>>, vector<1x48x16xbf16>
    %8 = vector.shape_cast %7 : vector<1x48x16xbf16> to vector<48x16xbf16>
    %cst = arith.constant dense<0.000000e+00> : vector<256x16xf32>
    %9 = tpu.matmul %6, %8, %cst {dimension_numbers = #tpu.dot_dimension_numbers<[1], [0], [0], [1], [0, 0, 1, 1], [], []>} : vector<256x48xbf16>, vector<48x16xbf16>, vector<256x16xf32> -> vector<256x16xf32>
    %10 = vector.broadcast %0 : vector<1x16xf32> to vector<256x16xf32>
    %11 = arith.mulf %9, %10 : vector<256x16xf32>
    %12 = vector.broadcast %1 : vector<1x16xf32> to vector<256x16xf32>
    %13 = arith.addf %11, %12 : vector<256x16xf32>
    %cst_8 = arith.constant 0.000000e+00 : f32
    %14 = vector.broadcast %cst_8 : f32 to vector<256x16xf32>
    %15 = arith.cmpf oge, %13, %14 : vector<256x16xf32>
    %cst_9 = arith.constant 2.000000e-01 : f32
    %16 = vector.broadcast %cst_9 : f32 to vector<256x16xf32>
    %17 = arith.mulf %16, %13 : vector<256x16xf32>
    %18 = arith.select %15, %13, %17 : vector<256x16xi1>, vector<256x16xf32>
    %19 = arith.truncf %18 : vector<256x16xf32> to vector<256x16xbf16>
    %c0_10 = arith.constant 0 : index
    %20 = arith.index_cast %3 : i32 to index
    %c0_11 = arith.constant 0 : index
    %21 = vector.load %arg5[%c0_10, %20, %c0_11] : memref<1x1024x16xbf16, #tpu.memory_space<vmem>>, vector<1x256x16xbf16>
    %22 = vector.shape_cast %21 : vector<1x256x16xbf16> to vector<256x16xbf16>
    %23 = vector.shape_cast %19 : vector<256x16xbf16> to vector<1x256x16xbf16>
    tpu.vector_store %arg5[%c0_10, %20, %c0_11], %23 {strides = array<i32>} : memref<1x1024x16xbf16, #tpu.memory_space<vmem>>, vector<1x256x16xbf16>,
    %c1_i32 = arith.constant 1 : i32
    %c256_i32_12 = arith.constant 256 : i32
    %24 = arith.muli %c1_i32, %c256_i32_12 : i32
    %25 = tpu.assume_multiple %24, 16 : i32
    %c0_13 = arith.constant 0 : index
    %26 = arith.index_cast %25 : i32 to index
    %c0_14 = arith.constant 0 : index
    %27 = vector.load %arg1[%c0_13, %26, %c0_14] : memref<1x1024x48xbf16, #tpu.memory_space<vmem>>, vector<1x256x48xbf16>
    %28 = vector.shape_cast %27 : vector<1x256x48xbf16> to vector<256x48xbf16>
    %c0_15 = arith.constant 0 : index
    %c0_16 = arith.constant 0 : index
    %c0_17 = arith.constant 0 : index
    %29 = vector.load %arg2[%c0_15, %c0_16, %c0_17] : memref<1x48x16xbf16, #tpu.memory_space<vmem>>, vector<1x48x16xbf16>
    %30 = vector.shape_cast %29 : vector<1x48x16xbf16> to vector<48x16xbf16>
    %cst_18 = arith.constant dense<0.000000e+00> : vector<256x16xf32>
    %31 = tpu.matmul %28, %30, %cst_18 {dimension_numbers = #tpu.dot_dimension_numbers<[1], [0], [0], [1], [0, 0, 1, 1], [], []>} : vector<256x48xbf16>, vector<48x16xbf16>, vector<256x16xf32> -> vector<256x16xf32>
    %32 = vector.broadcast %0 : vector<1x16xf32> to vector<256x16xf32>
    %33 = arith.mulf %31, %32 : vector<256x16xf32>
    %34 = vector.broadcast %1 : vector<1x16xf32> to vector<256x16xf32>
    %35 = arith.addf %33, %34 : vector<256x16xf32>
    %cst_19 = arith.constant 0.000000e+00 : f32
    %36 = vector.broadcast %cst_19 : f32 to vector<256x16xf32>
    %37 = arith.cmpf oge, %35, %36 : vector<256x16xf32>
    %cst_20 = arith.constant 2.000000e-01 : f32
    %38 = vector.broadcast %cst_20 : f32 to vector<256x16xf32>
    %39 = arith.mulf %38, %35 : vector<256x16xf32>
    %40 = arith.select %37, %35, %39 : vector<256x16xi1>, vector<256x16xf32>
    %41 = arith.truncf %40 : vector<256x16xf32> to vector<256x16xbf16>
    %c0_21 = arith.constant 0 : index
    %42 = arith.index_cast %25 : i32 to index
    %c0_22 = arith.constant 0 : index
    %43 = vector.load %arg5[%c0_21, %42, %c0_22] : memref<1x1024x16xbf16, #tpu.memory_space<vmem>>, vector<1x256x16xbf16>
    %44 = vector.shape_cast %43 : vector<1x256x16xbf16> to vector<256x16xbf16>
    %45 = vector.shape_cast %41 : vector<256x16xbf16> to vector<1x256x16xbf16>
    tpu.vector_store %arg5[%c0_21, %42, %c0_22], %45 {strides = array<i32>} : memref<1x1024x16xbf16, #tpu.memory_space<vmem>>, vector<1x256x16xbf16>,
    %c2_i32 = arith.constant 2 : i32
    %c256_i32_23 = arith.constant 256 : i32
    %46 = arith.muli %c2_i32, %c256_i32_23 : i32
    %47 = tpu.assume_multiple %46, 16 : i32
    %c0_24 = arith.constant 0 : index
    %48 = arith.index_cast %47 : i32 to index
    %c0_25 = arith.constant 0 : index
    %49 = vector.load %arg1[%c0_24, %48, %c0_25] : memref<1x1024x48xbf16, #tpu.memory_space<vmem>>, vector<1x256x48xbf16>
    %50 = vector.shape_cast %49 : vector<1x256x48xbf16> to vector<256x48xbf16>
    %c0_26 = arith.constant 0 : index
    %c0_27 = arith.constant 0 : index
    %c0_28 = arith.constant 0 : index
    %51 = vector.load %arg2[%c0_26, %c0_27, %c0_28] : memref<1x48x16xbf16, #tpu.memory_space<vmem>>, vector<1x48x16xbf16>
    %52 = vector.shape_cast %51 : vector<1x48x16xbf16> to vector<48x16xbf16>
    %cst_29 = arith.constant dense<0.000000e+00> : vector<256x16xf32>
    %53 = tpu.matmul %50, %52, %cst_29 {dimension_numbers = #tpu.dot_dimension_numbers<[1], [0], [0], [1], [0, 0, 1, 1], [], []>} : vector<256x48xbf16>, vector<48x16xbf16>, vector<256x16xf32> -> vector<256x16xf32>
    %54 = vector.broadcast %0 : vector<1x16xf32> to vector<256x16xf32>
    %55 = arith.mulf %53, %54 : vector<256x16xf32>
    %56 = vector.broadcast %1 : vector<1x16xf32> to vector<256x16xf32>
    %57 = arith.addf %55, %56 : vector<256x16xf32>
    %cst_30 = arith.constant 0.000000e+00 : f32
    %58 = vector.broadcast %cst_30 : f32 to vector<256x16xf32>
    %59 = arith.cmpf oge, %57, %58 : vector<256x16xf32>
    %cst_31 = arith.constant 2.000000e-01 : f32
    %60 = vector.broadcast %cst_31 : f32 to vector<256x16xf32>
    %61 = arith.mulf %60, %57 : vector<256x16xf32>
    %62 = arith.select %59, %57, %61 : vector<256x16xi1>, vector<256x16xf32>
    %63 = arith.truncf %62 : vector<256x16xf32> to vector<256x16xbf16>
    %c0_32 = arith.constant 0 : index
    %64 = arith.index_cast %47 : i32 to index
    %c0_33 = arith.constant 0 : index
    %65 = vector.load %arg5[%c0_32, %64, %c0_33] : memref<1x1024x16xbf16, #tpu.memory_space<vmem>>, vector<1x256x16xbf16>
    %66 = vector.shape_cast %65 : vector<1x256x16xbf16> to vector<256x16xbf16>
    %67 = vector.shape_cast %63 : vector<256x16xbf16> to vector<1x256x16xbf16>
    tpu.vector_store %arg5[%c0_32, %64, %c0_33], %67 {strides = array<i32>} : memref<1x1024x16xbf16, #tpu.memory_space<vmem>>, vector<1x256x16xbf16>,
    %c3_i32 = arith.constant 3 : i32
    %c256_i32_34 = arith.constant 256 : i32
    %68 = arith.muli %c3_i32, %c256_i32_34 : i32
    %69 = tpu.assume_multiple %68, 16 : i32
    %c0_35 = arith.constant 0 : index
    %70 = arith.index_cast %69 : i32 to index
    %c0_36 = arith.constant 0 : index
    %71 = vector.load %arg1[%c0_35, %70, %c0_36] : memref<1x1024x48xbf16, #tpu.memory_space<vmem>>, vector<1x256x48xbf16>
    %72 = vector.shape_cast %71 : vector<1x256x48xbf16> to vector<256x48xbf16>
    %c0_37 = arith.constant 0 : index
    %c0_38 = arith.constant 0 : index
    %c0_39 = arith.constant 0 : index
    %73 = vector.load %arg2[%c0_37, %c0_38, %c0_39] : memref<1x48x16xbf16, #tpu.memory_space<vmem>>, vector<1x48x16xbf16>
    %74 = vector.shape_cast %73 : vector<1x48x16xbf16> to vector<48x16xbf16>
    %cst_40 = arith.constant dense<0.000000e+00> : vector<256x16xf32>
    %75 = tpu.matmul %72, %74, %cst_40 {dimension_numbers = #tpu.dot_dimension_numbers<[1], [0], [0], [1], [0, 0, 1, 1], [], []>} : vector<256x48xbf16>, vector<48x16xbf16>, vector<256x16xf32> -> vector<256x16xf32>
    %76 = vector.broadcast %0 : vector<1x16xf32> to vector<256x16xf32>
    %77 = arith.mulf %75, %76 : vector<256x16xf32>
    %78 = vector.broadcast %1 : vector<1x16xf32> to vector<256x16xf32>
    %79 = arith.addf %77, %78 : vector<256x16xf32>
    %cst_41 = arith.constant 0.000000e+00 : f32
    %80 = vector.broadcast %cst_41 : f32 to vector<256x16xf32>
    %81 = arith.cmpf oge, %79, %80 : vector<256x16xf32>
    %cst_42 = arith.constant 2.000000e-01 : f32
    %82 = vector.broadcast %cst_42 : f32 to vector<256x16xf32>
    %83 = arith.mulf %82, %79 : vector<256x16xf32>
    %84 = arith.select %81, %79, %83 : vector<256x16xi1>, vector<256x16xf32>
    %85 = arith.truncf %84 : vector<256x16xf32> to vector<256x16xbf16>
    %c0_43 = arith.constant 0 : index
    %86 = arith.index_cast %69 : i32 to index
    %c0_44 = arith.constant 0 : index
    %87 = vector.load %arg5[%c0_43, %86, %c0_44] : memref<1x1024x16xbf16, #tpu.memory_space<vmem>>, vector<1x256x16xbf16>
    %88 = vector.shape_cast %87 : vector<1x256x16xbf16> to vector<256x16xbf16>
    %89 = vector.shape_cast %85 : vector<256x16xbf16> to vector<1x256x16xbf16>
    tpu.vector_store %arg5[%c0_43, %86, %c0_44], %89 {strides = array<i32>} : memref<1x1024x16xbf16, #tpu.memory_space<vmem>>, vector<1x256x16xbf16>,
    %c4_i32 = arith.constant 4 : i32
    return
  }
  func.func @transform_0(%arg0: i32) -> (i32, i32, i32) {
    %c0_i32 = arith.constant 0 : i32
    %c0_i32_0 = arith.constant 0 : i32
    %c0_i32_1 = arith.constant 0 : i32
    return %arg0, %c0_i32, %c0_i32_0 : i32, i32, i32
  }
  func.func @transform_1(%arg0: i32) -> (i32, i32, i32) {
    %c0_i32 = arith.constant 0 : i32
    %c0_i32_0 = arith.constant 0 : i32
    %c0_i32_1 = arith.constant 0 : i32
    %c0_i32_2 = arith.constant 0 : i32
    return %c0_i32, %c0_i32_0, %c0_i32_1 : i32, i32, i32
  }
  func.func @transform_2(%arg0: i32) -> (i32, i32) {
    %c0_i32 = arith.constant 0 : i32
    %c0_i32_0 = arith.constant 0 : i32
    %c0_i32_1 = arith.constant 0 : i32
    return %c0_i32, %c0_i32_0 : i32, i32
  }
  func.func @transform_3(%arg0: i32) -> (i32, i32) {
    %c0_i32 = arith.constant 0 : i32
    %c0_i32_0 = arith.constant 0 : i32
    %c0_i32_1 = arith.constant 0 : i32
    return %c0_i32, %c0_i32_0 : i32, i32
  }
  func.func @transform_4(%arg0: i32) -> (i32, i32, i32) {
    %c0_i32 = arith.constant 0 : i32
    %c0_i32_0 = arith.constant 0 : i32
    %c0_i32_1 = arith.constant 0 : i32
    return %arg0, %c0_i32, %c0_i32_0 : i32, i32, i32
  }
}

module attributes {stable_mosaic.version = 11 : i64} {
  func.func @_conv_rows_kernel(%arg0: i32, %arg1: memref<1x1024x48xbf16, #tpu.memory_space<vmem>>, %arg2: memref<1x48x16xbf16, #tpu.memory_space<vmem>>, %arg3: memref<1x16xf32, #tpu.memory_space<vmem>>, %arg4: memref<1x16xf32, #tpu.memory_space<vmem>>, %arg5: memref<1x1024x16xbf16, #tpu.memory_space<vmem>>) attributes {dimension_semantics = [#tpu.dimension_semantics<parallel>], iteration_bounds = array<i64: 2>, scalar_prefetch = 0 : i64, scratch_operands = 0 : i64, tpu.core_type = #tpu.core_type<tc>, window_params = [{transform_indices = @transform_0, window_bounds = array<i64: 1, 1024, 48>}, {pipeline_mode = #tpu.pipeline_mode<synchronous>, transform_indices = @transform_1, window_bounds = array<i64: 1, 48, 16>}, {pipeline_mode = #tpu.pipeline_mode<synchronous>, transform_indices = @transform_2, window_bounds = array<i64: 1, 16>}, {pipeline_mode = #tpu.pipeline_mode<synchronous>, transform_indices = @transform_3, window_bounds = array<i64: 1, 16>}, {transform_indices = @transform_4, window_bounds = array<i64: 1, 1024, 16>}]} {
    %c0 = arith.constant 0 : index
    %c0_0 = arith.constant 0 : index
    %0 = vector.load %arg3[%c0, %c0_0] : memref<1x16xf32, #tpu.memory_space<vmem>>, vector<1x16xf32>
    %c0_1 = arith.constant 0 : index
    %c0_2 = arith.constant 0 : index
    %1 = vector.load %arg4[%c0_1, %c0_2] : memref<1x16xf32, #tpu.memory_space<vmem>>, vector<1x16xf32>
    %c0_i32 = arith.constant 0 : i32
    %c256_i32 = arith.constant 256 : i32
    %2 = arith.muli %c0_i32, %c256_i32 : i32
    %3 = tpu.assume_multiple %2, 16 : i32
    %c0_3 = arith.constant 0 : index
    %4 = arith.index_cast %3 : i32 to index
    %c0_4 = arith.constant 0 : index
    %5 = vector.load %arg1[%c0_3, %4, %c0_4] : memref<1x1024x48xbf16, #tpu.memory_space<vmem>>, vector<1x256x48xbf16>
    %6 = vector.shape_cast %5 : vector<1x256x48xbf16> to vector<256x48xbf16>
    %c0_5 = arith.constant 0 : index
    %c0_6 = arith.constant 0 : index
    %c0_7 = arith.constant 0 : index
    %7 = vector.load %arg2[%c0_5, %c0_6, %c0_7] : memref<1x48x16xbf16, #tpu.memory_space<vmem>>, vector<1x48x16xbf16>
    %8 = vector.shape_cast %7 : vector<1x48x16xbf16> to vector<48x16xbf16>
    %cst = arith.constant dense<0.000000e+00> : vector<256x16xf32>
    %9 = tpu.matmul %6, %8, %cst {dimension_numbers = #tpu.dot_dimension_numbers<[1], [0], [0], [1], [0, 0, 1, 1], [], []>} : vector<256x48xbf16>, vector<48x16xbf16>, vector<256x16xf32> -> vector<256x16xf32>
    %10 = vector.broadcast %0 : vector<1x16xf32> to vector<256x16xf32>
    %11 = arith.mulf %9, %10 : vector<256x16xf32>
    %12 = vector.broadcast %1 : vector<1x16xf32> to vector<256x16xf32>
    %13 = arith.addf %11, %12 : vector<256x16xf32>
    %cst_8 = arith.constant 0.000000e+00 : f32
    %14 = vector.broadcast %cst_8 : f32 to vector<256x16xf32>
    %15 = arith.cmpf oge, %13, %14 : vector<256x16xf32>
    %cst_9 = arith.constant 2.000000e-01 : f32
    %16 = vector.broadcast %cst_9 : f32 to vector<256x16xf32>
    %17 = arith.mulf %16, %13 : vector<256x16xf32>
    %18 = arith.select %15, %13, %17 : vector<256x16xi1>, vector<256x16xf32>
    %19 = arith.truncf %18 : vector<256x16xf32> to vector<256x16xbf16>
    %c0_10 = arith.constant 0 : index
    %20 = arith.index_cast %3 : i32 to index
    %c0_11 = arith.constant 0 : index
    %21 = vector.load %arg5[%c0_10, %20, %c0_11] : memref<1x1024x16xbf16, #tpu.memory_space<vmem>>, vector<1x256x16xbf16>
    %22 = vector.shape_cast %21 : vector<1x256x16xbf16> to vector<256x16xbf16>
    %23 = vector.shape_cast %19 : vector<256x16xbf16> to vector<1x256x16xbf16>
    tpu.vector_store %arg5[%c0_10, %20, %c0_11], %23 {strides = array<i32>} : memref<1x1024x16xbf16, #tpu.memory_space<vmem>>, vector<1x256x16xbf16>,
    %c1_i32 = arith.constant 1 : i32
    %c256_i32_12 = arith.constant 256 : i32
    %24 = arith.muli %c1_i32, %c256_i32_12 : i32
    %25 = tpu.assume_multiple %24, 16 : i32
    %c0_13 = arith.constant 0 : index
    %26 = arith.index_cast %25 : i32 to index
    %c0_14 = arith.constant 0 : index
    %27 = vector.load %arg1[%c0_13, %26, %c0_14] : memref<1x1024x48xbf16, #tpu.memory_space<vmem>>, vector<1x256x48xbf16>
    %28 = vector.shape_cast %27 : vector<1x256x48xbf16> to vector<256x48xbf16>
    %c0_15 = arith.constant 0 : index
    %c0_16 = arith.constant 0 : index
    %c0_17 = arith.constant 0 : index
    %29 = vector.load %arg2[%c0_15, %c0_16, %c0_17] : memref<1x48x16xbf16, #tpu.memory_space<vmem>>, vector<1x48x16xbf16>
    %30 = vector.shape_cast %29 : vector<1x48x16xbf16> to vector<48x16xbf16>
    %cst_18 = arith.constant dense<0.000000e+00> : vector<256x16xf32>
    %31 = tpu.matmul %28, %30, %cst_18 {dimension_numbers = #tpu.dot_dimension_numbers<[1], [0], [0], [1], [0, 0, 1, 1], [], []>} : vector<256x48xbf16>, vector<48x16xbf16>, vector<256x16xf32> -> vector<256x16xf32>
    %32 = vector.broadcast %0 : vector<1x16xf32> to vector<256x16xf32>
    %33 = arith.mulf %31, %32 : vector<256x16xf32>
    %34 = vector.broadcast %1 : vector<1x16xf32> to vector<256x16xf32>
    %35 = arith.addf %33, %34 : vector<256x16xf32>
    %cst_19 = arith.constant 0.000000e+00 : f32
    %36 = vector.broadcast %cst_19 : f32 to vector<256x16xf32>
    %37 = arith.cmpf oge, %35, %36 : vector<256x16xf32>
    %cst_20 = arith.constant 2.000000e-01 : f32
    %38 = vector.broadcast %cst_20 : f32 to vector<256x16xf32>
    %39 = arith.mulf %38, %35 : vector<256x16xf32>
    %40 = arith.select %37, %35, %39 : vector<256x16xi1>, vector<256x16xf32>
    %41 = arith.truncf %40 : vector<256x16xf32> to vector<256x16xbf16>
    %c0_21 = arith.constant 0 : index
    %42 = arith.index_cast %25 : i32 to index
    %c0_22 = arith.constant 0 : index
    %43 = vector.load %arg5[%c0_21, %42, %c0_22] : memref<1x1024x16xbf16, #tpu.memory_space<vmem>>, vector<1x256x16xbf16>
    %44 = vector.shape_cast %43 : vector<1x256x16xbf16> to vector<256x16xbf16>
    %45 = vector.shape_cast %41 : vector<256x16xbf16> to vector<1x256x16xbf16>
    tpu.vector_store %arg5[%c0_21, %42, %c0_22], %45 {strides = array<i32>} : memref<1x1024x16xbf16, #tpu.memory_space<vmem>>, vector<1x256x16xbf16>,
    %c2_i32 = arith.constant 2 : i32
    %c256_i32_23 = arith.constant 256 : i32
    %46 = arith.muli %c2_i32, %c256_i32_23 : i32
    %47 = tpu.assume_multiple %46, 16 : i32
    %c0_24 = arith.constant 0 : index
    %48 = arith.index_cast %47 : i32 to index
    %c0_25 = arith.constant 0 : index
    %49 = vector.load %arg1[%c0_24, %48, %c0_25] : memref<1x1024x48xbf16, #tpu.memory_space<vmem>>, vector<1x256x48xbf16>
    %50 = vector.shape_cast %49 : vector<1x256x48xbf16> to vector<256x48xbf16>
    %c0_26 = arith.constant 0 : index
    %c0_27 = arith.constant 0 : index
    %c0_28 = arith.constant 0 : index
    %51 = vector.load %arg2[%c0_26, %c0_27, %c0_28] : memref<1x48x16xbf16, #tpu.memory_space<vmem>>, vector<1x48x16xbf16>
    %52 = vector.shape_cast %51 : vector<1x48x16xbf16> to vector<48x16xbf16>
    %cst_29 = arith.constant dense<0.000000e+00> : vector<256x16xf32>
    %53 = tpu.matmul %50, %52, %cst_29 {dimension_numbers = #tpu.dot_dimension_numbers<[1], [0], [0], [1], [0, 0, 1, 1], [], []>} : vector<256x48xbf16>, vector<48x16xbf16>, vector<256x16xf32> -> vector<256x16xf32>
    %54 = vector.broadcast %0 : vector<1x16xf32> to vector<256x16xf32>
    %55 = arith.mulf %53, %54 : vector<256x16xf32>
    %56 = vector.broadcast %1 : vector<1x16xf32> to vector<256x16xf32>
    %57 = arith.addf %55, %56 : vector<256x16xf32>
    %cst_30 = arith.constant 0.000000e+00 : f32
    %58 = vector.broadcast %cst_30 : f32 to vector<256x16xf32>
    %59 = arith.cmpf oge, %57, %58 : vector<256x16xf32>
    %cst_31 = arith.constant 2.000000e-01 : f32
    %60 = vector.broadcast %cst_31 : f32 to vector<256x16xf32>
    %61 = arith.mulf %60, %57 : vector<256x16xf32>
    %62 = arith.select %59, %57, %61 : vector<256x16xi1>, vector<256x16xf32>
    %63 = arith.truncf %62 : vector<256x16xf32> to vector<256x16xbf16>
    %c0_32 = arith.constant 0 : index
    %64 = arith.index_cast %47 : i32 to index
    %c0_33 = arith.constant 0 : index
    %65 = vector.load %arg5[%c0_32, %64, %c0_33] : memref<1x1024x16xbf16, #tpu.memory_space<vmem>>, vector<1x256x16xbf16>
    %66 = vector.shape_cast %65 : vector<1x256x16xbf16> to vector<256x16xbf16>
    %67 = vector.shape_cast %63 : vector<256x16xbf16> to vector<1x256x16xbf16>
    tpu.vector_store %arg5[%c0_32, %64, %c0_33], %67 {strides = array<i32>} : memref<1x1024x16xbf16, #tpu.memory_space<vmem>>, vector<1x256x16xbf16>,
    %c3_i32 = arith.constant 3 : i32
    %c256_i32_34 = arith.constant 256 : i32
    %68 = arith.muli %c3_i32, %c256_i32_34 : i32
    %69 = tpu.assume_multiple %68, 16 : i32
    %c0_35 = arith.constant 0 : index
    %70 = arith.index_cast %69 : i32 to index
    %c0_36 = arith.constant 0 : index
    %71 = vector.load %arg1[%c0_35, %70, %c0_36] : memref<1x1024x48xbf16, #tpu.memory_space<vmem>>, vector<1x256x48xbf16>
    %72 = vector.shape_cast %71 : vector<1x256x48xbf16> to vector<256x48xbf16>
    %c0_37 = arith.constant 0 : index
    %c0_38 = arith.constant 0 : index
    %c0_39 = arith.constant 0 : index
    %73 = vector.load %arg2[%c0_37, %c0_38, %c0_39] : memref<1x48x16xbf16, #tpu.memory_space<vmem>>, vector<1x48x16xbf16>
    %74 = vector.shape_cast %73 : vector<1x48x16xbf16> to vector<48x16xbf16>
    %cst_40 = arith.constant dense<0.000000e+00> : vector<256x16xf32>
    %75 = tpu.matmul %72, %74, %cst_40 {dimension_numbers = #tpu.dot_dimension_numbers<[1], [0], [0], [1], [0, 0, 1, 1], [], []>} : vector<256x48xbf16>, vector<48x16xbf16>, vector<256x16xf32> -> vector<256x16xf32>
    %76 = vector.broadcast %0 : vector<1x16xf32> to vector<256x16xf32>
    %77 = arith.mulf %75, %76 : vector<256x16xf32>
    %78 = vector.broadcast %1 : vector<1x16xf32> to vector<256x16xf32>
    %79 = arith.addf %77, %78 : vector<256x16xf32>
    %cst_41 = arith.constant 0.000000e+00 : f32
    %80 = vector.broadcast %cst_41 : f32 to vector<256x16xf32>
    %81 = arith.cmpf oge, %79, %80 : vector<256x16xf32>
    %cst_42 = arith.constant 2.000000e-01 : f32
    %82 = vector.broadcast %cst_42 : f32 to vector<256x16xf32>
    %83 = arith.mulf %82, %79 : vector<256x16xf32>
    %84 = arith.select %81, %79, %83 : vector<256x16xi1>, vector<256x16xf32>
    %85 = arith.truncf %84 : vector<256x16xf32> to vector<256x16xbf16>
    %c0_43 = arith.constant 0 : index
    %86 = arith.index_cast %69 : i32 to index
    %c0_44 = arith.constant 0 : index
    %87 = vector.load %arg5[%c0_43, %86, %c0_44] : memref<1x1024x16xbf16, #tpu.memory_space<vmem>>, vector<1x256x16xbf16>
    %88 = vector.shape_cast %87 : vector<1x256x16xbf16> to vector<256x16xbf16>
    %89 = vector.shape_cast %85 : vector<256x16xbf16> to vector<1x256x16xbf16>
    tpu.vector_store %arg5[%c0_43, %86, %c0_44], %89 {strides = array<i32>} : memref<1x1024x16xbf16, #tpu.memory_space<vmem>>, vector<1x256x16xbf16>,
    %c4_i32 = arith.constant 4 : i32
    return
  }
  func.func @transform_0(%arg0: i32) -> (i32, i32, i32) {
    %c0_i32 = arith.constant 0 : i32
    %c0_i32_0 = arith.constant 0 : i32
    %c0_i32_1 = arith.constant 0 : i32
    return %arg0, %c0_i32, %c0_i32_0 : i32, i32, i32
  }
  func.func @transform_1(%arg0: i32) -> (i32, i32, i32) {
    %c0_i32 = arith.constant 0 : i32
    %c0_i32_0 = arith.constant 0 : i32
    %c0_i32_1 = arith.constant 0 : i32
    %c0_i32_2 = arith.constant 0 : i32
    return %c0_i32, %c0_i32_0, %c0_i32_1 : i32, i32, i32
  }
  func.func @transform_2(%arg0: i32) -> (i32, i32) {
    %c0_i32 = arith.constant 0 : i32
    %c0_i32_0 = arith.constant 0 : i32
    %c0_i32_1 = arith.constant 0 : i32
    return %c0_i32, %c0_i32_0 : i32, i32
  }
  func.func @transform_3(%arg0: i32) -> (i32, i32) {
    %c0_i32 = arith.constant 0 : i32
    %c0_i32_0 = arith.constant 0 : i32
    %c0_i32_1 = arith.constant 0 : i32
    return %c0_i32, %c0_i32_0 : i32, i32
  }
  func.func @transform_4(%arg0: i32) -> (i32, i32, i32) {
    %c0_i32 = arith.constant 0 : i32
    %c0_i32_0 = arith.constant 0 : i32
    %c0_i32_1 = arith.constant 0 : i32
    return %arg0, %c0_i32, %c0_i32_0 : i32, i32, i32
  }
}

</mosaic_0001>

<bundles_post_ra>
// kernel: tpu_custom_call.1
= control target key start
LH: loop header
LB: loop body
LE: loop exit
PB: predicated region body
PF: predicated region fallthrough
CT: control target
= control target key end

     0   :  { %s2954_s15 = smov 0   ;;  %s3672_s0 = inlined_call_operand.vmem [shape: bf16[2,1024,48], index: 0, kind: input, shape index: {}]   ;;  %s3673_s1 = inlined_call_operand.vmem [shape: bf16[1,48,16], index: 1, kind: input, shape index: {}]   ;;  %s3674_s2 = inlined_call_operand.vmem [shape: f32[1,16], index: 2, kind: input, shape index: {}]   ;;  %s3675_s3 = inlined_call_operand.vmem [shape: f32[1,16], index: 3, kind: input, shape index: {}]   ;;  %s3676_s4 = inlined_call_operand.vmem [shape: bf16[2,1024,16], index: 4, kind: output, shape index: {}]  }
   0x1 LB: > { %s2258_s16 = sadd.s32 4294967295, %s2927_s15   ;;  %p2262_p0 = scmp.ge.s32.totalorder %s2927_s15, 1  ;;  %s2927_s15 = sphi %s2954_s15, %s14_s15  }
   0x2   : > { %p162_p1 = scmp.lt.s32.totalorder %s2927_s15, 3 }
   0x4   : > { %p163_p2 = pnand %p2262_p0, %p162_p1 }
   0x5   : > { %p188_p3 = scmp.lt.s32.totalorder (!%p163_p2), %s2258_s16, 1 }
   0x6   : > { %166 = sbr.rel (%p163_p2) target bundleno = 416 (0x1a0), region = 36 }
   0xb   : > { %v2849_v0 = vld [vmem:[%s3673_s1 + $0x10] sm:$0xff]  ;;  %v2848_v4 = vld [vmem:[%s3673_s1 + $0x8] sm:$0xff]  ;;  %s3678_s16 = smov (!%p188_p3, %s2258_s16), 1  ;;  %v2847_v8 = vld [vmem:[%s3673_s1] sm:$0xff]  ;;  %vm337_vm0 = vcmask 392192   ;;  %vm673_vm3 = vcmask 125952  }
   0xc   : > { %v2868_v1 = vld [vmem:[%s3673_s1 + $0x10] sm:$0xff]  ;;  %391 = vmatpush.bf16.msra.mxu0 %v2849_v0  ;;  %v2867_v5 = vld [vmem:[%s3673_s1 + $0x8] sm:$0xff]  ;;  %s2829_s7 = sshll.u32 %s3678_s16, 9  ;;  %v2866_v9 = vld [vmem:[%s3673_s1] sm:$0xff] }
   0xd   : > { %v2887_v2 = vld [vmem:[%s3673_s1 + $0x10] sm:$0xff]  ;;  %896 = vmatpush.bf16.msra.mxu1 %v2868_v1  ;;  %v2886_v6 = vld [vmem:[%s3673_s1 + $0x8] sm:$0xff]  ;;  %s3000_s14 = scalar_lea.vmem %s3672_s0, %s2829_s7  ;;  %v2885_v10 = vld [vmem:[%s3673_s1] sm:$0xff]  ;;  %s3099_s27 = scalar_lea.vmem %s3676_s4, %s2829_s7 }
   0xe   : > { %v2906_v3 = vld [vmem:[%s3673_s1 + $0x10] sm:$0xff]  ;;  %1395 = vmatpush.bf16.msra.mxu2 %v2887_v2  ;;  %v2905_v7 = vld [vmem:[%s3673_s1 + $0x8] sm:$0xff]  ;;  %v2904_v11 = vld [vmem:[%s3673_s1] sm:$0xff] }
   0xf   : > { %1894 = vmatpush.bf16.msra.mxu3 %v2906_v3  ;;  %v2831_v12 = vld [vmem:[%s3000_s14] sm:$0xff]  ;;  %v2832_v16 = vld [vmem:[%s3000_s14 + $0x8] sm:$0xff]  ;;  %v2833_v20 = vld [vmem:[%s3000_s14 + $0x10] sm:$0xff] }
  0x10   : > { %392 = vmatpush.bf16.msra.mxu0 %v2848_v4  ;;  %v2850_v13 = vld [vmem:[%s3000_s14 + $0x80] sm:$0xff]  ;;  %v2851_v17 = vld [vmem:[%s3000_s14 + $0x88] sm:$0xff]  ;;  %v2852_v21 = vld [vmem:[%s3000_s14 + $0x90] sm:$0xff] }
  0x11   : > { %897 = vmatpush.bf16.msra.mxu1 %v2867_v5  ;;  %v2869_v14 = vld [vmem:[%s3000_s14 + $0x100] sm:$0xff]  ;;  %v2870_v18 = vld [vmem:[%s3000_s14 + $0x108] sm:$0xff]  ;;  %v2871_v22 = vld [vmem:[%s3000_s14 + $0x110] sm:$0xff] }
  0x12   : > { %1396 = vmatpush.bf16.msra.mxu2 %v2886_v6  ;;  %v2888_v15 = vld [vmem:[%s3000_s14 + $0x180] sm:$0xff]  ;;  %v2889_v19 = vld [vmem:[%s3000_s14 + $0x188] sm:$0xff]  ;;  %v2890_v23 = vld [vmem:[%s3000_s14 + $0x190] sm:$0xff] }
  0x13   : > { %1895 = vmatpush.bf16.msra.mxu3 %v2905_v7  ;;  %v2834_v24 = vld [vmem:[%s3000_s14 + $0x18] sm:$0xff]  ;;  %v2835_v28 = vld [vmem:[%s3000_s14 + $0x20] sm:$0xff]  ;;  %v2836_v32 = vld [vmem:[%s3000_s14 + $0x28] sm:$0xff] }
  0x14   : > { %393 = vmatpush.bf16.msra.mxu0 %v2847_v8  ;;  %v2853_v25 = vld [vmem:[%s3000_s14 + $0x98] sm:$0xff]  ;;  %v2854_v29 = vld [vmem:[%s3000_s14 + $0xa0] sm:$0xff]  ;;  %v2855_v33 = vld [vmem:[%s3000_s14 + $0xa8] sm:$0xff] }
  0x15   : > { %898 = vmatpush.bf16.msra.mxu1 %v2866_v9  ;;  %v2872_v26 = vld [vmem:[%s3000_s14 + $0x118] sm:$0xff]  ;;  %v2873_v30 = vld [vmem:[%s3000_s14 + $0x120] sm:$0xff]  ;;  %v2874_v34 = vld [vmem:[%s3000_s14 + $0x128] sm:$0xff] }
  0x16   : > { %1397 = vmatpush.bf16.msra.mxu2 %v2885_v10  ;;  %v2891_v27 = vld [vmem:[%s3000_s14 + $0x198] sm:$0xff]  ;;  %v2892_v31 = vld [vmem:[%s3000_s14 + $0x1a0] sm:$0xff]  ;;  %v2893_v35 = vld [vmem:[%s3000_s14 + $0x1a8] sm:$0xff] }
  0x17   : > { %1896 = vmatpush.bf16.msra.mxu3 %v2904_v11  ;;  %2343 = vmatmul.msk.bf16.vlgmr.msra.gmra.mxu0 %vm337_vm0, %v2831_v12  ;;  %v2837_v36 = vld [vmem:[%s3000_s14 + $0x30] sm:$0xff]  ;;  %v2838_v40 = vld [vmem:[%s3000_s14 + $0x38] sm:$0xff]  ;;  %v3075_v44 = vld [vmem:[%s3674_s2] ss:$0 sm:$0xff] }
  0x18   : > { %2467 = vmatmul.msk.bf16.vlgmr.msra.gmra.mxu1 %vm337_vm0, %v2850_v13  ;;  %v2856_v37 = vld [vmem:[%s3000_s14 + $0xb0] sm:$0xff]  ;;  %v2857_v41 = vld [vmem:[%s3000_s14 + $0xb8] sm:$0xff]  ;;  %v3080_v45 = vld [vmem:[%s3675_s3] ss:$0 sm:$0xff] }
  0x19   : > { %2623 = vmatmul.msk.bf16.vlgmr.msra.gmra.mxu2 %vm337_vm0, %v2869_v14  ;;  %v2875_v38 = vld [vmem:[%s3000_s14 + $0x130] sm:$0xff]  ;;  %v2876_v42 = vld [vmem:[%s3000_s14 + $0x138] sm:$0xff]  ;;  %v2839_v46 = vld [vmem:[%s3000_s14 + $0x40] sm:$0xff] }
  0x1a   : > { %2779 = vmatmul.msk.bf16.vlgmr.msra.gmra.mxu3 %vm337_vm0, %v2888_v15  ;;  %v2894_v39 = vld [vmem:[%s3000_s14 + $0x1b0] sm:$0xff]  ;;  %v2895_v43 = vld [vmem:[%s3000_s14 + $0x1b8] sm:$0xff]  ;;  %v2858_v47 = vld [vmem:[%s3000_s14 + $0xc0] sm:$0xff] }
  0x1b   : > { %v2877_v50 = vld [vmem:[%s3000_s14 + $0x140] sm:$0xff] }
  0x1c   : > { %v2896_v51 = vld [vmem:[%s3000_s14 + $0x1c0] sm:$0xff] }
  0x27   : > { %2344 = vmatmul.msk.bf16.gmra.mxu0 %vm337_vm0, %v2832_v16 }
  0x28   : > { %2468 = vmatmul.msk.bf16.gmra.mxu1 %vm337_vm0, %v2851_v17 }
  0x29   : > { %2624 = vmatmul.msk.bf16.gmra.mxu2 %vm337_vm0, %v2870_v18 }
  0x2a   : > { %2780 = vmatmul.msk.bf16.gmra.mxu3 %vm337_vm0, %v2889_v19 }
  0x37   : > { %2345 = vmatmul.msk.bf16.gmra.mxu0 %vm337_vm0, %v2833_v20 }
  0x38   : > { %2469 = vmatmul.msk.bf16.gmra.mxu1 %vm337_vm0, %v2852_v21 }
  0x39   : > { %2625 = vmatmul.msk.bf16.gmra.mxu2 %vm337_vm0, %v2871_v22  ;;  %v2840_v22 = vld [vmem:[%s3000_s14 + $0x48] sm:$0xff] }
  0x3a   : > { %2781 = vmatmul.msk.bf16.gmra.mxu3 %vm337_vm0, %v2890_v23  ;;  %v2859_v23 = vld [vmem:[%s3000_s14 + $0xc8] sm:$0xff] }
  0x47   : > { %2346 = vmatmul.msk.bf16.gmra.mxu0 %vm337_vm0, %v2834_v24 }
  0x48   : > { %2470 = vmatmul.msk.bf16.gmra.mxu1 %vm337_vm0, %v2853_v25 }
  0x49   : > { %2626 = vmatmul.msk.bf16.gmra.mxu2 %vm337_vm0, %v2872_v26 }
  0x4a   : > { %2782 = vmatmul.msk.bf16.gmra.mxu3 %vm337_vm0, %v2891_v27 }
  0x57   : > { %2347 = vmatmul.msk.bf16.gmra.mxu0 %vm337_vm0, %v2835_v28 }
  0x58   : > { %2471 = vmatmul.msk.bf16.gmra.mxu1 %vm337_vm0, %v2854_v29 }
  0x59   : > { %2627 = vmatmul.msk.bf16.gmra.mxu2 %vm337_vm0, %v2873_v30  ;;  %v2878_v30 = vld [vmem:[%s3000_s14 + $0x148] sm:$0xff] }
  0x5a   : > { %2783 = vmatmul.msk.bf16.gmra.mxu3 %vm337_vm0, %v2892_v31  ;;  %v2897_v31 = vld [vmem:[%s3000_s14 + $0x1c8] sm:$0xff] }
  0x67   : > { %2348 = vmatmul.msk.bf16.gmra.mxu0 %vm337_vm0, %v2836_v32 }
  0x68   : > { %2472 = vmatmul.msk.bf16.gmra.mxu1 %vm337_vm0, %v2855_v33 }
  0x69   : > { %2628 = vmatmul.msk.bf16.gmra.mxu2 %vm337_vm0, %v2874_v34 }
  0x6a   : > { %2784 = vmatmul.msk.bf16.gmra.mxu3 %vm337_vm0, %v2893_v35 }
  0x77   : > { %2349 = vmatmul.msk.bf16.gmra.mxu0 %vm337_vm0, %v2837_v36 }
  0x78   : > { %2473 = vmatmul.msk.bf16.gmra.mxu1 %vm337_vm0, %v2856_v37 }
  0x79   : > { %2629 = vmatmul.msk.bf16.gmra.mxu2 %vm337_vm0, %v2875_v38 }
  0x7a   : > { %2785 = vmatmul.msk.bf16.gmra.mxu3 %vm337_vm0, %v2894_v39 }
  0x87   : > { %2350 = vmatmul.msk.bf16.gmra.mxu0 %vm337_vm0, %v2838_v40 }
  0x88   : > { %2474 = vmatmul.msk.bf16.gmra.mxu1 %vm337_vm0, %v2857_v41 }
  0x89   : > { %2630 = vmatmul.msk.bf16.gmra.mxu2 %vm337_vm0, %v2876_v42 }
  0x8a   : > { %2786 = vmatmul.msk.bf16.gmra.mxu3 %vm337_vm0, %v2895_v43 }
  0x94   : > { %v395_v48 = vpop.f32.mrf.mxu0 }
  0x95   : > { %v900_v49 = vpop.f32.mrf.mxu1  ;;  %v478_v52 = vmul.f32 %v3075_v44, %v395_v48 }
  0x96   : > { %v980_v53 = vmul.f32 %v3075_v44, %v900_v49 }
  0x97   : > { %v513_v54 = vadd.f32 %v3080_v45, %v478_v52  ;;  %2351 = vmatmul.msk.bf16.gmra.mxu0 %vm337_vm0, %v2839_v46 }
  0x98   : > { %v1012_v55 = vadd.f32 %v3080_v45, %v980_v53  ;;  %2475 = vmatmul.msk.bf16.gmra.mxu1 %vm337_vm0, %v2858_v47 }
  0x99   : > { %2631 = vmatmul.msk.bf16.gmra.mxu2 %vm337_vm0, %v2877_v50  ;;  %vm545_vm1 = vcmp.ge.f32.partialorder %v513_v54, 0.0  ;;  %v577_v56 = vmul.f32 0.2, %v513_v54 }
  0x9a   : > { %2787 = vmatmul.msk.bf16.gmra.mxu3 %vm337_vm0, %v2896_v51  ;;  %vm1044_vm2 = vcmp.ge.f32.partialorder %v1012_v55, 0.0  ;;  %v1076_v57 = vmul.f32 0.2, %v1012_v55 }
  0x9b   : > { %v609_v58 = vsel %vm545_vm1, %v513_v54, %v577_v56 }
  0x9c   : > { %v1108_v59 = vsel %vm1044_vm2, %v1012_v55, %v1076_v57  ;;  %v1399_v60 = vpop.f32.mrf.mxu2  ;;  %v641_v62 = vpack.c.bf16 %v609_v58, %v609_v58  ;;  %v397_v2 = vpop.f32.mrf.mxu0 }
  0x9d   : > { %v1898_v61 = vpop.f32.mrf.mxu3  ;;  %v1140_v63 = vpack.c.bf16 %v1108_v59, %v1108_v59  ;;  %v1479_v0 = vmul.f32 %v3075_v44, %v1399_v60  ;;  %v902_v3 = vpop.f32.mrf.mxu1  ;;  %v479_v4 = vmul.f32 %v3075_v44, %v397_v2 }
  0x9e   : > { %v1978_v1 = vmul.f32 %v3075_v44, %v1898_v61  ;;  %v981_v5 = vmul.f32 %v3075_v44, %v902_v3  ;;  %674 = vst.msk [vmem:[%s3099_s27] sm:$0xf] %vm673_vm3, %v641_v62 }
  0x9f   : > { %v1511_v6 = vadd.f32 %v3080_v45, %v1479_v0  ;;  %2483 = vst.msk [vmem:[%s3099_s27 + $0x80] sm:$0xf] %vm673_vm3, %v1140_v63  ;;  %v514_v8 = vadd.f32 %v3080_v45, %v479_v4 }
  0xa0   : > { %v2010_v7 = vadd.f32 %v3080_v45, %v1978_v1  ;;  %v1013_v9 = vadd.f32 %v3080_v45, %v981_v5 }
  0xa1   : > { %vm1543_vm4 = vcmp.ge.f32.partialorder %v1511_v6, 0.0  ;;  %v1575_v10 = vmul.f32 0.2, %v1511_v6  ;;  %vm546_vm6 = vcmp.ge.f32.partialorder %v514_v8, 0.0  ;;  %v578_v12 = vmul.f32 0.2, %v514_v8 }
  0xa2   : > { %vm2042_vm5 = vcmp.ge.f32.partialorder %v2010_v7, 0.0  ;;  %v2074_v11 = vmul.f32 0.2, %v2010_v7  ;;  %vm1045_vm7 = vcmp.ge.f32.partialorder %v1013_v9, 0.0  ;;  %v1077_v13 = vmul.f32 0.2, %v1013_v9 }
  0xa3   : > { %v1607_v14 = vsel %vm1543_vm4, %v1511_v6, %v1575_v10  ;;  %v610_v18 = vsel %vm546_vm6, %v514_v8, %v578_v12  ;;  %v2841_v10 = vld [vmem:[%s3000_s14 + $0x50] sm:$0xff] }
  0xa4   : > { %v2106_v15 = vsel %vm2042_vm5, %v2010_v7, %v2074_v11  ;;  %v1639_v16 = vpack.c.bf16 %v1607_v14, %v1607_v14  ;;  %v1109_v19 = vsel %vm1045_vm7, %v1013_v9, %v1077_v13  ;;  %v1401_v20 = vpop.f32.mrf.mxu2  ;;  %v642_v24 = vpack.c.bf16 %v610_v18, %v610_v18  ;;  %v400_v28 = vpop.f32.mrf.mxu0  ;;  %v2860_v11 = vld [vmem:[%s3000_s14 + $0xd0] sm:$0xff] }
  0xa5   : > { %v2138_v17 = vpack.c.bf16 %v2106_v15, %v2106_v15  ;;  %v1900_v21 = vpop.f32.mrf.mxu3  ;;  %v1141_v25 = vpack.c.bf16 %v1109_v19, %v1109_v19  ;;  %v1480_v26 = vmul.f32 %v3075_v44, %v1401_v20  ;;  %v905_v29 = vpop.f32.mrf.mxu1  ;;  %v480_v32 = vmul.f32 %v3075_v44, %v400_v28  ;;  %v2879_v18 = vld [vmem:[%s3000_s14 + $0x150] sm:$0xff] }
  0xa6   : > { %v1979_v27 = vmul.f32 %v3075_v44, %v1900_v21  ;;  %2639 = vst.msk [vmem:[%s3099_s27 + $0x100] sm:$0xf] %vm673_vm3, %v1639_v16  ;;  %v982_v33 = vmul.f32 %v3075_v44, %v905_v29  ;;  %v2898_v19 = vld [vmem:[%s3000_s14 + $0x1d0] sm:$0xff] }
  0xa7   : > { %2795 = vst.msk [vmem:[%s3099_s27 + $0x180] sm:$0xf] %vm673_vm3, %v2138_v17  ;;  %v1512_v34 = vadd.f32 %v3080_v45, %v1480_v26  ;;  %v515_v36 = vadd.f32 %v3080_v45, %v480_v32  ;;  %2352 = vmatmul.msk.bf16.gmra.mxu0 %vm337_vm0, %v2840_v22 }
  0xa8   : > { %v2011_v35 = vadd.f32 %v3080_v45, %v1979_v27  ;;  %675 = vst.msk [vmem:[%s3099_s27 + $0x4] sm:$0xf] %vm673_vm3, %v642_v24  ;;  %v1014_v37 = vadd.f32 %v3080_v45, %v982_v33  ;;  %2476 = vmatmul.msk.bf16.gmra.mxu1 %vm337_vm0, %v2859_v23 }
  0xa9   : > { %2484 = vst.msk [vmem:[%s3099_s27 + $0x84] sm:$0xf] %vm673_vm3, %v1141_v25  ;;  %vm1544_vm8 = vcmp.ge.f32.partialorder %v1512_v34, 0.0  ;;  %v1576_v38 = vmul.f32 0.2, %v1512_v34  ;;  %2632 = vmatmul.msk.bf16.gmra.mxu2 %vm337_vm0, %v2878_v30  ;;  %vm547_vm10 = vcmp.ge.f32.partialorder %v515_v36, 0.0 }
  0xaa   : > { %vm2043_vm9 = vcmp.ge.f32.partialorder %v2011_v35, 0.0  ;;  %2788 = vmatmul.msk.bf16.gmra.mxu3 %vm337_vm0, %v2897_v31  ;;  %v2075_v39 = vmul.f32 0.2, %v2011_v35  ;;  %v579_v40 = vmul.f32 0.2, %v515_v36  ;;  %vm1046_vm11 = vcmp.ge.f32.partialorder %v1014_v37, 0.0 }
  0xab   : > { %v1608_v41 = vsel %vm1544_vm8, %v1512_v34, %v1576_v38  ;;  %v1078_v42 = vmul.f32 0.2, %v1014_v37 }
  0xac   : > { %v1640_v43 = vpack.c.bf16 %v1608_v41, %v1608_v41  ;;  %v2107_v46 = vsel %vm2043_vm9, %v2011_v35, %v2075_v39  ;;  %v611_v47 = vsel %vm547_vm10, %v515_v36, %v579_v40  ;;  %v1404_v48 = vpop.f32.mrf.mxu2  ;;  %v402_v54 = vpop.f32.mrf.mxu0 }
  0xad   : > { %v1903_v49 = vpop.f32.mrf.mxu3  ;;  %v2139_v50 = vpack.c.bf16 %v2107_v46, %v2107_v46  ;;  %v643_v51 = vpack.c.bf16 %v611_v47, %v611_v47  ;;  %v1110_v52 = vsel %vm1046_vm11, %v1014_v37, %v1078_v42  ;;  %v1481_v53 = vmul.f32 %v3075_v44, %v1404_v48  ;;  %v907_v55 = vpop.f32.mrf.mxu1 }
  0xae   : > { %2640 = vst.msk [vmem:[%s3099_s27 + $0x104] sm:$0xf] %vm673_vm3, %v1640_v43  ;;  %v1142_v56 = vpack.c.bf16 %v1110_v52, %v1110_v52  ;;  %v1980_v57 = vmul.f32 %v3075_v44, %v1903_v49  ;;  %v481_v58 = vmul.f32 %v3075_v44, %v402_v54  ;;  %v983_v59 = vmul.f32 %v3075_v44, %v907_v55 }
  0xaf   : > { %2796 = vst.msk [vmem:[%s3099_s27 + $0x184] sm:$0xf] %vm673_vm3, %v2139_v50  ;;  %v1513_v60 = vadd.f32 %v3080_v45, %v1481_v53 }
  0xb0   : > { %676 = vst.msk [vmem:[%s3099_s27 + $0x8] sm:$0xf] %vm673_vm3, %v643_v51  ;;  %v2012_v61 = vadd.f32 %v3080_v45, %v1980_v57  ;;  %v516_v62 = vadd.f32 %v3080_v45, %v481_v58  ;;  %v1015_v63 = vadd.f32 %v3080_v45, %v983_v59 }
  0xb1   : > { %2485 = vst.msk [vmem:[%s3099_s27 + $0x88] sm:$0xf] %vm673_vm3, %v1142_v56  ;;  %vm1545_vm12 = vcmp.ge.f32.partialorder %v1513_v60, 0.0  ;;  %v1577_v0 = vmul.f32 0.2, %v1513_v60 }
  0xb2   : > { %vm2044_vm13 = vcmp.ge.f32.partialorder %v2012_v61, 0.0  ;;  %v2076_v1 = vmul.f32 0.2, %v2012_v61  ;;  %vm548_vm14 = vcmp.ge.f32.partialorder %v516_v62, 0.0  ;;  %v580_v2 = vmul.f32 0.2, %v516_v62 }
  0xb3   : > { %v1609_v3 = vsel %vm1545_vm12, %v1513_v60, %v1577_v0  ;;  %vm1047_vm15 = vcmp.ge.f32.partialorder %v1015_v63, 0.0  ;;  %v1079_v4 = vmul.f32 0.2, %v1015_v63  ;;  %v2842_v0 = vld [vmem:[%s3000_s14 + $0x58] sm:$0xff] }
  0xb4   : > { %v1641_v5 = vpack.c.bf16 %v1609_v3, %v1609_v3  ;;  %v2108_v6 = vsel %vm2044_vm13, %v2012_v61, %v2076_v1  ;;  %v612_v7 = vsel %vm548_vm14, %v516_v62, %v580_v2  ;;  %v1406_v8 = vpop.f32.mrf.mxu2  ;;  %v405_v16 = vpop.f32.mrf.mxu0  ;;  %v2861_v1 = vld [vmem:[%s3000_s14 + $0xd8] sm:$0xff] }
  0xb5   : > { %v1905_v9 = vpop.f32.mrf.mxu3  ;;  %v2140_v12 = vpack.c.bf16 %v2108_v6, %v2108_v6  ;;  %v644_v13 = vpack.c.bf16 %v612_v7, %v612_v7  ;;  %v1111_v14 = vsel %vm1047_vm15, %v1015_v63, %v1079_v4  ;;  %v1482_v15 = vmul.f32 %v3075_v44, %v1406_v8  ;;  %v910_v17 = vpop.f32.mrf.mxu1  ;;  %v2880_v8 = vld [vmem:[%s3000_s14 + $0x158] sm:$0xff] }
  0xb6   : > { %2641 = vst.msk [vmem:[%s3099_s27 + $0x108] sm:$0xf] %vm673_vm3, %v1641_v5  ;;  %v1143_v20 = vpack.c.bf16 %v1111_v14, %v1111_v14  ;;  %v1981_v21 = vmul.f32 %v3075_v44, %v1905_v9  ;;  %v482_v22 = vmul.f32 %v3075_v44, %v405_v16  ;;  %v984_v23 = vmul.f32 %v3075_v44, %v910_v17  ;;  %v2899_v9 = vld [vmem:[%s3000_s14 + $0x1d8] sm:$0xff] }
  0xb7   : > { %2797 = vst.msk [vmem:[%s3099_s27 + $0x188] sm:$0xf] %vm673_vm3, %v2140_v12  ;;  %v1514_v24 = vadd.f32 %v3080_v45, %v1482_v15  ;;  %2353 = vmatmul.msk.bf16.gmra.mxu0 %vm337_vm0, %v2841_v10 }
  0xb8   : > { %677 = vst.msk [vmem:[%s3099_s27 + $0xc] sm:$0xf] %vm673_vm3, %v644_v13  ;;  %v2013_v25 = vadd.f32 %v3080_v45, %v1981_v21  ;;  %v517_v26 = vadd.f32 %v3080_v45, %v482_v22  ;;  %v1016_v27 = vadd.f32 %v3080_v45, %v984_v23  ;;  %2477 = vmatmul.msk.bf16.gmra.mxu1 %vm337_vm0, %v2860_v11 }
  0xb9   : > { %2486 = vst.msk [vmem:[%s3099_s27 + $0x8c] sm:$0xf] %vm673_vm3, %v1143_v20  ;;  %vm1546_vm1 = vcmp.ge.f32.partialorder %v1514_v24, 0.0  ;;  %v1578_v28 = vmul.f32 0.2, %v1514_v24  ;;  %2633 = vmatmul.msk.bf16.gmra.mxu2 %vm337_vm0, %v2879_v18 }
  0xba   : > { %2789 = vmatmul.msk.bf16.gmra.mxu3 %vm337_vm0, %v2898_v19  ;;  %vm2045_vm2 = vcmp.ge.f32.partialorder %v2013_v25, 0.0  ;;  %v2077_v29 = vmul.f32 0.2, %v2013_v25  ;;  %vm549_vm4 = vcmp.ge.f32.partialorder %v517_v26, 0.0  ;;  %v581_v30 = vmul.f32 0.2, %v517_v26 }
  0xbb   : > { %v1610_v31 = vsel %vm1546_vm1, %v1514_v24, %v1578_v28  ;;  %vm1048_vm5 = vcmp.ge.f32.partialorder %v1016_v27, 0.0  ;;  %v1080_v32 = vmul.f32 0.2, %v1016_v27 }
  0xbc   : > { %v1642_v33 = vpack.c.bf16 %v1610_v31, %v1610_v31  ;;  %v2109_v34 = vsel %vm2045_vm2, %v2013_v25, %v2077_v29  ;;  %v613_v35 = vsel %vm549_vm4, %v517_v26, %v581_v30  ;;  %v1409_v36 = vpop.f32.mrf.mxu2  ;;  %v407_v42 = vpop.f32.mrf.mxu0 }
  0xbd   : > { %v1908_v37 = vpop.f32.mrf.mxu3  ;;  %v2141_v38 = vpack.c.bf16 %v2109_v34, %v2109_v34  ;;  %v645_v39 = vpack.c.bf16 %v613_v35, %v613_v35  ;;  %v1112_v40 = vsel %vm1048_vm5, %v1016_v27, %v1080_v32  ;;  %v1483_v41 = vmul.f32 %v3075_v44, %v1409_v36  ;;  %v912_v43 = vpop.f32.mrf.mxu1 }
  0xbe   : > { %2642 = vst.msk [vmem:[%s3099_s27 + $0x10c] sm:$0xf] %vm673_vm3, %v1642_v33  ;;  %v1144_v46 = vpack.c.bf16 %v1112_v40, %v1112_v40  ;;  %v1982_v47 = vmul.f32 %v3075_v44, %v1908_v37  ;;  %v483_v48 = vmul.f32 %v3075_v44, %v407_v42  ;;  %v985_v49 = vmul.f32 %v3075_v44, %v912_v43 }
  0xbf   : > { %2798 = vst.msk [vmem:[%s3099_s27 + $0x18c] sm:$0xf] %vm673_vm3, %v2141_v38  ;;  %v1515_v50 = vadd.f32 %v3080_v45, %v1483_v41 }
  0xc0   : > { %678 = vst.msk [vmem:[%s3099_s27 + $0x10] sm:$0xf] %vm673_vm3, %v645_v39  ;;  %v2014_v51 = vadd.f32 %v3080_v45, %v1982_v47  ;;  %v518_v52 = vadd.f32 %v3080_v45, %v483_v48  ;;  %v1017_v53 = vadd.f32 %v3080_v45, %v985_v49 }
  0xc1   : > { %2487 = vst.msk [vmem:[%s3099_s27 + $0x90] sm:$0xf] %vm673_vm3, %v1144_v46  ;;  %vm1547_vm6 = vcmp.ge.f32.partialorder %v1515_v50, 0.0  ;;  %v1579_v54 = vmul.f32 0.2, %v1515_v50 }
  0xc2   : > { %vm2046_vm7 = vcmp.ge.f32.partialorder %v2014_v51, 0.0  ;;  %v2078_v55 = vmul.f32 0.2, %v2014_v51  ;;  %vm550_vm8 = vcmp.ge.f32.partialorder %v518_v52, 0.0  ;;  %v582_v56 = vmul.f32 0.2, %v518_v52 }
  0xc3   : > { %v1611_v57 = vsel %vm1547_vm6, %v1515_v50, %v1579_v54  ;;  %vm1049_vm9 = vcmp.ge.f32.partialorder %v1017_v53, 0.0  ;;  %v1081_v58 = vmul.f32 0.2, %v1017_v53  ;;  %v2843_v54 = vld [vmem:[%s3000_s14 + $0x60] sm:$0xff] }
  0xc4   : > { %v1643_v59 = vpack.c.bf16 %v1611_v57, %v1611_v57  ;;  %v2110_v60 = vsel %vm2046_vm7, %v2014_v51, %v2078_v55  ;;  %v614_v61 = vsel %vm550_vm8, %v518_v52, %v582_v56  ;;  %v1411_v62 = vpop.f32.mrf.mxu2  ;;  %v410_v6 = vpop.f32.mrf.mxu0  ;;  %v2862_v55 = vld [vmem:[%s3000_s14 + $0xe0] sm:$0xff] }
  0xc5   : > { %v1910_v63 = vpop.f32.mrf.mxu3  ;;  %v2142_v2 = vpack.c.bf16 %v2110_v60, %v2110_v60  ;;  %v646_v3 = vpack.c.bf16 %v614_v61, %v614_v61  ;;  %v1113_v4 = vsel %vm1049_vm9, %v1017_v53, %v1081_v58  ;;  %v1484_v5 = vmul.f32 %v3075_v44, %v1411_v62  ;;  %v915_v7 = vpop.f32.mrf.mxu1  ;;  %v2881_v62 = vld [vmem:[%s3000_s14 + $0x160] sm:$0xff] }
  0xc6   : > { %2643 = vst.msk [vmem:[%s3099_s27 + $0x110] sm:$0xf] %vm673_vm3, %v1643_v59  ;;  %v1145_v10 = vpack.c.bf16 %v1113_v4, %v1113_v4  ;;  %v1983_v11 = vmul.f32 %v3075_v44, %v1910_v63  ;;  %v484_v12 = vmul.f32 %v3075_v44, %v410_v6  ;;  %v986_v13 = vmul.f32 %v3075_v44, %v915_v7  ;;  %v2900_v63 = vld [vmem:[%s3000_s14 + $0x1e0] sm:$0xff] }
  0xc7   : > { %2799 = vst.msk [vmem:[%s3099_s27 + $0x190] sm:$0xf] %vm673_vm3, %v2142_v2  ;;  %v1516_v14 = vadd.f32 %v3080_v45, %v1484_v5  ;;  %2354 = vmatmul.msk.bf16.gmra.mxu0 %vm337_vm0, %v2842_v0 }
  0xc8   : > { %679 = vst.msk [vmem:[%s3099_s27 + $0x14] sm:$0xf] %vm673_vm3, %v646_v3  ;;  %v2015_v15 = vadd.f32 %v3080_v45, %v1983_v11  ;;  %v519_v16 = vadd.f32 %v3080_v45, %v484_v12  ;;  %v1018_v17 = vadd.f32 %v3080_v45, %v986_v13  ;;  %2478 = vmatmul.msk.bf16.gmra.mxu1 %vm337_vm0, %v2861_v1 }
  0xc9   : > { %2488 = vst.msk [vmem:[%s3099_s27 + $0x94] sm:$0xf] %vm673_vm3, %v1145_v10  ;;  %vm1548_vm10 = vcmp.ge.f32.partialorder %v1516_v14, 0.0  ;;  %v1580_v18 = vmul.f32 0.2, %v1516_v14  ;;  %2634 = vmatmul.msk.bf16.gmra.mxu2 %vm337_vm0, %v2880_v8 }
  0xca   : > { %2790 = vmatmul.msk.bf16.gmra.mxu3 %vm337_vm0, %v2899_v9  ;;  %vm2047_vm11 = vcmp.ge.f32.partialorder %v2015_v15, 0.0  ;;  %v2079_v19 = vmul.f32 0.2, %v2015_v15  ;;  %vm551_vm12 = vcmp.ge.f32.partialorder %v519_v16, 0.0  ;;  %v583_v20 = vmul.f32 0.2, %v519_v16 }
  0xcb   : > { %v1612_v21 = vsel %vm1548_vm10, %v1516_v14, %v1580_v18  ;;  %vm1050_vm13 = vcmp.ge.f32.partialorder %v1018_v17, 0.0  ;;  %v1082_v22 = vmul.f32 0.2, %v1018_v17 }
  0xcc   : > { %v1644_v23 = vpack.c.bf16 %v1612_v21, %v1612_v21  ;;  %v2111_v24 = vsel %vm2047_vm11, %v2015_v15, %v2079_v19  ;;  %v615_v25 = vsel %vm551_vm12, %v519_v16, %v583_v20  ;;  %v1414_v26 = vpop.f32.mrf.mxu2  ;;  %v412_v32 = vpop.f32.mrf.mxu0 }
  0xcd   : > { %v1913_v27 = vpop.f32.mrf.mxu3  ;;  %v2143_v28 = vpack.c.bf16 %v2111_v24, %v2111_v24  ;;  %v647_v29 = vpack.c.bf16 %v615_v25, %v615_v25  ;;  %v1114_v30 = vsel %vm1050_vm13, %v1018_v17, %v1082_v22  ;;  %v1485_v31 = vmul.f32 %v3075_v44, %v1414_v26  ;;  %v917_v33 = vpop.f32.mrf.mxu1 }
  0xce   : > { %2644 = vst.msk [vmem:[%s3099_s27 + $0x114] sm:$0xf] %vm673_vm3, %v1644_v23  ;;  %v1146_v34 = vpack.c.bf16 %v1114_v30, %v1114_v30  ;;  %v1984_v35 = vmul.f32 %v3075_v44, %v1913_v27  ;;  %v485_v36 = vmul.f32 %v3075_v44, %v412_v32  ;;  %v987_v37 = vmul.f32 %v3075_v44, %v917_v33 }
  0xcf   : > { %2800 = vst.msk [vmem:[%s3099_s27 + $0x194] sm:$0xf] %vm673_vm3, %v2143_v28  ;;  %v1517_v38 = vadd.f32 %v3080_v45, %v1485_v31 }
  0xd0   : > { %680 = vst.msk [vmem:[%s3099_s27 + $0x18] sm:$0xf] %vm673_vm3, %v647_v29  ;;  %v2016_v39 = vadd.f32 %v3080_v45, %v1984_v35  ;;  %v520_v40 = vadd.f32 %v3080_v45, %v485_v36  ;;  %v1019_v41 = vadd.f32 %v3080_v45, %v987_v37 }
  0xd1   : > { %2489 = vst.msk [vmem:[%s3099_s27 + $0x98] sm:$0xf] %vm673_vm3, %v1146_v34  ;;  %vm1549_vm14 = vcmp.ge.f32.partialorder %v1517_v38, 0.0  ;;  %v1581_v42 = vmul.f32 0.2, %v1517_v38 }
  0xd2   : > { %vm2048_vm15 = vcmp.ge.f32.partialorder %v2016_v39, 0.0  ;;  %v2080_v43 = vmul.f32 0.2, %v2016_v39  ;;  %vm552_vm1 = vcmp.ge.f32.partialorder %v520_v40, 0.0  ;;  %v584_v46 = vmul.f32 0.2, %v520_v40 }
  0xd3   : > { %v1613_v47 = vsel %vm1549_vm14, %v1517_v38, %v1581_v42  ;;  %vm1051_vm2 = vcmp.ge.f32.partialorder %v1019_v41, 0.0  ;;  %v1083_v48 = vmul.f32 0.2, %v1019_v41  ;;  %v2844_v42 = vld [vmem:[%s3000_s14 + $0x68] sm:$0xff] }
  0xd4   : > { %v1645_v49 = vpack.c.bf16 %v1613_v47, %v1613_v47  ;;  %v2112_v50 = vsel %vm2048_vm15, %v2016_v39, %v2080_v43  ;;  %v616_v51 = vsel %vm552_vm1, %v520_v40, %v584_v46  ;;  %v1416_v52 = vpop.f32.mrf.mxu2  ;;  %v415_v60 = vpop.f32.mrf.mxu0  ;;  %v2863_v43 = vld [vmem:[%s3000_s14 + $0xe8] sm:$0xff] }
  0xd5   : > { %v1915_v53 = vpop.f32.mrf.mxu3  ;;  %v2144_v56 = vpack.c.bf16 %v2112_v50, %v2112_v50  ;;  %v648_v57 = vpack.c.bf16 %v616_v51, %v616_v51  ;;  %v1115_v58 = vsel %vm1051_vm2, %v1019_v41, %v1083_v48  ;;  %v1486_v59 = vmul.f32 %v3075_v44, %v1416_v52  ;;  %v920_v61 = vpop.f32.mrf.mxu1  ;;  %v2882_v52 = vld [vmem:[%s3000_s14 + $0x168] sm:$0xff] }
  0xd6   : > { %2645 = vst.msk [vmem:[%s3099_s27 + $0x118] sm:$0xf] %vm673_vm3, %v1645_v49  ;;  %v1147_v0 = vpack.c.bf16 %v1115_v58, %v1115_v58  ;;  %v1985_v1 = vmul.f32 %v3075_v44, %v1915_v53  ;;  %v486_v2 = vmul.f32 %v3075_v44, %v415_v60  ;;  %v988_v3 = vmul.f32 %v3075_v44, %v920_v61  ;;  %v2901_v53 = vld [vmem:[%s3000_s14 + $0x1e8] sm:$0xff] }
  0xd7   : > { %2801 = vst.msk [vmem:[%s3099_s27 + $0x198] sm:$0xf] %vm673_vm3, %v2144_v56  ;;  %v1518_v4 = vadd.f32 %v3080_v45, %v1486_v59  ;;  %2355 = vmatmul.msk.bf16.gmra.mxu0 %vm337_vm0, %v2843_v54 }
  0xd8   : > { %681 = vst.msk [vmem:[%s3099_s27 + $0x1c] sm:$0xf] %vm673_vm3, %v648_v57  ;;  %v2017_v5 = vadd.f32 %v3080_v45, %v1985_v1  ;;  %v521_v6 = vadd.f32 %v3080_v45, %v486_v2  ;;  %v1020_v7 = vadd.f32 %v3080_v45, %v988_v3  ;;  %2479 = vmatmul.msk.bf16.gmra.mxu1 %vm337_vm0, %v2862_v55 }
  0xd9   : > { %2490 = vst.msk [vmem:[%s3099_s27 + $0x9c] sm:$0xf] %vm673_vm3, %v1147_v0  ;;  %vm1550_vm4 = vcmp.ge.f32.partialorder %v1518_v4, 0.0  ;;  %v1582_v8 = vmul.f32 0.2, %v1518_v4  ;;  %2635 = vmatmul.msk.bf16.gmra.mxu2 %vm337_vm0, %v2881_v62 }
  0xda   : > { %2791 = vmatmul.msk.bf16.gmra.mxu3 %vm337_vm0, %v2900_v63  ;;  %vm2049_vm5 = vcmp.ge.f32.partialorder %v2017_v5, 0.0  ;;  %v2081_v9 = vmul.f32 0.2, %v2017_v5  ;;  %vm553_vm6 = vcmp.ge.f32.partialorder %v521_v6, 0.0  ;;  %v585_v10 = vmul.f32 0.2, %v521_v6 }
  0xdb   : > { %v1614_v11 = vsel %vm1550_vm4, %v1518_v4, %v1582_v8  ;;  %vm1052_vm7 = vcmp.ge.f32.partialorder %v1020_v7, 0.0  ;;  %v1084_v12 = vmul.f32 0.2, %v1020_v7 }
  0xdc   : > { %v1646_v13 = vpack.c.bf16 %v1614_v11, %v1614_v11  ;;  %v2113_v14 = vsel %vm2049_vm5, %v2017_v5, %v2081_v9  ;;  %v617_v15 = vsel %vm553_vm6, %v521_v6, %v585_v10  ;;  %v1419_v16 = vpop.f32.mrf.mxu2  ;;  %v417_v22 = vpop.f32.mrf.mxu0 }
  0xdd   : > { %v1918_v17 = vpop.f32.mrf.mxu3  ;;  %v2145_v18 = vpack.c.bf16 %v2113_v14, %v2113_v14  ;;  %v649_v19 = vpack.c.bf16 %v617_v15, %v617_v15  ;;  %v1116_v20 = vsel %vm1052_vm7, %v1020_v7, %v1084_v12  ;;  %v1487_v21 = vmul.f32 %v3075_v44, %v1419_v16  ;;  %v922_v23 = vpop.f32.mrf.mxu1 }
  0xde   : > { %2646 = vst.msk [vmem:[%s3099_s27 + $0x11c] sm:$0xf] %vm673_vm3, %v1646_v13  ;;  %v1148_v24 = vpack.c.bf16 %v1116_v20, %v1116_v20  ;;  %v1986_v25 = vmul.f32 %v3075_v44, %v1918_v17  ;;  %v487_v26 = vmul.f32 %v3075_v44, %v417_v22  ;;  %v989_v27 = vmul.f32 %v3075_v44, %v922_v23 }
  0xdf   : > { %2802 = vst.msk [vmem:[%s3099_s27 + $0x19c] sm:$0xf] %vm673_vm3, %v2145_v18  ;;  %v1519_v28 = vadd.f32 %v3080_v45, %v1487_v21 }
  0xe0   : > { %682 = vst.msk [vmem:[%s3099_s27 + $0x20] sm:$0xf] %vm673_vm3, %v649_v19  ;;  %v2018_v29 = vadd.f32 %v3080_v45, %v1986_v25  ;;  %v522_v30 = vadd.f32 %v3080_v45, %v487_v26  ;;  %v1021_v31 = vadd.f32 %v3080_v45, %v989_v27 }
  0xe1   : > { %2491 = vst.msk [vmem:[%s3099_s27 + $0xa0] sm:$0xf] %vm673_vm3, %v1148_v24  ;;  %vm1551_vm8 = vcmp.ge.f32.partialorder %v1519_v28, 0.0  ;;  %v1583_v32 = vmul.f32 0.2, %v1519_v28 }
  0xe2   : > { %vm2050_vm9 = vcmp.ge.f32.partialorder %v2018_v29, 0.0  ;;  %v2082_v33 = vmul.f32 0.2, %v2018_v29  ;;  %vm554_vm10 = vcmp.ge.f32.partialorder %v522_v30, 0.0  ;;  %v586_v34 = vmul.f32 0.2, %v522_v30 }
  0xe3   : > { %v1615_v35 = vsel %vm1551_vm8, %v1519_v28, %v1583_v32  ;;  %vm1053_vm11 = vcmp.ge.f32.partialorder %v1021_v31, 0.0  ;;  %v1085_v36 = vmul.f32 0.2, %v1021_v31  ;;  %v2845_v32 = vld [vmem:[%s3000_s14 + $0x70] sm:$0xff] }
  0xe4   : > { %v1647_v37 = vpack.c.bf16 %v1615_v35, %v1615_v35  ;;  %v2114_v38 = vsel %vm2050_vm9, %v2018_v29, %v2082_v33  ;;  %v618_v39 = vsel %vm554_vm10, %v522_v30, %v586_v34  ;;  %v1421_v40 = vpop.f32.mrf.mxu2  ;;  %v420_v50 = vpop.f32.mrf.mxu0  ;;  %v2864_v33 = vld [vmem:[%s3000_s14 + $0xf0] sm:$0xff] }
  0xe5   : > { %v1920_v41 = vpop.f32.mrf.mxu3  ;;  %v2146_v46 = vpack.c.bf16 %v2114_v38, %v2114_v38  ;;  %v650_v47 = vpack.c.bf16 %v618_v39, %v618_v39  ;;  %v1117_v48 = vsel %vm1053_vm11, %v1021_v31, %v1085_v36  ;;  %v1488_v49 = vmul.f32 %v3075_v44, %v1421_v40  ;;  %v925_v51 = vpop.f32.mrf.mxu1  ;;  %v2883_v40 = vld [vmem:[%s3000_s14 + $0x170] sm:$0xff] }
  0xe6   : > { %2647 = vst.msk [vmem:[%s3099_s27 + $0x120] sm:$0xf] %vm673_vm3, %v1647_v37  ;;  %v1149_v54 = vpack.c.bf16 %v1117_v48, %v1117_v48  ;;  %v1987_v55 = vmul.f32 %v3075_v44, %v1920_v41  ;;  %v488_v56 = vmul.f32 %v3075_v44, %v420_v50  ;;  %v990_v57 = vmul.f32 %v3075_v44, %v925_v51  ;;  %v2902_v41 = vld [vmem:[%s3000_s14 + $0x1f0] sm:$0xff] }
  0xe7   : > { %2803 = vst.msk [vmem:[%s3099_s27 + $0x1a0] sm:$0xf] %vm673_vm3, %v2146_v46  ;;  %v1520_v58 = vadd.f32 %v3080_v45, %v1488_v49  ;;  %2356 = vmatmul.msk.bf16.gmra.mxu0 %vm337_vm0, %v2844_v42 }
  0xe8   : > { %683 = vst.msk [vmem:[%s3099_s27 + $0x24] sm:$0xf] %vm673_vm3, %v650_v47  ;;  %v2019_v59 = vadd.f32 %v3080_v45, %v1987_v55  ;;  %v523_v60 = vadd.f32 %v3080_v45, %v488_v56  ;;  %v1022_v61 = vadd.f32 %v3080_v45, %v990_v57  ;;  %2480 = vmatmul.msk.bf16.gmra.mxu1 %vm337_vm0, %v2863_v43 }
  0xe9   : > { %2492 = vst.msk [vmem:[%s3099_s27 + $0xa4] sm:$0xf] %vm673_vm3, %v1149_v54  ;;  %vm1552_vm12 = vcmp.ge.f32.partialorder %v1520_v58, 0.0  ;;  %v1584_v62 = vmul.f32 0.2, %v1520_v58  ;;  %2636 = vmatmul.msk.bf16.gmra.mxu2 %vm337_vm0, %v2882_v52 }
  0xea   : > { %2792 = vmatmul.msk.bf16.gmra.mxu3 %vm337_vm0, %v2901_v53  ;;  %vm2051_vm13 = vcmp.ge.f32.partialorder %v2019_v59, 0.0  ;;  %v2083_v63 = vmul.f32 0.2, %v2019_v59  ;;  %vm555_vm14 = vcmp.ge.f32.partialorder %v523_v60, 0.0  ;;  %v587_v0 = vmul.f32 0.2, %v523_v60 }
  0xeb   : > { %v1616_v1 = vsel %vm1552_vm12, %v1520_v58, %v1584_v62  ;;  %vm1054_vm15 = vcmp.ge.f32.partialorder %v1022_v61, 0.0  ;;  %v1086_v2 = vmul.f32 0.2, %v1022_v61 }
  0xec   : > { %v1648_v3 = vpack.c.bf16 %v1616_v1, %v1616_v1  ;;  %v2115_v4 = vsel %vm2051_vm13, %v2019_v59, %v2083_v63  ;;  %v619_v5 = vsel %vm555_vm14, %v523_v60, %v587_v0  ;;  %v1424_v6 = vpop.f32.mrf.mxu2  ;;  %v422_v12 = vpop.f32.mrf.mxu0 }
  0xed   : > { %v1923_v7 = vpop.f32.mrf.mxu3  ;;  %v2147_v8 = vpack.c.bf16 %v2115_v4, %v2115_v4  ;;  %v651_v9 = vpack.c.bf16 %v619_v5, %v619_v5  ;;  %v1118_v10 = vsel %vm1054_vm15, %v1022_v61, %v1086_v2  ;;  %v1489_v11 = vmul.f32 %v3075_v44, %v1424_v6  ;;  %v927_v13 = vpop.f32.mrf.mxu1 }
  0xee   : > { %2648 = vst.msk [vmem:[%s3099_s27 + $0x124] sm:$0xf] %vm673_vm3, %v1648_v3  ;;  %v1150_v14 = vpack.c.bf16 %v1118_v10, %v1118_v10  ;;  %v1988_v15 = vmul.f32 %v3075_v44, %v1923_v7  ;;  %v489_v16 = vmul.f32 %v3075_v44, %v422_v12  ;;  %v991_v17 = vmul.f32 %v3075_v44, %v927_v13 }
  0xef   : > { %2804 = vst.msk [vmem:[%s3099_s27 + $0x1a4] sm:$0xf] %vm673_vm3, %v2147_v8  ;;  %v1521_v18 = vadd.f32 %v3080_v45, %v1489_v11 }
  0xf0   : > { %684 = vst.msk [vmem:[%s3099_s27 + $0x28] sm:$0xf] %vm673_vm3, %v651_v9  ;;  %v2020_v19 = vadd.f32 %v3080_v45, %v1988_v15  ;;  %v524_v20 = vadd.f32 %v3080_v45, %v489_v16  ;;  %v1023_v21 = vadd.f32 %v3080_v45, %v991_v17 }
  0xf1   : > { %2493 = vst.msk [vmem:[%s3099_s27 + $0xa8] sm:$0xf] %vm673_vm3, %v1150_v14  ;;  %vm1553_vm1 = vcmp.ge.f32.partialorder %v1521_v18, 0.0  ;;  %v1585_v22 = vmul.f32 0.2, %v1521_v18 }
  0xf2   : > { %vm2052_vm2 = vcmp.ge.f32.partialorder %v2020_v19, 0.0  ;;  %v2084_v23 = vmul.f32 0.2, %v2020_v19  ;;  %vm556_vm4 = vcmp.ge.f32.partialorder %v524_v20, 0.0  ;;  %v588_v24 = vmul.f32 0.2, %v524_v20 }
  0xf3   : > { %v1617_v25 = vsel %vm1553_vm1, %v1521_v18, %v1585_v22  ;;  %vm1055_vm5 = vcmp.ge.f32.partialorder %v1023_v21, 0.0  ;;  %v1087_v26 = vmul.f32 0.2, %v1023_v21  ;;  %v2846_v22 = vld [vmem:[%s3000_s14 + $0x78] sm:$0xff] }
  0xf4   : > { %v1649_v27 = vpack.c.bf16 %v1617_v25, %v1617_v25  ;;  %v2116_v28 = vsel %vm2052_vm2, %v2020_v19, %v2084_v23  ;;  %v620_v29 = vsel %vm556_vm4, %v524_v20, %v588_v24  ;;  %v1426_v30 = vpop.f32.mrf.mxu2  ;;  %v425_v38 = vpop.f32.mrf.mxu0  ;;  %v2865_v23 = vld [vmem:[%s3000_s14 + $0xf8] sm:$0xff] }
  0xf5   : > { %v1925_v31 = vpop.f32.mrf.mxu3  ;;  %v2148_v34 = vpack.c.bf16 %v2116_v28, %v2116_v28  ;;  %v652_v35 = vpack.c.bf16 %v620_v29, %v620_v29  ;;  %v1119_v36 = vsel %vm1055_vm5, %v1023_v21, %v1087_v26  ;;  %v1490_v37 = vmul.f32 %v3075_v44, %v1426_v30  ;;  %v930_v39 = vpop.f32.mrf.mxu1  ;;  %v2884_v30 = vld [vmem:[%s3000_s14 + $0x178] sm:$0xff] }
  0xf6   : > { %2649 = vst.msk [vmem:[%s3099_s27 + $0x128] sm:$0xf] %vm673_vm3, %v1649_v27  ;;  %v1151_v42 = vpack.c.bf16 %v1119_v36, %v1119_v36  ;;  %v1989_v43 = vmul.f32 %v3075_v44, %v1925_v31  ;;  %v490_v46 = vmul.f32 %v3075_v44, %v425_v38  ;;  %v992_v47 = vmul.f32 %v3075_v44, %v930_v39  ;;  %v2903_v31 = vld [vmem:[%s3000_s14 + $0x1f8] sm:$0xff] }
  0xf7   : > { %2805 = vst.msk [vmem:[%s3099_s27 + $0x1a8] sm:$0xf] %vm673_vm3, %v2148_v34  ;;  %v1522_v48 = vadd.f32 %v3080_v45, %v1490_v37  ;;  %2357 = vmatmul.msk.bf16.gmra.mxu0 %vm337_vm0, %v2845_v32 }
  0xf8   : > { %685 = vst.msk [vmem:[%s3099_s27 + $0x2c] sm:$0xf] %vm673_vm3, %v652_v35  ;;  %v2021_v49 = vadd.f32 %v3080_v45, %v1989_v43  ;;  %v525_v50 = vadd.f32 %v3080_v45, %v490_v46  ;;  %v1024_v51 = vadd.f32 %v3080_v45, %v992_v47  ;;  %2481 = vmatmul.msk.bf16.gmra.mxu1 %vm337_vm0, %v2864_v33 }
  0xf9   : > { %2494 = vst.msk [vmem:[%s3099_s27 + $0xac] sm:$0xf] %vm673_vm3, %v1151_v42  ;;  %vm1554_vm6 = vcmp.ge.f32.partialorder %v1522_v48, 0.0  ;;  %v1586_v52 = vmul.f32 0.2, %v1522_v48  ;;  %2637 = vmatmul.msk.bf16.gmra.mxu2 %vm337_vm0, %v2883_v40 }
  0xfa   : > { %2793 = vmatmul.msk.bf16.gmra.mxu3 %vm337_vm0, %v2902_v41  ;;  %vm2053_vm7 = vcmp.ge.f32.partialorder %v2021_v49, 0.0  ;;  %v2085_v53 = vmul.f32 0.2, %v2021_v49  ;;  %vm557_vm8 = vcmp.ge.f32.partialorder %v525_v50, 0.0  ;;  %v589_v54 = vmul.f32 0.2, %v525_v50 }
  0xfb   : > { %v1618_v55 = vsel %vm1554_vm6, %v1522_v48, %v1586_v52  ;;  %vm1056_vm9 = vcmp.ge.f32.partialorder %v1024_v51, 0.0  ;;  %v1088_v56 = vmul.f32 0.2, %v1024_v51 }
  0xfc   : > { %v1650_v57 = vpack.c.bf16 %v1618_v55, %v1618_v55  ;;  %v2117_v58 = vsel %vm2053_vm7, %v2021_v49, %v2085_v53  ;;  %v621_v59 = vsel %vm557_vm8, %v525_v50, %v589_v54  ;;  %v1429_v60 = vpop.f32.mrf.mxu2  ;;  %v427_v2 = vpop.f32.mrf.mxu0  ;;  %v3380_v53 = vld [vmem:[%s3674_s2] ss:$0 sm:$0xff] }
  0xfd   : > { %v1928_v61 = vpop.f32.mrf.mxu3  ;;  %v2149_v62 = vpack.c.bf16 %v2117_v58, %v2117_v58  ;;  %v653_v63 = vpack.c.bf16 %v621_v59, %v621_v59  ;;  %v1120_v0 = vsel %vm1056_vm9, %v1024_v51, %v1088_v56  ;;  %v1491_v1 = vmul.f32 %v3075_v44, %v1429_v60  ;;  %v932_v3 = vpop.f32.mrf.mxu1 }
  0xfe   : > { %2650 = vst.msk [vmem:[%s3099_s27 + $0x12c] sm:$0xf] %vm673_vm3, %v1650_v57  ;;  %v1152_v4 = vpack.c.bf16 %v1120_v0, %v1120_v0  ;;  %v1990_v5 = vmul.f32 %v3075_v44, %v1928_v61  ;;  %v491_v6 = vmul.f32 %v3075_v44, %v427_v2  ;;  %v993_v7 = vmul.f32 %v3075_v44, %v932_v3  ;;  %v3393_v61 = vld [vmem:[%s3675_s3] ss:$0 sm:$0xff] }
  0xff   : > { %2806 = vst.msk [vmem:[%s3099_s27 + $0x1ac] sm:$0xf] %vm673_vm3, %v2149_v62  ;;  %v1523_v8 = vadd.f32 %v3080_v45, %v1491_v1 }
 0x100   : > { %686 = vst.msk [vmem:[%s3099_s27 + $0x30] sm:$0xf] %vm673_vm3, %v653_v63  ;;  %v2022_v9 = vadd.f32 %v3080_v45, %v1990_v5  ;;  %v526_v10 = vadd.f32 %v3080_v45, %v491_v6  ;;  %v1025_v11 = vadd.f32 %v3080_v45, %v993_v7 }
 0x101   : > { %2495 = vst.msk [vmem:[%s3099_s27 + $0xb0] sm:$0xf] %vm673_vm3, %v1152_v4  ;;  %vm1555_vm10 = vcmp.ge.f32.partialorder %v1523_v8, 0.0  ;;  %v1587_v12 = vmul.f32 0.2, %v1523_v8 }
 0x102   : > { %vm2054_vm11 = vcmp.ge.f32.partialorder %v2022_v9, 0.0  ;;  %v2086_v13 = vmul.f32 0.2, %v2022_v9  ;;  %vm558_vm12 = vcmp.ge.f32.partialorder %v526_v10, 0.0  ;;  %v590_v14 = vmul.f32 0.2, %v526_v10 }
 0x103   : > { %v1619_v15 = vsel %vm1555_vm10, %v1523_v8, %v1587_v12  ;;  %vm1057_vm13 = vcmp.ge.f32.partialorder %v1025_v11, 0.0  ;;  %v1089_v16 = vmul.f32 0.2, %v1025_v11 }
 0x104   : > { %v1651_v17 = vpack.c.bf16 %v1619_v15, %v1619_v15  ;;  %v2118_v18 = vsel %vm2054_vm11, %v2022_v9, %v2086_v13  ;;  %v622_v19 = vsel %vm558_vm12, %v526_v10, %v590_v14  ;;  %v1431_v20 = vpop.f32.mrf.mxu2  ;;  %v430_v28 = vpop.f32.mrf.mxu0 }
 0x105   : > { %v1930_v21 = vpop.f32.mrf.mxu3  ;;  %v2150_v24 = vpack.c.bf16 %v2118_v18, %v2118_v18  ;;  %v654_v25 = vpack.c.bf16 %v622_v19, %v622_v19  ;;  %v1121_v26 = vsel %vm1057_vm13, %v1025_v11, %v1089_v16  ;;  %v1492_v27 = vmul.f32 %v3075_v44, %v1431_v20  ;;  %v935_v29 = vpop.f32.mrf.mxu1 }
 0x106   : > { %2651 = vst.msk [vmem:[%s3099_s27 + $0x130] sm:$0xf] %vm673_vm3, %v1651_v17  ;;  %v1153_v32 = vpack.c.bf16 %v1121_v26, %v1121_v26  ;;  %v1991_v33 = vmul.f32 %v3075_v44, %v1930_v21  ;;  %v492_v34 = vmul.f32 %v3075_v44, %v430_v28  ;;  %v994_v35 = vmul.f32 %v3075_v44, %v935_v29 }
 0x107   : > { %2807 = vst.msk [vmem:[%s3099_s27 + $0x1b0] sm:$0xf] %vm673_vm3, %v2150_v24  ;;  %v1524_v36 = vadd.f32 %v3080_v45, %v1492_v27  ;;  %2358 = vmatmul.msk.bf16.gmra.mxu0 %vm337_vm0, %v2846_v22 }
 0x108   : > { %687 = vst.msk [vmem:[%s3099_s27 + $0x34] sm:$0xf] %vm673_vm3, %v654_v25  ;;  %v2023_v37 = vadd.f32 %v3080_v45, %v1991_v33  ;;  %v527_v38 = vadd.f32 %v3080_v45, %v492_v34  ;;  %v1026_v39 = vadd.f32 %v3080_v45, %v994_v35  ;;  %2482 = vmatmul.msk.bf16.gmra.mxu1 %vm337_vm0, %v2865_v23 }
 0x109   : > { %2496 = vst.msk [vmem:[%s3099_s27 + $0xb4] sm:$0xf] %vm673_vm3, %v1153_v32  ;;  %vm1556_vm14 = vcmp.ge.f32.partialorder %v1524_v36, 0.0  ;;  %v1588_v44 = vmul.f32 0.2, %v1524_v36  ;;  %2638 = vmatmul.msk.bf16.gmra.mxu2 %vm337_vm0, %v2884_v30 }
 0x10a   : > { %2794 = vmatmul.msk.bf16.gmra.mxu3 %vm337_vm0, %v2903_v31  ;;  %vm2055_vm15 = vcmp.ge.f32.partialorder %v2023_v37, 0.0  ;;  %v2087_v40 = vmul.f32 0.2, %v2023_v37  ;;  %vm559_vm1 = vcmp.ge.f32.partialorder %v527_v38, 0.0  ;;  %v591_v41 = vmul.f32 0.2, %v527_v38 }
 0x10b   : > { %v1620_v42 = vsel %vm1556_vm14, %v1524_v36, %v1588_v44  ;;  %vm1058_vm2 = vcmp.ge.f32.partialorder %v1026_v39, 0.0  ;;  %v1090_v45 = vmul.f32 0.2, %v1026_v39 }
 0x10c   : > { %v1652_v43 = vpack.c.bf16 %v1620_v42, %v1620_v42  ;;  %v2119_v46 = vsel %vm2055_vm15, %v2023_v37, %v2087_v40  ;;  %v623_v47 = vsel %vm559_vm1, %v527_v38, %v591_v41  ;;  %v1434_v48 = vpop.f32.mrf.mxu2  ;;  %v432_v55 = vpop.f32.mrf.mxu0 }
 0x10d   : > { %v1933_v49 = vpop.f32.mrf.mxu3  ;;  %v2151_v50 = vpack.c.bf16 %v2119_v46, %v2119_v46  ;;  %v655_v51 = vpack.c.bf16 %v623_v47, %v623_v47  ;;  %v1122_v52 = vsel %vm1058_vm2, %v1026_v39, %v1090_v45  ;;  %v1493_v54 = vmul.f32 %v3380_v53, %v1434_v48  ;;  %v937_v56 = vpop.f32.mrf.mxu1 }
 0x10e   : > { %2652 = vst.msk [vmem:[%s3099_s27 + $0x134] sm:$0xf] %vm673_vm3, %v1652_v43  ;;  %v1154_v57 = vpack.c.bf16 %v1122_v52, %v1122_v52  ;;  %v1992_v58 = vmul.f32 %v3380_v53, %v1933_v49  ;;  %v493_v59 = vmul.f32 %v3380_v53, %v432_v55  ;;  %v995_v60 = vmul.f32 %v3380_v53, %v937_v56 }
 0x10f   : > { %2808 = vst.msk [vmem:[%s3099_s27 + $0x1b4] sm:$0xf] %vm673_vm3, %v2151_v50  ;;  %v1525_v62 = vadd.f32 %v3393_v61, %v1493_v54 }
 0x110   : > { %688 = vst.msk [vmem:[%s3099_s27 + $0x38] sm:$0xf] %vm673_vm3, %v655_v51  ;;  %v2024_v63 = vadd.f32 %v3393_v61, %v1992_v58  ;;  %v528_v0 = vadd.f32 %v3393_v61, %v493_v59  ;;  %v1027_v1 = vadd.f32 %v3393_v61, %v995_v60 }
 0x111   : > { %2497 = vst.msk [vmem:[%s3099_s27 + $0xb8] sm:$0xf] %vm673_vm3, %v1154_v57  ;;  %vm1557_vm0 = vcmp.ge.f32.partialorder %v1525_v62, 0.0  ;;  %v1589_v2 = vmul.f32 0.2, %v1525_v62 }
 0x112   : > { %vm2056_vm4 = vcmp.ge.f32.partialorder %v2024_v63, 0.0  ;;  %v2088_v3 = vmul.f32 0.2, %v2024_v63  ;;  %vm560_vm5 = vcmp.ge.f32.partialorder %v528_v0, 0.0  ;;  %v592_v4 = vmul.f32 0.2, %v528_v0 }
 0x113   : > { %v1621_v5 = vsel %vm1557_vm0, %v1525_v62, %v1589_v2  ;;  %vm1059_vm6 = vcmp.ge.f32.partialorder %v1027_v1, 0.0  ;;  %v1091_v6 = vmul.f32 0.2, %v1027_v1 }
 0x114   : > { %v1653_v7 = vpack.c.bf16 %v1621_v5, %v1621_v5  ;;  %v2120_v8 = vsel %vm2056_vm4, %v2024_v63, %v2088_v3  ;;  %v624_v9 = vsel %vm560_vm5, %v528_v0, %v592_v4  ;;  %v1436_v10 = vpop.f32.mrf.mxu2  ;;  %v435_v16 = vpop.f32.mrf.mxu0 }
 0x115   : > { %v1935_v11 = vpop.f32.mrf.mxu3  ;;  %v2152_v12 = vpack.c.bf16 %v2120_v8, %v2120_v8  ;;  %v656_v13 = vpack.c.bf16 %v624_v9, %v624_v9  ;;  %v1123_v14 = vsel %vm1059_vm6, %v1027_v1, %v1091_v6  ;;  %v1494_v15 = vmul.f32 %v3380_v53, %v1436_v10  ;;  %v940_v17 = vpop.f32.mrf.mxu1 }
 0x116   : > { %2653 = vst.msk [vmem:[%s3099_s27 + $0x138] sm:$0xf] %vm673_vm3, %v1653_v7  ;;  %v1155_v18 = vpack.c.bf16 %v1123_v14, %v1123_v14  ;;  %v1993_v19 = vmul.f32 %v3380_v53, %v1935_v11  ;;  %v494_v20 = vmul.f32 %v3380_v53, %v435_v16  ;;  %v996_v21 = vmul.f32 %v3380_v53, %v940_v17 }
 0x117   : > { %2809 = vst.msk [vmem:[%s3099_s27 + $0x1b8] sm:$0xf] %vm673_vm3, %v2152_v12  ;;  %v1526_v22 = vadd.f32 %v3393_v61, %v1494_v15 }
 0x118   : > { %689 = vst.msk [vmem:[%s3099_s27 + $0x3c] sm:$0xf] %vm673_vm3, %v656_v13  ;;  %v2025_v23 = vadd.f32 %v3393_v61, %v1993_v19  ;;  %v529_v24 = vadd.f32 %v3393_v61, %v494_v20  ;;  %v1028_v25 = vadd.f32 %v3393_v61, %v996_v21 }
 0x119   : > { %2498 = vst.msk [vmem:[%s3099_s27 + $0xbc] sm:$0xf] %vm673_vm3, %v1155_v18  ;;  %vm1558_vm7 = vcmp.ge.f32.partialorder %v1526_v22, 0.0  ;;  %v1590_v26 = vmul.f32 0.2, %v1526_v22 }
 0x11a   : > { %vm2057_vm8 = vcmp.ge.f32.partialorder %v2025_v23, 0.0  ;;  %v2089_v27 = vmul.f32 0.2, %v2025_v23  ;;  %vm561_vm9 = vcmp.ge.f32.partialorder %v529_v24, 0.0  ;;  %v593_v28 = vmul.f32 0.2, %v529_v24 }
 0x11b   : > { %v1622_v29 = vsel %vm1558_vm7, %v1526_v22, %v1590_v26  ;;  %vm1060_vm10 = vcmp.ge.f32.partialorder %v1028_v25, 0.0  ;;  %v1092_v30 = vmul.f32 0.2, %v1028_v25 }
 0x11c   : > { %v1654_v31 = vpack.c.bf16 %v1622_v29, %v1622_v29  ;;  %v2121_v32 = vsel %vm2057_vm8, %v2025_v23, %v2089_v27  ;;  %v625_v33 = vsel %vm561_vm9, %v529_v24, %v593_v28  ;;  %v1439_v34 = vpop.f32.mrf.mxu2  ;;  %v437_v44 = vpop.f32.mrf.mxu0 }
 0x11d   : > { %v1938_v35 = vpop.f32.mrf.mxu3  ;;  %v2153_v36 = vpack.c.bf16 %v2121_v32, %v2121_v32  ;;  %v657_v37 = vpack.c.bf16 %v625_v33, %v625_v33  ;;  %v1124_v38 = vsel %vm1060_vm10, %v1028_v25, %v1092_v30  ;;  %v1495_v39 = vmul.f32 %v3380_v53, %v1439_v34  ;;  %v942_v40 = vpop.f32.mrf.mxu1 }
 0x11e   : > { %2654 = vst.msk [vmem:[%s3099_s27 + $0x13c] sm:$0xf] %vm673_vm3, %v1654_v31  ;;  %v1156_v41 = vpack.c.bf16 %v1124_v38, %v1124_v38  ;;  %v1994_v42 = vmul.f32 %v3380_v53, %v1938_v35  ;;  %v495_v45 = vmul.f32 %v3380_v53, %v437_v44  ;;  %v997_v43 = vmul.f32 %v3380_v53, %v942_v40 }
 0x11f   : > { %2810 = vst.msk [vmem:[%s3099_s27 + $0x1bc] sm:$0xf] %vm673_vm3, %v2153_v36  ;;  %v1527_v46 = vadd.f32 %v3393_v61, %v1495_v39 }
 0x120   : > { %690 = vst.msk [vmem:[%s3099_s27 + $0x40] sm:$0xf] %vm673_vm3, %v657_v37  ;;  %v2026_v47 = vadd.f32 %v3393_v61, %v1994_v42  ;;  %v530_v48 = vadd.f32 %v3393_v61, %v495_v45  ;;  %v1029_v49 = vadd.f32 %v3393_v61, %v997_v43 }
 0x121   : > { %2499 = vst.msk [vmem:[%s3099_s27 + $0xc0] sm:$0xf] %vm673_vm3, %v1156_v41  ;;  %vm1559_vm11 = vcmp.ge.f32.partialorder %v1527_v46, 0.0  ;;  %v1591_v50 = vmul.f32 0.2, %v1527_v46 }
 0x122   : > { %vm2058_vm12 = vcmp.ge.f32.partialorder %v2026_v47, 0.0  ;;  %v2090_v51 = vmul.f32 0.2, %v2026_v47  ;;  %vm562_vm13 = vcmp.ge.f32.partialorder %v530_v48, 0.0  ;;  %v594_v52 = vmul.f32 0.2, %v530_v48 }
 0x123   : > { %v1623_v54 = vsel %vm1559_vm11, %v1527_v46, %v1591_v50  ;;  %vm1061_vm14 = vcmp.ge.f32.partialorder %v1029_v49, 0.0  ;;  %v1093_v55 = vmul.f32 0.2, %v1029_v49 }
 0x124   : > { %v1655_v56 = vpack.c.bf16 %v1623_v54, %v1623_v54  ;;  %v2122_v57 = vsel %vm2058_vm12, %v2026_v47, %v2090_v51  ;;  %v626_v58 = vsel %vm562_vm13, %v530_v48, %v594_v52  ;;  %v1441_v59 = vpop.f32.mrf.mxu2  ;;  %v440_v2 = vpop.f32.mrf.mxu0 }
 0x125   : > { %v1940_v60 = vpop.f32.mrf.mxu3  ;;  %v2154_v62 = vpack.c.bf16 %v2122_v57, %v2122_v57  ;;  %v658_v63 = vpack.c.bf16 %v626_v58, %v626_v58  ;;  %v1125_v0 = vsel %vm1061_vm14, %v1029_v49, %v1093_v55  ;;  %v1496_v1 = vmul.f32 %v3380_v53, %v1441_v59  ;;  %v945_v3 = vpop.f32.mrf.mxu1 }
 0x126   : > { %2655 = vst.msk [vmem:[%s3099_s27 + $0x140] sm:$0xf] %vm673_vm3, %v1655_v56  ;;  %v1157_v4 = vpack.c.bf16 %v1125_v0, %v1125_v0  ;;  %v1995_v5 = vmul.f32 %v3380_v53, %v1940_v60  ;;  %v496_v6 = vmul.f32 %v3380_v53, %v440_v2  ;;  %v998_v7 = vmul.f32 %v3380_v53, %v945_v3 }
 0x127   : > { %2811 = vst.msk [vmem:[%s3099_s27 + $0x1c0] sm:$0xf] %vm673_vm3, %v2154_v62  ;;  %v1528_v8 = vadd.f32 %v3393_v61, %v1496_v1 }
 0x128   : > { %691 = vst.msk [vmem:[%s3099_s27 + $0x44] sm:$0xf] %vm673_vm3, %v658_v63  ;;  %v2027_v9 = vadd.f32 %v3393_v61, %v1995_v5  ;;  %v531_v10 = vadd.f32 %v3393_v61, %v496_v6  ;;  %v1030_v11 = vadd.f32 %v3393_v61, %v998_v7 }
 0x129   : > { %2500 = vst.msk [vmem:[%s3099_s27 + $0xc4] sm:$0xf] %vm673_vm3, %v1157_v4  ;;  %vm1560_vm15 = vcmp.ge.f32.partialorder %v1528_v8, 0.0  ;;  %v1592_v12 = vmul.f32 0.2, %v1528_v8 }
 0x12a   : > { %vm2059_vm1 = vcmp.ge.f32.partialorder %v2027_v9, 0.0  ;;  %v2091_v13 = vmul.f32 0.2, %v2027_v9  ;;  %vm563_vm2 = vcmp.ge.f32.partialorder %v531_v10, 0.0  ;;  %v595_v14 = vmul.f32 0.2, %v531_v10 }
 0x12b   : > { %v1624_v15 = vsel %vm1560_vm15, %v1528_v8, %v1592_v12  ;;  %vm1062_vm0 = vcmp.ge.f32.partialorder %v1030_v11, 0.0  ;;  %v1094_v16 = vmul.f32 0.2, %v1030_v11 }
 0x12c   : > { %v1656_v17 = vpack.c.bf16 %v1624_v15, %v1624_v15  ;;  %v2123_v18 = vsel %vm2059_vm1, %v2027_v9, %v2091_v13  ;;  %v627_v19 = vsel %vm563_vm2, %v531_v10, %v595_v14  ;;  %v1444_v20 = vpop.f32.mrf.mxu2  ;;  %v442_v26 = vpop.f32.mrf.mxu0 }
 0x12d   : > { %v1943_v21 = vpop.f32.mrf.mxu3  ;;  %v2155_v22 = vpack.c.bf16 %v2123_v18, %v2123_v18  ;;  %v659_v23 = vpack.c.bf16 %v627_v19, %v627_v19  ;;  %v1126_v24 = vsel %vm1062_vm0, %v1030_v11, %v1094_v16  ;;  %v1497_v25 = vmul.f32 %v3380_v53, %v1444_v20  ;;  %v947_v27 = vpop.f32.mrf.mxu1 }
 0x12e   : > { %2656 = vst.msk [vmem:[%s3099_s27 + $0x144] sm:$0xf] %vm673_vm3, %v1656_v17  ;;  %v1158_v28 = vpack.c.bf16 %v1126_v24, %v1126_v24  ;;  %v1996_v29 = vmul.f32 %v3380_v53, %v1943_v21  ;;  %v497_v30 = vmul.f32 %v3380_v53, %v442_v26  ;;  %v999_v31 = vmul.f32 %v3380_v53, %v947_v27 }
 0x12f   : > { %2812 = vst.msk [vmem:[%s3099_s27 + $0x1c4] sm:$0xf] %vm673_vm3, %v2155_v22  ;;  %v1529_v32 = vadd.f32 %v3393_v61, %v1497_v25 }
 0x130   : > { %692 = vst.msk [vmem:[%s3099_s27 + $0x48] sm:$0xf] %vm673_vm3, %v659_v23  ;;  %v2028_v33 = vadd.f32 %v3393_v61, %v1996_v29  ;;  %v532_v34 = vadd.f32 %v3393_v61, %v497_v30  ;;  %v1031_v35 = vadd.f32 %v3393_v61, %v999_v31 }
 0x131   : > { %2501 = vst.msk [vmem:[%s3099_s27 + $0xc8] sm:$0xf] %vm673_vm3, %v1158_v28  ;;  %vm1561_vm4 = vcmp.ge.f32.partialorder %v1529_v32, 0.0  ;;  %v1593_v36 = vmul.f32 0.2, %v1529_v32 }
 0x132   : > { %vm2060_vm5 = vcmp.ge.f32.partialorder %v2028_v33, 0.0  ;;  %v2092_v37 = vmul.f32 0.2, %v2028_v33  ;;  %vm564_vm6 = vcmp.ge.f32.partialorder %v532_v34, 0.0  ;;  %v596_v38 = vmul.f32 0.2, %v532_v34 }
 0x133   : > { %v1625_v39 = vsel %vm1561_vm4, %v1529_v32, %v1593_v36  ;;  %vm1063_vm7 = vcmp.ge.f32.partialorder %v1031_v35, 0.0  ;;  %v1095_v44 = vmul.f32 0.2, %v1031_v35 }
 0x134   : > { %v1657_v40 = vpack.c.bf16 %v1625_v39, %v1625_v39  ;;  %v2124_v41 = vsel %vm2060_vm5, %v2028_v33, %v2092_v37  ;;  %v628_v42 = vsel %vm564_vm6, %v532_v34, %v596_v38  ;;  %v1446_v45 = vpop.f32.mrf.mxu2  ;;  %v445_v50 = vpop.f32.mrf.mxu0 }
 0x135   : > { %v1945_v43 = vpop.f32.mrf.mxu3  ;;  %v2156_v46 = vpack.c.bf16 %v2124_v41, %v2124_v41  ;;  %v660_v47 = vpack.c.bf16 %v628_v42, %v628_v42  ;;  %v1127_v48 = vsel %vm1063_vm7, %v1031_v35, %v1095_v44  ;;  %v1498_v49 = vmul.f32 %v3380_v53, %v1446_v45  ;;  %v950_v51 = vpop.f32.mrf.mxu1 }
 0x136   : > { %2657 = vst.msk [vmem:[%s3099_s27 + $0x148] sm:$0xf] %vm673_vm3, %v1657_v40  ;;  %v1159_v52 = vpack.c.bf16 %v1127_v48, %v1127_v48  ;;  %v1997_v54 = vmul.f32 %v3380_v53, %v1945_v43  ;;  %v498_v55 = vmul.f32 %v3380_v53, %v445_v50  ;;  %v1000_v56 = vmul.f32 %v3380_v53, %v950_v51 }
 0x137   : > { %2813 = vst.msk [vmem:[%s3099_s27 + $0x1c8] sm:$0xf] %vm673_vm3, %v2156_v46  ;;  %v1530_v57 = vadd.f32 %v3393_v61, %v1498_v49 }
 0x138   : > { %693 = vst.msk [vmem:[%s3099_s27 + $0x4c] sm:$0xf] %vm673_vm3, %v660_v47  ;;  %v2029_v58 = vadd.f32 %v3393_v61, %v1997_v54  ;;  %v533_v59 = vadd.f32 %v3393_v61, %v498_v55  ;;  %v1032_v60 = vadd.f32 %v3393_v61, %v1000_v56 }
 0x139   : > { %2502 = vst.msk [vmem:[%s3099_s27 + $0xcc] sm:$0xf] %vm673_vm3, %v1159_v52  ;;  %vm1562_vm8 = vcmp.ge.f32.partialorder %v1530_v57, 0.0  ;;  %v1594_v62 = vmul.f32 0.2, %v1530_v57 }
 0x13a   : > { %vm2061_vm9 = vcmp.ge.f32.partialorder %v2029_v58, 0.0  ;;  %v2093_v63 = vmul.f32 0.2, %v2029_v58  ;;  %vm565_vm10 = vcmp.ge.f32.partialorder %v533_v59, 0.0  ;;  %v597_v0 = vmul.f32 0.2, %v533_v59 }
 0x13b   : > { %v1626_v1 = vsel %vm1562_vm8, %v1530_v57, %v1594_v62  ;;  %vm1064_vm11 = vcmp.ge.f32.partialorder %v1032_v60, 0.0  ;;  %v1096_v2 = vmul.f32 0.2, %v1032_v60 }
 0x13c   : > { %v1658_v3 = vpack.c.bf16 %v1626_v1, %v1626_v1  ;;  %v2125_v4 = vsel %vm2061_vm9, %v2029_v58, %v2093_v63  ;;  %v629_v5 = vsel %vm565_vm10, %v533_v59, %v597_v0  ;;  %v1449_v6 = vpop.f32.mrf.mxu2  ;;  %v447_v12 = vpop.f32.mrf.mxu0 }
 0x13d   : > { %v1948_v7 = vpop.f32.mrf.mxu3  ;;  %v2157_v8 = vpack.c.bf16 %v2125_v4, %v2125_v4  ;;  %v661_v9 = vpack.c.bf16 %v629_v5, %v629_v5  ;;  %v1128_v10 = vsel %vm1064_vm11, %v1032_v60, %v1096_v2  ;;  %v1499_v11 = vmul.f32 %v3380_v53, %v1449_v6  ;;  %v952_v13 = vpop.f32.mrf.mxu1 }
 0x13e   : > { %2658 = vst.msk [vmem:[%s3099_s27 + $0x14c] sm:$0xf] %vm673_vm3, %v1658_v3  ;;  %v1160_v14 = vpack.c.bf16 %v1128_v10, %v1128_v10  ;;  %v1998_v15 = vmul.f32 %v3380_v53, %v1948_v7  ;;  %v499_v16 = vmul.f32 %v3380_v53, %v447_v12  ;;  %v1001_v17 = vmul.f32 %v3380_v53, %v952_v13 }
 0x13f   : > { %2814 = vst.msk [vmem:[%s3099_s27 + $0x1cc] sm:$0xf] %vm673_vm3, %v2157_v8  ;;  %v1531_v18 = vadd.f32 %v3393_v61, %v1499_v11 }
 0x140   : > { %694 = vst.msk [vmem:[%s3099_s27 + $0x50] sm:$0xf] %vm673_vm3, %v661_v9  ;;  %v2030_v19 = vadd.f32 %v3393_v61, %v1998_v15  ;;  %v534_v20 = vadd.f32 %v3393_v61, %v499_v16  ;;  %v1033_v21 = vadd.f32 %v3393_v61, %v1001_v17 }
 0x141   : > { %2503 = vst.msk [vmem:[%s3099_s27 + $0xd0] sm:$0xf] %vm673_vm3, %v1160_v14  ;;  %vm1563_vm12 = vcmp.ge.f32.partialorder %v1531_v18, 0.0  ;;  %v1595_v22 = vmul.f32 0.2, %v1531_v18 }
 0x142   : > { %vm2062_vm13 = vcmp.ge.f32.partialorder %v2030_v19, 0.0  ;;  %v2094_v23 = vmul.f32 0.2, %v2030_v19  ;;  %vm566_vm14 = vcmp.ge.f32.partialorder %v534_v20, 0.0  ;;  %v598_v24 = vmul.f32 0.2, %v534_v20 }
 0x143   : > { %v1627_v25 = vsel %vm1563_vm12, %v1531_v18, %v1595_v22  ;;  %vm1065_vm15 = vcmp.ge.f32.partialorder %v1033_v21, 0.0  ;;  %v1097_v26 = vmul.f32 0.2, %v1033_v21 }
 0x144   : > { %v1659_v27 = vpack.c.bf16 %v1627_v25, %v1627_v25  ;;  %v2126_v28 = vsel %vm2062_vm13, %v2030_v19, %v2094_v23  ;;  %v630_v29 = vsel %vm566_vm14, %v534_v20, %v598_v24  ;;  %v1451_v30 = vpop.f32.mrf.mxu2  ;;  %v450_v36 = vpop.f32.mrf.mxu0 }
 0x145   : > { %v1950_v31 = vpop.f32.mrf.mxu3  ;;  %v2158_v32 = vpack.c.bf16 %v2126_v28, %v2126_v28  ;;  %v662_v33 = vpack.c.bf16 %v630_v29, %v630_v29  ;;  %v1129_v34 = vsel %vm1065_vm15, %v1033_v21, %v1097_v26  ;;  %v1500_v35 = vmul.f32 %v3380_v53, %v1451_v30  ;;  %v955_v37 = vpop.f32.mrf.mxu1 }
 0x146   : > { %2659 = vst.msk [vmem:[%s3099_s27 + $0x150] sm:$0xf] %vm673_vm3, %v1659_v27  ;;  %v1161_v38 = vpack.c.bf16 %v1129_v34, %v1129_v34  ;;  %v1999_v39 = vmul.f32 %v3380_v53, %v1950_v31  ;;  %v500_v44 = vmul.f32 %v3380_v53, %v450_v36  ;;  %v1002_v40 = vmul.f32 %v3380_v53, %v955_v37 }
 0x147   : > { %2815 = vst.msk [vmem:[%s3099_s27 + $0x1d0] sm:$0xf] %vm673_vm3, %v2158_v32  ;;  %v1532_v41 = vadd.f32 %v3393_v61, %v1500_v35 }
 0x148   : > { %695 = vst.msk [vmem:[%s3099_s27 + $0x54] sm:$0xf] %vm673_vm3, %v662_v33  ;;  %v2031_v42 = vadd.f32 %v3393_v61, %v1999_v39  ;;  %v535_v45 = vadd.f32 %v3393_v61, %v500_v44  ;;  %v1034_v43 = vadd.f32 %v3393_v61, %v1002_v40 }
 0x149   : > { %2504 = vst.msk [vmem:[%s3099_s27 + $0xd4] sm:$0xf] %vm673_vm3, %v1161_v38  ;;  %vm1564_vm1 = vcmp.ge.f32.partialorder %v1532_v41, 0.0  ;;  %v1596_v46 = vmul.f32 0.2, %v1532_v41 }
 0x14a   : > { %vm2063_vm2 = vcmp.ge.f32.partialorder %v2031_v42, 0.0  ;;  %v2095_v47 = vmul.f32 0.2, %v2031_v42  ;;  %vm567_vm0 = vcmp.ge.f32.partialorder %v535_v45, 0.0  ;;  %v599_v48 = vmul.f32 0.2, %v535_v45 }
 0x14b   : > { %v1628_v49 = vsel %vm1564_vm1, %v1532_v41, %v1596_v46  ;;  %vm1066_vm4 = vcmp.ge.f32.partialorder %v1034_v43, 0.0  ;;  %v1098_v50 = vmul.f32 0.2, %v1034_v43 }
 0x14c   : > { %v1660_v51 = vpack.c.bf16 %v1628_v49, %v1628_v49  ;;  %v2127_v52 = vsel %vm2063_vm2, %v2031_v42, %v2095_v47  ;;  %v631_v54 = vsel %vm567_vm0, %v535_v45, %v599_v48  ;;  %v1454_v55 = vpop.f32.mrf.mxu2  ;;  %v452_v62 = vpop.f32.mrf.mxu0 }
 0x14d   : > { %v1953_v56 = vpop.f32.mrf.mxu3  ;;  %v2159_v57 = vpack.c.bf16 %v2127_v52, %v2127_v52  ;;  %v663_v58 = vpack.c.bf16 %v631_v54, %v631_v54  ;;  %v1130_v59 = vsel %vm1066_vm4, %v1034_v43, %v1098_v50  ;;  %v1501_v60 = vmul.f32 %v3380_v53, %v1454_v55  ;;  %v957_v63 = vpop.f32.mrf.mxu1 }
 0x14e   : > { %2660 = vst.msk [vmem:[%s3099_s27 + $0x154] sm:$0xf] %vm673_vm3, %v1660_v51  ;;  %v1162_v0 = vpack.c.bf16 %v1130_v59, %v1130_v59  ;;  %v2000_v1 = vmul.f32 %v3380_v53, %v1953_v56  ;;  %v501_v2 = vmul.f32 %v3380_v53, %v452_v62  ;;  %v1003_v3 = vmul.f32 %v3380_v53, %v957_v63 }
 0x14f   : > { %2816 = vst.msk [vmem:[%s3099_s27 + $0x1d4] sm:$0xf] %vm673_vm3, %v2159_v57  ;;  %v1533_v4 = vadd.f32 %v3393_v61, %v1501_v60 }
 0x150   : > { %696 = vst.msk [vmem:[%s3099_s27 + $0x58] sm:$0xf] %vm673_vm3, %v663_v58  ;;  %v2032_v5 = vadd.f32 %v3393_v61, %v2000_v1  ;;  %v536_v6 = vadd.f32 %v3393_v61, %v501_v2  ;;  %v1035_v7 = vadd.f32 %v3393_v61, %v1003_v3 }
 0x151   : > { %2505 = vst.msk [vmem:[%s3099_s27 + $0xd8] sm:$0xf] %vm673_vm3, %v1162_v0  ;;  %vm1565_vm5 = vcmp.ge.f32.partialorder %v1533_v4, 0.0  ;;  %v1597_v8 = vmul.f32 0.2, %v1533_v4 }
 0x152   : > { %vm2064_vm6 = vcmp.ge.f32.partialorder %v2032_v5, 0.0  ;;  %v2096_v9 = vmul.f32 0.2, %v2032_v5  ;;  %vm568_vm7 = vcmp.ge.f32.partialorder %v536_v6, 0.0  ;;  %v600_v10 = vmul.f32 0.2, %v536_v6 }
 0x153   : > { %v1629_v11 = vsel %vm1565_vm5, %v1533_v4, %v1597_v8  ;;  %vm1067_vm8 = vcmp.ge.f32.partialorder %v1035_v7, 0.0  ;;  %v1099_v12 = vmul.f32 0.2, %v1035_v7 }
 0x154   : > { %v1661_v13 = vpack.c.bf16 %v1629_v11, %v1629_v11  ;;  %v2128_v14 = vsel %vm2064_vm6, %v2032_v5, %v2096_v9  ;;  %v632_v15 = vsel %vm568_vm7, %v536_v6, %v600_v10  ;;  %v1456_v16 = vpop.f32.mrf.mxu2  ;;  %v455_v22 = vpop.f32.mrf.mxu0 }
 0x155   : > { %v1955_v17 = vpop.f32.mrf.mxu3  ;;  %v2160_v18 = vpack.c.bf16 %v2128_v14, %v2128_v14  ;;  %v664_v19 = vpack.c.bf16 %v632_v15, %v632_v15  ;;  %v1131_v20 = vsel %vm1067_vm8, %v1035_v7, %v1099_v12  ;;  %v1502_v21 = vmul.f32 %v3380_v53, %v1456_v16  ;;  %v960_v23 = vpop.f32.mrf.mxu1 }
 0x156   : > { %2661 = vst.msk [vmem:[%s3099_s27 + $0x158] sm:$0xf] %vm673_vm3, %v1661_v13  ;;  %v1163_v24 = vpack.c.bf16 %v1131_v20, %v1131_v20  ;;  %v2001_v25 = vmul.f32 %v3380_v53, %v1955_v17  ;;  %v502_v26 = vmul.f32 %v3380_v53, %v455_v22  ;;  %v1004_v27 = vmul.f32 %v3380_v53, %v960_v23 }
 0x157   : > { %2817 = vst.msk [vmem:[%s3099_s27 + $0x1d8] sm:$0xf] %vm673_vm3, %v2160_v18  ;;  %v1534_v28 = vadd.f32 %v3393_v61, %v1502_v21 }
 0x158   : > { %697 = vst.msk [vmem:[%s3099_s27 + $0x5c] sm:$0xf] %vm673_vm3, %v664_v19  ;;  %v2033_v29 = vadd.f32 %v3393_v61, %v2001_v25  ;;  %v537_v30 = vadd.f32 %v3393_v61, %v502_v26  ;;  %v1036_v31 = vadd.f32 %v3393_v61, %v1004_v27 }
 0x159   : > { %2506 = vst.msk [vmem:[%s3099_s27 + $0xdc] sm:$0xf] %vm673_vm3, %v1163_v24  ;;  %vm1566_vm9 = vcmp.ge.f32.partialorder %v1534_v28, 0.0  ;;  %v1598_v32 = vmul.f32 0.2, %v1534_v28 }
 0x15a   : > { %vm2065_vm10 = vcmp.ge.f32.partialorder %v2033_v29, 0.0  ;;  %v2097_v33 = vmul.f32 0.2, %v2033_v29  ;;  %vm569_vm11 = vcmp.ge.f32.partialorder %v537_v30, 0.0  ;;  %v601_v34 = vmul.f32 0.2, %v537_v30 }
 0x15b   : > { %v1630_v35 = vsel %vm1566_vm9, %v1534_v28, %v1598_v32  ;;  %vm1068_vm12 = vcmp.ge.f32.partialorder %v1036_v31, 0.0  ;;  %v1100_v36 = vmul.f32 0.2, %v1036_v31 }
 0x15c   : > { %v1662_v37 = vpack.c.bf16 %v1630_v35, %v1630_v35  ;;  %v2129_v38 = vsel %vm2065_vm10, %v2033_v29, %v2097_v33  ;;  %v633_v39 = vsel %vm569_vm11, %v537_v30, %v601_v34  ;;  %v1459_v44 = vpop.f32.mrf.mxu2  ;;  %v457_v46 = vpop.f32.mrf.mxu0 }
 0x15d   : > { %v1958_v40 = vpop.f32.mrf.mxu3  ;;  %v2161_v41 = vpack.c.bf16 %v2129_v38, %v2129_v38  ;;  %v665_v42 = vpack.c.bf16 %v633_v39, %v633_v39  ;;  %v1132_v45 = vsel %vm1068_vm12, %v1036_v31, %v1100_v36  ;;  %v1503_v43 = vmul.f32 %v3380_v53, %v1459_v44  ;;  %v962_v47 = vpop.f32.mrf.mxu1 }
 0x15e   : > { %2662 = vst.msk [vmem:[%s3099_s27 + $0x15c] sm:$0xf] %vm673_vm3, %v1662_v37  ;;  %v1164_v48 = vpack.c.bf16 %v1132_v45, %v1132_v45  ;;  %v2002_v49 = vmul.f32 %v3380_v53, %v1958_v40  ;;  %v503_v50 = vmul.f32 %v3380_v53, %v457_v46  ;;  %v1005_v51 = vmul.f32 %v3380_v53, %v962_v47 }
 0x15f   : > { %2818 = vst.msk [vmem:[%s3099_s27 + $0x1dc] sm:$0xf] %vm673_vm3, %v2161_v41  ;;  %v1535_v52 = vadd.f32 %v3393_v61, %v1503_v43 }
 0x160   : > { %698 = vst.msk [vmem:[%s3099_s27 + $0x60] sm:$0xf] %vm673_vm3, %v665_v42  ;;  %v2034_v54 = vadd.f32 %v3393_v61, %v2002_v49  ;;  %v538_v55 = vadd.f32 %v3393_v61, %v503_v50  ;;  %v1037_v56 = vadd.f32 %v3393_v61, %v1005_v51 }
 0x161   : > { %2507 = vst.msk [vmem:[%s3099_s27 + $0xe0] sm:$0xf] %vm673_vm3, %v1164_v48  ;;  %vm1567_vm13 = vcmp.ge.f32.partialorder %v1535_v52, 0.0  ;;  %v1599_v57 = vmul.f32 0.2, %v1535_v52 }
 0x162   : > { %vm2066_vm14 = vcmp.ge.f32.partialorder %v2034_v54, 0.0  ;;  %v2098_v58 = vmul.f32 0.2, %v2034_v54  ;;  %vm570_vm15 = vcmp.ge.f32.partialorder %v538_v55, 0.0  ;;  %v602_v59 = vmul.f32 0.2, %v538_v55 }
 0x163   : > { %v1631_v60 = vsel %vm1567_vm13, %v1535_v52, %v1599_v57  ;;  %vm1069_vm1 = vcmp.ge.f32.partialorder %v1037_v56, 0.0  ;;  %v1101_v62 = vmul.f32 0.2, %v1037_v56 }
 0x164   : > { %v1663_v63 = vpack.c.bf16 %v1631_v60, %v1631_v60  ;;  %v2130_v0 = vsel %vm2066_vm14, %v2034_v54, %v2098_v58  ;;  %v634_v1 = vsel %vm570_vm15, %v538_v55, %v602_v59  ;;  %v1461_v2 = vpop.f32.mrf.mxu2  ;;  %v460_v8 = vpop.f32.mrf.mxu0 }
 0x165   : > { %v1960_v3 = vpop.f32.mrf.mxu3  ;;  %v2162_v4 = vpack.c.bf16 %v2130_v0, %v2130_v0  ;;  %v666_v5 = vpack.c.bf16 %v634_v1, %v634_v1  ;;  %v1133_v6 = vsel %vm1069_vm1, %v1037_v56, %v1101_v62  ;;  %v1504_v7 = vmul.f32 %v3380_v53, %v1461_v2  ;;  %v965_v9 = vpop.f32.mrf.mxu1 }
 0x166   : > { %2663 = vst.msk [vmem:[%s3099_s27 + $0x160] sm:$0xf] %vm673_vm3, %v1663_v63  ;;  %v1165_v10 = vpack.c.bf16 %v1133_v6, %v1133_v6  ;;  %v2003_v11 = vmul.f32 %v3380_v53, %v1960_v3  ;;  %v504_v12 = vmul.f32 %v3380_v53, %v460_v8  ;;  %v1006_v13 = vmul.f32 %v3380_v53, %v965_v9 }
 0x167   : > { %2819 = vst.msk [vmem:[%s3099_s27 + $0x1e0] sm:$0xf] %vm673_vm3, %v2162_v4  ;;  %v1536_v14 = vadd.f32 %v3393_v61, %v1504_v7 }
 0x168   : > { %699 = vst.msk [vmem:[%s3099_s27 + $0x64] sm:$0xf] %vm673_vm3, %v666_v5  ;;  %v2035_v15 = vadd.f32 %v3393_v61, %v2003_v11  ;;  %v539_v16 = vadd.f32 %v3393_v61, %v504_v12  ;;  %v1038_v17 = vadd.f32 %v3393_v61, %v1006_v13 }
 0x169   : > { %2508 = vst.msk [vmem:[%s3099_s27 + $0xe4] sm:$0xf] %vm673_vm3, %v1165_v10  ;;  %vm1568_vm2 = vcmp.ge.f32.partialorder %v1536_v14, 0.0  ;;  %v1600_v18 = vmul.f32 0.2, %v1536_v14 }
 0x16a   : > { %vm2067_vm0 = vcmp.ge.f32.partialorder %v2035_v15, 0.0  ;;  %v2099_v19 = vmul.f32 0.2, %v2035_v15  ;;  %vm571_vm4 = vcmp.ge.f32.partialorder %v539_v16, 0.0  ;;  %v603_v20 = vmul.f32 0.2, %v539_v16 }
 0x16b   : > { %v1632_v21 = vsel %vm1568_vm2, %v1536_v14, %v1600_v18  ;;  %vm1070_vm5 = vcmp.ge.f32.partialorder %v1038_v17, 0.0  ;;  %v1102_v22 = vmul.f32 0.2, %v1038_v17 }
 0x16c   : > { %v1664_v23 = vpack.c.bf16 %v1632_v21, %v1632_v21  ;;  %v2131_v24 = vsel %vm2067_vm0, %v2035_v15, %v2099_v19  ;;  %v635_v25 = vsel %vm571_vm4, %v539_v16, %v603_v20  ;;  %v1464_v26 = vpop.f32.mrf.mxu2  ;;  %v462_v32 = vpop.f32.mrf.mxu0 }
 0x16d   : > { %v1963_v27 = vpop.f32.mrf.mxu3  ;;  %v2163_v28 = vpack.c.bf16 %v2131_v24, %v2131_v24  ;;  %v667_v29 = vpack.c.bf16 %v635_v25, %v635_v25  ;;  %v1134_v30 = vsel %vm1070_vm5, %v1038_v17, %v1102_v22  ;;  %v1505_v31 = vmul.f32 %v3380_v53, %v1464_v26  ;;  %v967_v33 = vpop.f32.mrf.mxu1 }
 0x16e   : > { %2664 = vst.msk [vmem:[%s3099_s27 + $0x164] sm:$0xf] %vm673_vm3, %v1664_v23  ;;  %v1166_v34 = vpack.c.bf16 %v1134_v30, %v1134_v30  ;;  %v2004_v35 = vmul.f32 %v3380_v53, %v1963_v27  ;;  %v505_v36 = vmul.f32 %v3380_v53, %v462_v32  ;;  %v1007_v37 = vmul.f32 %v3380_v53, %v967_v33 }
 0x16f   : > { %2820 = vst.msk [vmem:[%s3099_s27 + $0x1e4] sm:$0xf] %vm673_vm3, %v2163_v28  ;;  %v1537_v38 = vadd.f32 %v3393_v61, %v1505_v31 }
 0x170   : > { %700 = vst.msk [vmem:[%s3099_s27 + $0x68] sm:$0xf] %vm673_vm3, %v667_v29  ;;  %v2036_v39 = vadd.f32 %v3393_v61, %v2004_v35  ;;  %v540_v44 = vadd.f32 %v3393_v61, %v505_v36  ;;  %v1039_v40 = vadd.f32 %v3393_v61, %v1007_v37 }
 0x171   : > { %2509 = vst.msk [vmem:[%s3099_s27 + $0xe8] sm:$0xf] %vm673_vm3, %v1166_v34  ;;  %vm1569_vm6 = vcmp.ge.f32.partialorder %v1537_v38, 0.0  ;;  %v1601_v41 = vmul.f32 0.2, %v1537_v38 }
 0x172   : > { %vm2068_vm7 = vcmp.ge.f32.partialorder %v2036_v39, 0.0  ;;  %v2100_v42 = vmul.f32 0.2, %v2036_v39  ;;  %vm572_vm8 = vcmp.ge.f32.partialorder %v540_v44, 0.0  ;;  %v604_v45 = vmul.f32 0.2, %v540_v44 }
 0x173   : > { %v1633_v43 = vsel %vm1569_vm6, %v1537_v38, %v1601_v41  ;;  %vm1071_vm9 = vcmp.ge.f32.partialorder %v1039_v40, 0.0  ;;  %v1103_v46 = vmul.f32 0.2, %v1039_v40 }
 0x174   : > { %v1665_v47 = vpack.c.bf16 %v1633_v43, %v1633_v43  ;;  %v2132_v48 = vsel %vm2068_vm7, %v2036_v39, %v2100_v42  ;;  %v636_v49 = vsel %vm572_vm8, %v540_v44, %v604_v45  ;;  %v1466_v50 = vpop.f32.mrf.mxu2  ;;  %v465_v57 = vpop.f32.mrf.mxu0 }
 0x175   : > { %v1965_v51 = vpop.f32.mrf.mxu3  ;;  %v2164_v52 = vpack.c.bf16 %v2132_v48, %v2132_v48  ;;  %v668_v54 = vpack.c.bf16 %v636_v49, %v636_v49  ;;  %v1135_v55 = vsel %vm1071_vm9, %v1039_v40, %v1103_v46  ;;  %v1506_v56 = vmul.f32 %v3380_v53, %v1466_v50  ;;  %v970_v58 = vpop.f32.mrf.mxu1 }
 0x176   : > { %2665 = vst.msk [vmem:[%s3099_s27 + $0x168] sm:$0xf] %vm673_vm3, %v1665_v47  ;;  %v1167_v59 = vpack.c.bf16 %v1135_v55, %v1135_v55  ;;  %v2005_v60 = vmul.f32 %v3380_v53, %v1965_v51  ;;  %v506_v62 = vmul.f32 %v3380_v53, %v465_v57  ;;  %v1008_v63 = vmul.f32 %v3380_v53, %v970_v58 }
 0x177   : > { %2821 = vst.msk [vmem:[%s3099_s27 + $0x1e8] sm:$0xf] %vm673_vm3, %v2164_v52  ;;  %v1538_v0 = vadd.f32 %v3393_v61, %v1506_v56 }
 0x178   : > { %701 = vst.msk [vmem:[%s3099_s27 + $0x6c] sm:$0xf] %vm673_vm3, %v668_v54  ;;  %v2037_v1 = vadd.f32 %v3393_v61, %v2005_v60  ;;  %v541_v2 = vadd.f32 %v3393_v61, %v506_v62  ;;  %v1040_v3 = vadd.f32 %v3393_v61, %v1008_v63 }
 0x179   : > { %2510 = vst.msk [vmem:[%s3099_s27 + $0xec] sm:$0xf] %vm673_vm3, %v1167_v59  ;;  %vm1570_vm10 = vcmp.ge.f32.partialorder %v1538_v0, 0.0  ;;  %v1602_v4 = vmul.f32 0.2, %v1538_v0 }
 0x17a   : > { %vm2069_vm11 = vcmp.ge.f32.partialorder %v2037_v1, 0.0  ;;  %v2101_v5 = vmul.f32 0.2, %v2037_v1  ;;  %vm573_vm12 = vcmp.ge.f32.partialorder %v541_v2, 0.0  ;;  %v605_v6 = vmul.f32 0.2, %v541_v2 }
 0x17b   : > { %v1634_v7 = vsel %vm1570_vm10, %v1538_v0, %v1602_v4  ;;  %vm1072_vm13 = vcmp.ge.f32.partialorder %v1040_v3, 0.0  ;;  %v1104_v8 = vmul.f32 0.2, %v1040_v3 }
 0x17c   : > { %v1666_v9 = vpack.c.bf16 %v1634_v7, %v1634_v7  ;;  %v2133_v10 = vsel %vm2069_vm11, %v2037_v1, %v2101_v5  ;;  %v637_v11 = vsel %vm573_vm12, %v541_v2, %v605_v6  ;;  %v1469_v12 = vpop.f32.mrf.mxu2  ;;  %v467_v18 = vpop.f32.mrf.mxu0  ;;  %v2919_v1 = vld [vmem:[%s3674_s2] ss:$0 sm:$0xff] }
 0x17d   : > { %v1968_v13 = vpop.f32.mrf.mxu3  ;;  %v2165_v14 = vpack.c.bf16 %v2133_v10, %v2133_v10  ;;  %v669_v15 = vpack.c.bf16 %v637_v11, %v637_v11  ;;  %v1136_v16 = vsel %vm1072_vm13, %v1040_v3, %v1104_v8  ;;  %v1507_v17 = vmul.f32 %v3380_v53, %v1469_v12  ;;  %v972_v19 = vpop.f32.mrf.mxu1 }
 0x17e   : > { %2666 = vst.msk [vmem:[%s3099_s27 + $0x16c] sm:$0xf] %vm673_vm3, %v1666_v9  ;;  %v1168_v20 = vpack.c.bf16 %v1136_v16, %v1136_v16  ;;  %v2006_v21 = vmul.f32 %v3380_v53, %v1968_v13  ;;  %v507_v22 = vmul.f32 %v3380_v53, %v467_v18  ;;  %v1009_v23 = vmul.f32 %v3380_v53, %v972_v19  ;;  %v2920_v9 = vld [vmem:[%s3675_s3] ss:$0 sm:$0xff] }
 0x17f   : > { %2822 = vst.msk [vmem:[%s3099_s27 + $0x1ec] sm:$0xf] %vm673_vm3, %v2165_v14  ;;  %v1539_v24 = vadd.f32 %v3393_v61, %v1507_v17 }
 0x180   : > { %702 = vst.msk [vmem:[%s3099_s27 + $0x70] sm:$0xf] %vm673_vm3, %v669_v15  ;;  %v2038_v25 = vadd.f32 %v3393_v61, %v2006_v21  ;;  %v542_v26 = vadd.f32 %v3393_v61, %v507_v22  ;;  %v1041_v27 = vadd.f32 %v3393_v61, %v1009_v23 }
 0x181   : > { %2511 = vst.msk [vmem:[%s3099_s27 + $0xf0] sm:$0xf] %vm673_vm3, %v1168_v20  ;;  %vm1571_vm14 = vcmp.ge.f32.partialorder %v1539_v24, 0.0  ;;  %v1603_v28 = vmul.f32 0.2, %v1539_v24 }
 0x182   : > { %vm2070_vm15 = vcmp.ge.f32.partialorder %v2038_v25, 0.0  ;;  %v2102_v29 = vmul.f32 0.2, %v2038_v25  ;;  %vm574_vm1 = vcmp.ge.f32.partialorder %v542_v26, 0.0  ;;  %v606_v30 = vmul.f32 0.2, %v542_v26 }
 0x183   : > { %v1635_v31 = vsel %vm1571_vm14, %v1539_v24, %v1603_v28  ;;  %vm1073_vm2 = vcmp.ge.f32.partialorder %v1041_v27, 0.0  ;;  %v1105_v32 = vmul.f32 0.2, %v1041_v27 }
 0x184   : > { %v1667_v33 = vpack.c.bf16 %v1635_v31, %v1635_v31  ;;  %v2134_v34 = vsel %vm2070_vm15, %v2038_v25, %v2102_v29  ;;  %v638_v35 = vsel %vm574_vm1, %v542_v26, %v606_v30  ;;  %v1471_v36 = vpop.f32.mrf.mxu2  ;;  %v470_v41 = vpop.f32.mrf.mxu0 }
 0x185   : > { %v1970_v37 = vpop.f32.mrf.mxu3  ;;  %v2166_v38 = vpack.c.bf16 %v2134_v34, %v2134_v34  ;;  %v670_v39 = vpack.c.bf16 %v638_v35, %v638_v35  ;;  %v1137_v44 = vsel %vm1073_vm2, %v1041_v27, %v1105_v32  ;;  %v1508_v40 = vmul.f32 %v3380_v53, %v1471_v36  ;;  %v975_v42 = vpop.f32.mrf.mxu1 }
 0x186   : > { %2667 = vst.msk [vmem:[%s3099_s27 + $0x170] sm:$0xf] %vm673_vm3, %v1667_v33  ;;  %v1169_v45 = vpack.c.bf16 %v1137_v44, %v1137_v44  ;;  %v2007_v43 = vmul.f32 %v3380_v53, %v1970_v37  ;;  %v508_v46 = vmul.f32 %v3380_v53, %v470_v41  ;;  %v1010_v47 = vmul.f32 %v3380_v53, %v975_v42 }
 0x187   : > { %2823 = vst.msk [vmem:[%s3099_s27 + $0x1f0] sm:$0xf] %vm673_vm3, %v2166_v38  ;;  %v1540_v48 = vadd.f32 %v3393_v61, %v1508_v40 }
 0x188   : > { %703 = vst.msk [vmem:[%s3099_s27 + $0x74] sm:$0xf] %vm673_vm3, %v670_v39  ;;  %v2039_v49 = vadd.f32 %v3393_v61, %v2007_v43  ;;  %v543_v50 = vadd.f32 %v3393_v61, %v508_v46  ;;  %v1042_v51 = vadd.f32 %v3393_v61, %v1010_v47 }
 0x189   : > { %2512 = vst.msk [vmem:[%s3099_s27 + $0xf4] sm:$0xf] %vm673_vm3, %v1169_v45  ;;  %vm1572_vm0 = vcmp.ge.f32.partialorder %v1540_v48, 0.0  ;;  %v1604_v52 = vmul.f32 0.2, %v1540_v48 }
 0x18a   : > { %vm2071_vm4 = vcmp.ge.f32.partialorder %v2039_v49, 0.0  ;;  %v2103_v54 = vmul.f32 0.2, %v2039_v49  ;;  %vm575_vm5 = vcmp.ge.f32.partialorder %v543_v50, 0.0  ;;  %v607_v53 = vmul.f32 0.2, %v543_v50 }
 0x18b   : > { %v1636_v55 = vsel %vm1572_vm0, %v1540_v48, %v1604_v52  ;;  %vm1074_vm6 = vcmp.ge.f32.partialorder %v1042_v51, 0.0  ;;  %v1106_v56 = vmul.f32 0.2, %v1042_v51 }
 0x18c   : > { %v1668_v57 = vpack.c.bf16 %v1636_v55, %v1636_v55  ;;  %v2135_v58 = vsel %vm2071_vm4, %v2039_v49, %v2103_v54  ;;  %v639_v59 = vsel %vm575_vm5, %v543_v50, %v607_v53  ;;  %v1474_v60 = vpop.f32.mrf.mxu2  ;;  %v472_v3 = vpop.f32.mrf.mxu0 }
 0x18d   : > { %v1973_v62 = vpop.f32.mrf.mxu3  ;;  %v2167_v61 = vpack.c.bf16 %v2135_v58, %v2135_v58  ;;  %v671_v63 = vpack.c.bf16 %v639_v59, %v639_v59  ;;  %v1138_v0 = vsel %vm1074_vm6, %v1042_v51, %v1106_v56  ;;  %v1509_v2 = vmul.f32 %v2919_v1, %v1474_v60  ;;  %v977_v4 = vpop.f32.mrf.mxu1 }
 0x18e   : > { %2668 = vst.msk [vmem:[%s3099_s27 + $0x174] sm:$0xf] %vm673_vm3, %v1668_v57  ;;  %v1170_v5 = vpack.c.bf16 %v1138_v0, %v1138_v0  ;;  %v2008_v6 = vmul.f32 %v2919_v1, %v1973_v62  ;;  %v509_v7 = vmul.f32 %v2919_v1, %v472_v3  ;;  %v1011_v8 = vmul.f32 %v2919_v1, %v977_v4 }
 0x18f   : > { %2824 = vst.msk [vmem:[%s3099_s27 + $0x1f4] sm:$0xf] %vm673_vm3, %v2167_v61  ;;  %v1541_v10 = vadd.f32 %v2920_v9, %v1509_v2 }
 0x190   : > { %704 = vst.msk [vmem:[%s3099_s27 + $0x78] sm:$0xf] %vm673_vm3, %v671_v63  ;;  %v2040_v11 = vadd.f32 %v2920_v9, %v2008_v6  ;;  %v544_v12 = vadd.f32 %v2920_v9, %v509_v7  ;;  %v1043_v13 = vadd.f32 %v2920_v9, %v1011_v8 }
 0x191   : > { %2513 = vst.msk [vmem:[%s3099_s27 + $0xf8] sm:$0xf] %vm673_vm3, %v1170_v5  ;;  %vm1573_vm7 = vcmp.ge.f32.partialorder %v1541_v10, 0.0  ;;  %v1605_v14 = vmul.f32 0.2, %v1541_v10 }
 0x192   : > { %vm2072_vm8 = vcmp.ge.f32.partialorder %v2040_v11, 0.0  ;;  %v2104_v15 = vmul.f32 0.2, %v2040_v11  ;;  %vm576_vm9 = vcmp.ge.f32.partialorder %v544_v12, 0.0  ;;  %v608_v16 = vmul.f32 0.2, %v544_v12 }
 0x193   : > { %v1637_v17 = vsel %vm1573_vm7, %v1541_v10, %v1605_v14  ;;  %vm1075_vm10 = vcmp.ge.f32.partialorder %v1043_v13, 0.0  ;;  %v1107_v18 = vmul.f32 0.2, %v1043_v13 }
 0x194   : > { %v1669_v19 = vpack.c.bf16 %v1637_v17, %v1637_v17  ;;  %v2136_v20 = vsel %vm2072_vm8, %v2040_v11, %v2104_v15  ;;  %v640_v21 = vsel %vm576_vm9, %v544_v12, %v608_v16  ;;  %v1476_v22 = vpop.f32.mrf.mxu2 }
 0x195   : > { %v1975_v23 = vpop.f32.mrf.mxu3  ;;  %v2168_v24 = vpack.c.bf16 %v2136_v20, %v2136_v20  ;;  %v672_v25 = vpack.c.bf16 %v640_v21, %v640_v21  ;;  %v1139_v26 = vsel %vm1075_vm10, %v1043_v13, %v1107_v18  ;;  %v1510_v27 = vmul.f32 %v2919_v1, %v1476_v22 }
 0x196   : > { %2669 = vst.msk [vmem:[%s3099_s27 + $0x178] sm:$0xf] %vm673_vm3, %v1669_v19  ;;  %v1171_v28 = vpack.c.bf16 %v1139_v26, %v1139_v26  ;;  %v2009_v29 = vmul.f32 %v2919_v1, %v1975_v23 }
 0x197   : > { %2825 = vst.msk [vmem:[%s3099_s27 + $0x1f8] sm:$0xf] %vm673_vm3, %v2168_v24  ;;  %v1542_v30 = vadd.f32 %v2920_v9, %v1510_v27 }
 0x198   : > { %705 = vst.msk [vmem:[%s3099_s27 + $0x7c] sm:$0xf] %vm673_vm3, %v672_v25  ;;  %v2041_v31 = vadd.f32 %v2920_v9, %v2009_v29 }
 0x199   : > { %2514 = vst.msk [vmem:[%s3099_s27 + $0xfc] sm:$0xf] %vm673_vm3, %v1171_v28  ;;  %vm1574_vm11 = vcmp.ge.f32.partialorder %v1542_v30, 0.0  ;;  %v1606_v32 = vmul.f32 0.2, %v1542_v30 }
 0x19a   : > { %vm2073_vm12 = vcmp.ge.f32.partialorder %v2041_v31, 0.0  ;;  %v2105_v33 = vmul.f32 0.2, %v2041_v31 }
 0x19b   : > { %v1638_v34 = vsel %vm1574_vm11, %v1542_v30, %v1606_v32 }
 0x19c   : > { %v1670_v35 = vpack.c.bf16 %v1638_v34, %v1638_v34  ;;  %v2137_v36 = vsel %vm2073_vm12, %v2041_v31, %v2105_v33 }
 0x19d   : > { %v2169_v37 = vpack.c.bf16 %v2137_v36, %v2137_v36 }
 0x19e   : > { %2670 = vst.msk [vmem:[%s3099_s27 + $0x17c] sm:$0xf] %vm673_vm3, %v1670_v35 }
 0x19f   : > { %2826 = vst.msk [vmem:[%s3099_s27 + $0x1fc] sm:$0xf] %vm673_vm3, %v2169_v37 }
 0x1a0 PF: > { %s14_s15 = sadd.s32 1, %s2927_s15  }
 0x1a1   : > { %p11_p4 = scmp.ge.s32.totalorder %s14_s15, 4  }
 0x1a3   :  { %13 = sbr.rel (!%p11_p4) target bundleno = 1 (0x1), region = 72 }

// kernel: tpu_custom_call.1
= control target key start
LH: loop header
LB: loop body
LE: loop exit
PB: predicated region body
PF: predicated region fallthrough
CT: control target
= control target key end

     0   :  { %s2954_s15 = smov 0   ;;  %s3672_s0 = inlined_call_operand.vmem [shape: bf16[2,1024,48], index: 0, kind: input, shape index: {}]   ;;  %s3673_s1 = inlined_call_operand.vmem [shape: bf16[1,48,16], index: 1, kind: input, shape index: {}]   ;;  %s3674_s2 = inlined_call_operand.vmem [shape: f32[1,16], index: 2, kind: input, shape index: {}]   ;;  %s3675_s3 = inlined_call_operand.vmem [shape: f32[1,16], index: 3, kind: input, shape index: {}]   ;;  %s3676_s4 = inlined_call_operand.vmem [shape: bf16[2,1024,16], index: 4, kind: output, shape index: {}]  }
   0x1 LB: > { %s2258_s16 = sadd.s32 4294967295, %s2927_s15   ;;  %p2262_p0 = scmp.ge.s32.totalorder %s2927_s15, 1  ;;  %s2927_s15 = sphi %s2954_s15, %s14_s15  }
   0x2   : > { %p162_p1 = scmp.lt.s32.totalorder %s2927_s15, 3 }
   0x4   : > { %p163_p2 = pnand %p2262_p0, %p162_p1 }
   0x5   : > { %p188_p3 = scmp.lt.s32.totalorder (!%p163_p2), %s2258_s16, 1 }
   0x6   : > { %166 = sbr.rel (%p163_p2) target bundleno = 416 (0x1a0), region = 36 }
   0xb   : > { %v2849_v0 = vld [vmem:[%s3673_s1 + $0x10] sm:$0xff]  ;;  %v2848_v4 = vld [vmem:[%s3673_s1 + $0x8] sm:$0xff]  ;;  %s3678_s16 = smov (!%p188_p3, %s2258_s16), 1  ;;  %v2847_v8 = vld [vmem:[%s3673_s1] sm:$0xff]  ;;  %vm337_vm0 = vcmask 392192   ;;  %vm673_vm3 = vcmask 125952  }
   0xc   : > { %v2868_v1 = vld [vmem:[%s3673_s1 + $0x10] sm:$0xff]  ;;  %391 = vmatpush.bf16.msra.mxu0 %v2849_v0  ;;  %v2867_v5 = vld [vmem:[%s3673_s1 + $0x8] sm:$0xff]  ;;  %s2829_s7 = sshll.u32 %s3678_s16, 9  ;;  %v2866_v9 = vld [vmem:[%s3673_s1] sm:$0xff] }
   0xd   : > { %v2887_v2 = vld [vmem:[%s3673_s1 + $0x10] sm:$0xff]  ;;  %896 = vmatpush.bf16.msra.mxu1 %v2868_v1  ;;  %v2886_v6 = vld [vmem:[%s3673_s1 + $0x8] sm:$0xff]  ;;  %s3000_s14 = scalar_lea.vmem %s3672_s0, %s2829_s7  ;;  %v2885_v10 = vld [vmem:[%s3673_s1] sm:$0xff]  ;;  %s3099_s27 = scalar_lea.vmem %s3676_s4, %s2829_s7 }
   0xe   : > { %v2906_v3 = vld [vmem:[%s3673_s1 + $0x10] sm:$0xff]  ;;  %1395 = vmatpush.bf16.msra.mxu2 %v2887_v2  ;;  %v2905_v7 = vld [vmem:[%s3673_s1 + $0x8] sm:$0xff]  ;;  %v2904_v11 = vld [vmem:[%s3673_s1] sm:$0xff] }
   0xf   : > { %1894 = vmatpush.bf16.msra.mxu3 %v2906_v3  ;;  %v2831_v12 = vld [vmem:[%s3000_s14] sm:$0xff]  ;;  %v2832_v16 = vld [vmem:[%s3000_s14 + $0x8] sm:$0xff]  ;;  %v2833_v20 = vld [vmem:[%s3000_s14 + $0x10] sm:$0xff] }
  0x10   : > { %392 = vmatpush.bf16.msra.mxu0 %v2848_v4  ;;  %v2850_v13 = vld [vmem:[%s3000_s14 + $0x80] sm:$0xff]  ;;  %v2851_v17 = vld [vmem:[%s3000_s14 + $0x88] sm:$0xff]  ;;  %v2852_v21 = vld [vmem:[%s3000_s14 + $0x90] sm:$0xff] }
  0x11   : > { %897 = vmatpush.bf16.msra.mxu1 %v2867_v5  ;;  %v2869_v14 = vld [vmem:[%s3000_s14 + $0x100] sm:$0xff]  ;;  %v2870_v18 = vld [vmem:[%s3000_s14 + $0x108] sm:$0xff]  ;;  %v2871_v22 = vld [vmem:[%s3000_s14 + $0x110] sm:$0xff] }
  0x12   : > { %1396 = vmatpush.bf16.msra.mxu2 %v2886_v6  ;;  %v2888_v15 = vld [vmem:[%s3000_s14 + $0x180] sm:$0xff]  ;;  %v2889_v19 = vld [vmem:[%s3000_s14 + $0x188] sm:$0xff]  ;;  %v2890_v23 = vld [vmem:[%s3000_s14 + $0x190] sm:$0xff] }
  0x13   : > { %1895 = vmatpush.bf16.msra.mxu3 %v2905_v7  ;;  %v2834_v24 = vld [vmem:[%s3000_s14 + $0x18] sm:$0xff]  ;;  %v2835_v28 = vld [vmem:[%s3000_s14 + $0x20] sm:$0xff]  ;;  %v2836_v32 = vld [vmem:[%s3000_s14 + $0x28] sm:$0xff] }
  0x14   : > { %393 = vmatpush.bf16.msra.mxu0 %v2847_v8  ;;  %v2853_v25 = vld [vmem:[%s3000_s14 + $0x98] sm:$0xff]  ;;  %v2854_v29 = vld [vmem:[%s3000_s14 + $0xa0] sm:$0xff]  ;;  %v2855_v33 = vld [vmem:[%s3000_s14 + $0xa8] sm:$0xff] }
  0x15   : > { %898 = vmatpush.bf16.msra.mxu1 %v2866_v9  ;;  %v2872_v26 = vld [vmem:[%s3000_s14 + $0x118] sm:$0xff]  ;;  %v2873_v30 = vld [vmem:[%s3000_s14 + $0x120] sm:$0xff]  ;;  %v2874_v34 = vld [vmem:[%s3000_s14 + $0x128] sm:$0xff] }
  0x16   : > { %1397 = vmatpush.bf16.msra.mxu2 %v2885_v10  ;;  %v2891_v27 = vld [vmem:[%s3000_s14 + $0x198] sm:$0xff]  ;;  %v2892_v31 = vld [vmem:[%s3000_s14 + $0x1a0] sm:$0xff]  ;;  %v2893_v35 = vld [vmem:[%s3000_s14 + $0x1a8] sm:$0xff] }
  0x17   : > { %1896 = vmatpush.bf16.msra.mxu3 %v2904_v11  ;;  %2343 = vmatmul.msk.bf16.vlgmr.msra.gmra.mxu0 %vm337_vm0, %v2831_v12  ;;  %v2837_v36 = vld [vmem:[%s3000_s14 + $0x30] sm:$0xff]  ;;  %v2838_v40 = vld [vmem:[%s3000_s14 + $0x38] sm:$0xff]  ;;  %v3075_v44 = vld [vmem:[%s3674_s2] ss:$0 sm:$0xff] }
  0x18   : > { %2467 = vmatmul.msk.bf16.vlgmr.msra.gmra.mxu1 %vm337_vm0, %v2850_v13  ;;  %v2856_v37 = vld [vmem:[%s3000_s14 + $0xb0] sm:$0xff]  ;;  %v2857_v41 = vld [vmem:[%s3000_s14 + $0xb8] sm:$0xff]  ;;  %v3080_v45 = vld [vmem:[%s3675_s3] ss:$0 sm:$0xff] }
  0x19   : > { %2623 = vmatmul.msk.bf16.vlgmr.msra.gmra.mxu2 %vm337_vm0, %v2869_v14  ;;  %v2875_v38 = vld [vmem:[%s3000_s14 + $0x130] sm:$0xff]  ;;  %v2876_v42 = vld [vmem:[%s3000_s14 + $0x138] sm:$0xff]  ;;  %v2839_v46 = vld [vmem:[%s3000_s14 + $0x40] sm:$0xff] }
  0x1a   : > { %2779 = vmatmul.msk.bf16.vlgmr.msra.gmra.mxu3 %vm337_vm0, %v2888_v15  ;;  %v2894_v39 = vld [vmem:[%s3000_s14 + $0x1b0] sm:$0xff]  ;;  %v2895_v43 = vld [vmem:[%s3000_s14 + $0x1b8] sm:$0xff]  ;;  %v2858_v47 = vld [vmem:[%s3000_s14 + $0xc0] sm:$0xff] }
  0x1b   : > { %v2877_v50 = vld [vmem:[%s3000_s14 + $0x140] sm:$0xff] }
  0x1c   : > { %v2896_v51 = vld [vmem:[%s3000_s14 + $0x1c0] sm:$0xff] }
  0x27   : > { %2344 = vmatmul.msk.bf16.gmra.mxu0 %vm337_vm0, %v2832_v16 }
  0x28   : > { %2468 = vmatmul.msk.bf16.gmra.mxu1 %vm337_vm0, %v2851_v17 }
  0x29   : > { %2624 = vmatmul.msk.bf16.gmra.mxu2 %vm337_vm0, %v2870_v18 }
  0x2a   : > { %2780 = vmatmul.msk.bf16.gmra.mxu3 %vm337_vm0, %v2889_v19 }
  0x37   : > { %2345 = vmatmul.msk.bf16.gmra.mxu0 %vm337_vm0, %v2833_v20 }
  0x38   : > { %2469 = vmatmul.msk.bf16.gmra.mxu1 %vm337_vm0, %v2852_v21 }
  0x39   : > { %2625 = vmatmul.msk.bf16.gmra.mxu2 %vm337_vm0, %v2871_v22  ;;  %v2840_v22 = vld [vmem:[%s3000_s14 + $0x48] sm:$0xff] }
  0x3a   : > { %2781 = vmatmul.msk.bf16.gmra.mxu3 %vm337_vm0, %v2890_v23  ;;  %v2859_v23 = vld [vmem:[%s3000_s14 + $0xc8] sm:$0xff] }
  0x47   : > { %2346 = vmatmul.msk.bf16.gmra.mxu0 %vm337_vm0, %v2834_v24 }
  0x48   : > { %2470 = vmatmul.msk.bf16.gmra.mxu1 %vm337_vm0, %v2853_v25 }
  0x49   : > { %2626 = vmatmul.msk.bf16.gmra.mxu2 %vm337_vm0, %v2872_v26 }
  0x4a   : > { %2782 = vmatmul.msk.bf16.gmra.mxu3 %vm337_vm0, %v2891_v27 }
  0x57   : > { %2347 = vmatmul.msk.bf16.gmra.mxu0 %vm337_vm0, %v2835_v28 }
  0x58   : > { %2471 = vmatmul.msk.bf16.gmra.mxu1 %vm337_vm0, %v2854_v29 }
  0x59   : > { %2627 = vmatmul.msk.bf16.gmra.mxu2 %vm337_vm0, %v2873_v30  ;;  %v2878_v30 = vld [vmem:[%s3000_s14 + $0x148] sm:$0xff] }
  0x5a   : > { %2783 = vmatmul.msk.bf16.gmra.mxu3 %vm337_vm0, %v2892_v31  ;;  %v2897_v31 = vld [vmem:[%s3000_s14 + $0x1c8] sm:$0xff] }
  0x67   : > { %2348 = vmatmul.msk.bf16.gmra.mxu0 %vm337_vm0, %v2836_v32 }
  0x68   : > { %2472 = vmatmul.msk.bf16.gmra.mxu1 %vm337_vm0, %v2855_v33 }
  0x69   : > { %2628 = vmatmul.msk.bf16.gmra.mxu2 %vm337_vm0, %v2874_v34 }
  0x6a   : > { %2784 = vmatmul.msk.bf16.gmra.mxu3 %vm337_vm0, %v2893_v35 }
  0x77   : > { %2349 = vmatmul.msk.bf16.gmra.mxu0 %vm337_vm0, %v2837_v36 }
  0x78   : > { %2473 = vmatmul.msk.bf16.gmra.mxu1 %vm337_vm0, %v2856_v37 }
  0x79   : > { %2629 = vmatmul.msk.bf16.gmra.mxu2 %vm337_vm0, %v2875_v38 }
  0x7a   : > { %2785 = vmatmul.msk.bf16.gmra.mxu3 %vm337_vm0, %v2894_v39 }
  0x87   : > { %2350 = vmatmul.msk.bf16.gmra.mxu0 %vm337_vm0, %v2838_v40 }
  0x88   : > { %2474 = vmatmul.msk.bf16.gmra.mxu1 %vm337_vm0, %v2857_v41 }
  0x89   : > { %2630 = vmatmul.msk.bf16.gmra.mxu2 %vm337_vm0, %v2876_v42 }
  0x8a   : > { %2786 = vmatmul.msk.bf16.gmra.mxu3 %vm337_vm0, %v2895_v43 }
  0x94   : > { %v395_v48 = vpop.f32.mrf.mxu0 }
  0x95   : > { %v900_v49 = vpop.f32.mrf.mxu1  ;;  %v478_v52 = vmul.f32 %v3075_v44, %v395_v48 }
  0x96   : > { %v980_v53 = vmul.f32 %v3075_v44, %v900_v49 }
  0x97   : > { %v513_v54 = vadd.f32 %v3080_v45, %v478_v52  ;;  %2351 = vmatmul.msk.bf16.gmra.mxu0 %vm337_vm0, %v2839_v46 }
  0x98   : > { %v1012_v55 = vadd.f32 %v3080_v45, %v980_v53  ;;  %2475 = vmatmul.msk.bf16.gmra.mxu1 %vm337_vm0, %v2858_v47 }
  0x99   : > { %2631 = vmatmul.msk.bf16.gmra.mxu2 %vm337_vm0, %v2877_v50  ;;  %vm545_vm1 = vcmp.ge.f32.partialorder %v513_v54, 0.0  ;;  %v577_v56 = vmul.f32 0.2, %v513_v54 }
  0x9a   : > { %2787 = vmatmul.msk.bf16.gmra.mxu3 %vm337_vm0, %v2896_v51  ;;  %vm1044_vm2 = vcmp.ge.f32.partialorder %v1012_v55, 0.0  ;;  %v1076_v57 = vmul.f32 0.2, %v1012_v55 }
  0x9b   : > { %v609_v58 = vsel %vm545_vm1, %v513_v54, %v577_v56 }
  0x9c   : > { %v1108_v59 = vsel %vm1044_vm2, %v1012_v55, %v1076_v57  ;;  %v1399_v60 = vpop.f32.mrf.mxu2  ;;  %v641_v62 = vpack.c.bf16 %v609_v58, %v609_v58  ;;  %v397_v2 = vpop.f32.mrf.mxu0 }
  0x9d   : > { %v1898_v61 = vpop.f32.mrf.mxu3  ;;  %v1140_v63 = vpack.c.bf16 %v1108_v59, %v1108_v59  ;;  %v1479_v0 = vmul.f32 %v3075_v44, %v1399_v60  ;;  %v902_v3 = vpop.f32.mrf.mxu1  ;;  %v479_v4 = vmul.f32 %v3075_v44, %v397_v2 }
  0x9e   : > { %v1978_v1 = vmul.f32 %v3075_v44, %v1898_v61  ;;  %v981_v5 = vmul.f32 %v3075_v44, %v902_v3  ;;  %674 = vst.msk [vmem:[%s3099_s27] sm:$0xf] %vm673_vm3, %v641_v62 }
  0x9f   : > { %v1511_v6 = vadd.f32 %v3080_v45, %v1479_v0  ;;  %2483 = vst.msk [vmem:[%s3099_s27 + $0x80] sm:$0xf] %vm673_vm3, %v1140_v63  ;;  %v514_v8 = vadd.f32 %v3080_v45, %v479_v4 }
  0xa0   : > { %v2010_v7 = vadd.f32 %v3080_v45, %v1978_v1  ;;  %v1013_v9 = vadd.f32 %v3080_v45, %v981_v5 }
  0xa1   : > { %vm1543_vm4 = vcmp.ge.f32.partialorder %v1511_v6, 0.0  ;;  %v1575_v10 = vmul.f32 0.2, %v1511_v6  ;;  %vm546_vm6 = vcmp.ge.f32.partialorder %v514_v8, 0.0  ;;  %v578_v12 = vmul.f32 0.2, %v514_v8 }
  0xa2   : > { %vm2042_vm5 = vcmp.ge.f32.partialorder %v2010_v7, 0.0  ;;  %v2074_v11 = vmul.f32 0.2, %v2010_v7  ;;  %vm1045_vm7 = vcmp.ge.f32.partialorder %v1013_v9, 0.0  ;;  %v1077_v13 = vmul.f32 0.2, %v1013_v9 }
  0xa3   : > { %v1607_v14 = vsel %vm1543_vm4, %v1511_v6, %v1575_v10  ;;  %v610_v18 = vsel %vm546_vm6, %v514_v8, %v578_v12  ;;  %v2841_v10 = vld [vmem:[%s3000_s14 + $0x50] sm:$0xff] }
  0xa4   : > { %v2106_v15 = vsel %vm2042_vm5, %v2010_v7, %v2074_v11  ;;  %v1639_v16 = vpack.c.bf16 %v1607_v14, %v1607_v14  ;;  %v1109_v19 = vsel %vm1045_vm7, %v1013_v9, %v1077_v13  ;;  %v1401_v20 = vpop.f32.mrf.mxu2  ;;  %v642_v24 = vpack.c.bf16 %v610_v18, %v610_v18  ;;  %v400_v28 = vpop.f32.mrf.mxu0  ;;  %v2860_v11 = vld [vmem:[%s3000_s14 + $0xd0] sm:$0xff] }
  0xa5   : > { %v2138_v17 = vpack.c.bf16 %v2106_v15, %v2106_v15  ;;  %v1900_v21 = vpop.f32.mrf.mxu3  ;;  %v1141_v25 = vpack.c.bf16 %v1109_v19, %v1109_v19  ;;  %v1480_v26 = vmul.f32 %v3075_v44, %v1401_v20  ;;  %v905_v29 = vpop.f32.mrf.mxu1  ;;  %v480_v32 = vmul.f32 %v3075_v44, %v400_v28  ;;  %v2879_v18 = vld [vmem:[%s3000_s14 + $0x150] sm:$0xff] }
  0xa6   : > { %v1979_v27 = vmul.f32 %v3075_v44, %v1900_v21  ;;  %2639 = vst.msk [vmem:[%s3099_s27 + $0x100] sm:$0xf] %vm673_vm3, %v1639_v16  ;;  %v982_v33 = vmul.f32 %v3075_v44, %v905_v29  ;;  %v2898_v19 = vld [vmem:[%s3000_s14 + $0x1d0] sm:$0xff] }
  0xa7   : > { %2795 = vst.msk [vmem:[%s3099_s27 + $0x180] sm:$0xf] %vm673_vm3, %v2138_v17  ;;  %v1512_v34 = vadd.f32 %v3080_v45, %v1480_v26  ;;  %v515_v36 = vadd.f32 %v3080_v45, %v480_v32  ;;  %2352 = vmatmul.msk.bf16.gmra.mxu0 %vm337_vm0, %v2840_v22 }
  0xa8   : > { %v2011_v35 = vadd.f32 %v3080_v45, %v1979_v27  ;;  %675 = vst.msk [vmem:[%s3099_s27 + $0x4] sm:$0xf] %vm673_vm3, %v642_v24  ;;  %v1014_v37 = vadd.f32 %v3080_v45, %v982_v33  ;;  %2476 = vmatmul.msk.bf16.gmra.mxu1 %vm337_vm0, %v2859_v23 }
  0xa9   : > { %2484 = vst.msk [vmem:[%s3099_s27 + $0x84] sm:$0xf] %vm673_vm3, %v1141_v25  ;;  %vm1544_vm8 = vcmp.ge.f32.partialorder %v1512_v34, 0.0  ;;  %v1576_v38 = vmul.f32 0.2, %v1512_v34  ;;  %2632 = vmatmul.msk.bf16.gmra.mxu2 %vm337_vm0, %v2878_v30  ;;  %vm547_vm10 = vcmp.ge.f32.partialorder %v515_v36, 0.0 }
  0xaa   : > { %vm2043_vm9 = vcmp.ge.f32.partialorder %v2011_v35, 0.0  ;;  %2788 = vmatmul.msk.bf16.gmra.mxu3 %vm337_vm0, %v2897_v31  ;;  %v2075_v39 = vmul.f32 0.2, %v2011_v35  ;;  %v579_v40 = vmul.f32 0.2, %v515_v36  ;;  %vm1046_vm11 = vcmp.ge.f32.partialorder %v1014_v37, 0.0 }
  0xab   : > { %v1608_v41 = vsel %vm1544_vm8, %v1512_v34, %v1576_v38  ;;  %v1078_v42 = vmul.f32 0.2, %v1014_v37 }
  0xac   : > { %v1640_v43 = vpack.c.bf16 %v1608_v41, %v1608_v41  ;;  %v2107_v46 = vsel %vm2043_vm9, %v2011_v35, %v2075_v39  ;;  %v611_v47 = vsel %vm547_vm10, %v515_v36, %v579_v40  ;;  %v1404_v48 = vpop.f32.mrf.mxu2  ;;  %v402_v54 = vpop.f32.mrf.mxu0 }
  0xad   : > { %v1903_v49 = vpop.f32.mrf.mxu3  ;;  %v2139_v50 = vpack.c.bf16 %v2107_v46, %v2107_v46  ;;  %v643_v51 = vpack.c.bf16 %v611_v47, %v611_v47  ;;  %v1110_v52 = vsel %vm1046_vm11, %v1014_v37, %v1078_v42  ;;  %v1481_v53 = vmul.f32 %v3075_v44, %v1404_v48  ;;  %v907_v55 = vpop.f32.mrf.mxu1 }
  0xae   : > { %2640 = vst.msk [vmem:[%s3099_s27 + $0x104] sm:$0xf] %vm673_vm3, %v1640_v43  ;;  %v1142_v56 = vpack.c.bf16 %v1110_v52, %v1110_v52  ;;  %v1980_v57 = vmul.f32 %v3075_v44, %v1903_v49  ;;  %v481_v58 = vmul.f32 %v3075_v44, %v402_v54  ;;  %v983_v59 = vmul.f32 %v3075_v44, %v907_v55 }
  0xaf   : > { %2796 = vst.msk [vmem:[%s3099_s27 + $0x184] sm:$0xf] %vm673_vm3, %v2139_v50  ;;  %v1513_v60 = vadd.f32 %v3080_v45, %v1481_v53 }
  0xb0   : > { %676 = vst.msk [vmem:[%s3099_s27 + $0x8] sm:$0xf] %vm673_vm3, %v643_v51  ;;  %v2012_v61 = vadd.f32 %v3080_v45, %v1980_v57  ;;  %v516_v62 = vadd.f32 %v3080_v45, %v481_v58  ;;  %v1015_v63 = vadd.f32 %v3080_v45, %v983_v59 }
  0xb1   : > { %2485 = vst.msk [vmem:[%s3099_s27 + $0x88] sm:$0xf] %vm673_vm3, %v1142_v56  ;;  %vm1545_vm12 = vcmp.ge.f32.partialorder %v1513_v60, 0.0  ;;  %v1577_v0 = vmul.f32 0.2, %v1513_v60 }
  0xb2   : > { %vm2044_vm13 = vcmp.ge.f32.partialorder %v2012_v61, 0.0  ;;  %v2076_v1 = vmul.f32 0.2, %v2012_v61  ;;  %vm548_vm14 = vcmp.ge.f32.partialorder %v516_v62, 0.0  ;;  %v580_v2 = vmul.f32 0.2, %v516_v62 }
  0xb3   : > { %v1609_v3 = vsel %vm1545_vm12, %v1513_v60, %v1577_v0  ;;  %vm1047_vm15 = vcmp.ge.f32.partialorder %v1015_v63, 0.0  ;;  %v1079_v4 = vmul.f32 0.2, %v1015_v63  ;;  %v2842_v0 = vld [vmem:[%s3000_s14 + $0x58] sm:$0xff] }
  0xb4   : > { %v1641_v5 = vpack.c.bf16 %v1609_v3, %v1609_v3  ;;  %v2108_v6 = vsel %vm2044_vm13, %v2012_v61, %v2076_v1  ;;  %v612_v7 = vsel %vm548_vm14, %v516_v62, %v580_v2  ;;  %v1406_v8 = vpop.f32.mrf.mxu2  ;;  %v405_v16 = vpop.f32.mrf.mxu0  ;;  %v2861_v1 = vld [vmem:[%s3000_s14 + $0xd8] sm:$0xff] }
  0xb5   : > { %v1905_v9 = vpop.f32.mrf.mxu3  ;;  %v2140_v12 = vpack.c.bf16 %v2108_v6, %v2108_v6  ;;  %v644_v13 = vpack.c.bf16 %v612_v7, %v612_v7  ;;  %v1111_v14 = vsel %vm1047_vm15, %v1015_v63, %v1079_v4  ;;  %v1482_v15 = vmul.f32 %v3075_v44, %v1406_v8  ;;  %v910_v17 = vpop.f32.mrf.mxu1  ;;  %v2880_v8 = vld [vmem:[%s3000_s14 + $0x158] sm:$0xff] }
  0xb6   : > { %2641 = vst.msk [vmem:[%s3099_s27 + $0x108] sm:$0xf] %vm673_vm3, %v1641_v5  ;;  %v1143_v20 = vpack.c.bf16 %v1111_v14, %v1111_v14  ;;  %v1981_v21 = vmul.f32 %v3075_v44, %v1905_v9  ;;  %v482_v22 = vmul.f32 %v3075_v44, %v405_v16  ;;  %v984_v23 = vmul.f32 %v3075_v44, %v910_v17  ;;  %v2899_v9 = vld [vmem:[%s3000_s14 + $0x1d8] sm:$0xff] }
  0xb7   : > { %2797 = vst.msk [vmem:[%s3099_s27 + $0x188] sm:$0xf] %vm673_vm3, %v2140_v12  ;;  %v1514_v24 = vadd.f32 %v3080_v45, %v1482_v15  ;;  %2353 = vmatmul.msk.bf16.gmra.mxu0 %vm337_vm0, %v2841_v10 }
  0xb8   : > { %677 = vst.msk [vmem:[%s3099_s27 + $0xc] sm:$0xf] %vm673_vm3, %v644_v13  ;;  %v2013_v25 = vadd.f32 %v3080_v45, %v1981_v21  ;;  %v517_v26 = vadd.f32 %v3080_v45, %v482_v22  ;;  %v1016_v27 = vadd.f32 %v3080_v45, %v984_v23  ;;  %2477 = vmatmul.msk.bf16.gmra.mxu1 %vm337_vm0, %v2860_v11 }
  0xb9   : > { %2486 = vst.msk [vmem:[%s3099_s27 + $0x8c] sm:$0xf] %vm673_vm3, %v1143_v20  ;;  %vm1546_vm1 = vcmp.ge.f32.partialorder %v1514_v24, 0.0  ;;  %v1578_v28 = vmul.f32 0.2, %v1514_v24  ;;  %2633 = vmatmul.msk.bf16.gmra.mxu2 %vm337_vm0, %v2879_v18 }
  0xba   : > { %2789 = vmatmul.msk.bf16.gmra.mxu3 %vm337_vm0, %v2898_v19  ;;  %vm2045_vm2 = vcmp.ge.f32.partialorder %v2013_v25, 0.0  ;;  %v2077_v29 = vmul.f32 0.2, %v2013_v25  ;;  %vm549_vm4 = vcmp.ge.f32.partialorder %v517_v26, 0.0  ;;  %v581_v30 = vmul.f32 0.2, %v517_v26 }
  0xbb   : > { %v1610_v31 = vsel %vm1546_vm1, %v1514_v24, %v1578_v28  ;;  %vm1048_vm5 = vcmp.ge.f32.partialorder %v1016_v27, 0.0  ;;  %v1080_v32 = vmul.f32 0.2, %v1016_v27 }
  0xbc   : > { %v1642_v33 = vpack.c.bf16 %v1610_v31, %v1610_v31  ;;  %v2109_v34 = vsel %vm2045_vm2, %v2013_v25, %v2077_v29  ;;  %v613_v35 = vsel %vm549_vm4, %v517_v26, %v581_v30  ;;  %v1409_v36 = vpop.f32.mrf.mxu2  ;;  %v407_v42 = vpop.f32.mrf.mxu0 }
  0xbd   : > { %v1908_v37 = vpop.f32.mrf.mxu3  ;;  %v2141_v38 = vpack.c.bf16 %v2109_v34, %v2109_v34  ;;  %v645_v39 = vpack.c.bf16 %v613_v35, %v613_v35  ;;  %v1112_v40 = vsel %vm1048_vm5, %v1016_v27, %v1080_v32  ;;  %v1483_v41 = vmul.f32 %v3075_v44, %v1409_v36  ;;  %v912_v43 = vpop.f32.mrf.mxu1 }
  0xbe   : > { %2642 = vst.msk [vmem:[%s3099_s27 + $0x10c] sm:$0xf] %vm673_vm3, %v1642_v33  ;;  %v1144_v46 = vpack.c.bf16 %v1112_v40, %v1112_v40  ;;  %v1982_v47 = vmul.f32 %v3075_v44, %v1908_v37  ;;  %v483_v48 = vmul.f32 %v3075_v44, %v407_v42  ;;  %v985_v49 = vmul.f32 %v3075_v44, %v912_v43 }
  0xbf   : > { %2798 = vst.msk [vmem:[%s3099_s27 + $0x18c] sm:$0xf] %vm673_vm3, %v2141_v38  ;;  %v1515_v50 = vadd.f32 %v3080_v45, %v1483_v41 }
  0xc0   : > { %678 = vst.msk [vmem:[%s3099_s27 + $0x10] sm:$0xf] %vm673_vm3, %v645_v39  ;;  %v2014_v51 = vadd.f32 %v3080_v45, %v1982_v47  ;;  %v518_v52 = vadd.f32 %v3080_v45, %v483_v48  ;;  %v1017_v53 = vadd.f32 %v3080_v45, %v985_v49 }
  0xc1   : > { %2487 = vst.msk [vmem:[%s3099_s27 + $0x90] sm:$0xf] %vm673_vm3, %v1144_v46  ;;  %vm1547_vm6 = vcmp.ge.f32.partialorder %v1515_v50, 0.0  ;;  %v1579_v54 = vmul.f32 0.2, %v1515_v50 }
  0xc2   : > { %vm2046_vm7 = vcmp.ge.f32.partialorder %v2014_v51, 0.0  ;;  %v2078_v55 = vmul.f32 0.2, %v2014_v51  ;;  %vm550_vm8 = vcmp.ge.f32.partialorder %v518_v52, 0.0  ;;  %v582_v56 = vmul.f32 0.2, %v518_v52 }
  0xc3   : > { %v1611_v57 = vsel %vm1547_vm6, %v1515_v50, %v1579_v54  ;;  %vm1049_vm9 = vcmp.ge.f32.partialorder %v1017_v53, 0.0  ;;  %v1081_v58 = vmul.f32 0.2, %v1017_v53  ;;  %v2843_v54 = vld [vmem:[%s3000_s14 + $0x60] sm:$0xff] }
  0xc4   : > { %v1643_v59 = vpack.c.bf16 %v1611_v57, %v1611_v57  ;;  %v2110_v60 = vsel %vm2046_vm7, %v2014_v51, %v2078_v55  ;;  %v614_v61 = vsel %vm550_vm8, %v518_v52, %v582_v56  ;;  %v1411_v62 = vpop.f32.mrf.mxu2  ;;  %v410_v6 = vpop.f32.mrf.mxu0  ;;  %v2862_v55 = vld [vmem:[%s3000_s14 + $0xe0] sm:$0xff] }
  0xc5   : > { %v1910_v63 = vpop.f32.mrf.mxu3  ;;  %v2142_v2 = vpack.c.bf16 %v2110_v60, %v2110_v60  ;;  %v646_v3 = vpack.c.bf16 %v614_v61, %v614_v61  ;;  %v1113_v4 = vsel %vm1049_vm9, %v1017_v53, %v1081_v58  ;;  %v1484_v5 = vmul.f32 %v3075_v44, %v1411_v62  ;;  %v915_v7 = vpop.f32.mrf.mxu1  ;;  %v2881_v62 = vld [vmem:[%s3000_s14 + $0x160] sm:$0xff] }
  0xc6   : > { %2643 = vst.msk [vmem:[%s3099_s27 + $0x110] sm:$0xf] %vm673_vm3, %v1643_v59  ;;  %v1145_v10 = vpack.c.bf16 %v1113_v4, %v1113_v4  ;;  %v1983_v11 = vmul.f32 %v3075_v44, %v1910_v63  ;;  %v484_v12 = vmul.f32 %v3075_v44, %v410_v6  ;;  %v986_v13 = vmul.f32 %v3075_v44, %v915_v7  ;;  %v2900_v63 = vld [vmem:[%s3000_s14 + $0x1e0] sm:$0xff] }
  0xc7   : > { %2799 = vst.msk [vmem:[%s3099_s27 + $0x190] sm:$0xf] %vm673_vm3, %v2142_v2  ;;  %v1516_v14 = vadd.f32 %v3080_v45, %v1484_v5  ;;  %2354 = vmatmul.msk.bf16.gmra.mxu0 %vm337_vm0, %v2842_v0 }
  0xc8   : > { %679 = vst.msk [vmem:[%s3099_s27 + $0x14] sm:$0xf] %vm673_vm3, %v646_v3  ;;  %v2015_v15 = vadd.f32 %v3080_v45, %v1983_v11  ;;  %v519_v16 = vadd.f32 %v3080_v45, %v484_v12  ;;  %v1018_v17 = vadd.f32 %v3080_v45, %v986_v13  ;;  %2478 = vmatmul.msk.bf16.gmra.mxu1 %vm337_vm0, %v2861_v1 }
  0xc9   : > { %2488 = vst.msk [vmem:[%s3099_s27 + $0x94] sm:$0xf] %vm673_vm3, %v1145_v10  ;;  %vm1548_vm10 = vcmp.ge.f32.partialorder %v1516_v14, 0.0  ;;  %v1580_v18 = vmul.f32 0.2, %v1516_v14  ;;  %2634 = vmatmul.msk.bf16.gmra.mxu2 %vm337_vm0, %v2880_v8 }
  0xca   : > { %2790 = vmatmul.msk.bf16.gmra.mxu3 %vm337_vm0, %v2899_v9  ;;  %vm2047_vm11 = vcmp.ge.f32.partialorder %v2015_v15, 0.0  ;;  %v2079_v19 = vmul.f32 0.2, %v2015_v15  ;;  %vm551_vm12 = vcmp.ge.f32.partialorder %v519_v16, 0.0  ;;  %v583_v20 = vmul.f32 0.2, %v519_v16 }
  0xcb   : > { %v1612_v21 = vsel %vm1548_vm10, %v1516_v14, %v1580_v18  ;;  %vm1050_vm13 = vcmp.ge.f32.partialorder %v1018_v17, 0.0  ;;  %v1082_v22 = vmul.f32 0.2, %v1018_v17 }
  0xcc   : > { %v1644_v23 = vpack.c.bf16 %v1612_v21, %v1612_v21  ;;  %v2111_v24 = vsel %vm2047_vm11, %v2015_v15, %v2079_v19  ;;  %v615_v25 = vsel %vm551_vm12, %v519_v16, %v583_v20  ;;  %v1414_v26 = vpop.f32.mrf.mxu2  ;;  %v412_v32 = vpop.f32.mrf.mxu0 }
  0xcd   : > { %v1913_v27 = vpop.f32.mrf.mxu3  ;;  %v2143_v28 = vpack.c.bf16 %v2111_v24, %v2111_v24  ;;  %v647_v29 = vpack.c.bf16 %v615_v25, %v615_v25  ;;  %v1114_v30 = vsel %vm1050_vm13, %v1018_v17, %v1082_v22  ;;  %v1485_v31 = vmul.f32 %v3075_v44, %v1414_v26  ;;  %v917_v33 = vpop.f32.mrf.mxu1 }
  0xce   : > { %2644 = vst.msk [vmem:[%s3099_s27 + $0x114] sm:$0xf] %vm673_vm3, %v1644_v23  ;;  %v1146_v34 = vpack.c.bf16 %v1114_v30, %v1114_v30  ;;  %v1984_v35 = vmul.f32 %v3075_v44, %v1913_v27  ;;  %v485_v36 = vmul.f32 %v3075_v44, %v412_v32  ;;  %v987_v37 = vmul.f32 %v3075_v44, %v917_v33 }
  0xcf   : > { %2800 = vst.msk [vmem:[%s3099_s27 + $0x194] sm:$0xf] %vm673_vm3, %v2143_v28  ;;  %v1517_v38 = vadd.f32 %v3080_v45, %v1485_v31 }
  0xd0   : > { %680 = vst.msk [vmem:[%s3099_s27 + $0x18] sm:$0xf] %vm673_vm3, %v647_v29  ;;  %v2016_v39 = vadd.f32 %v3080_v45, %v1984_v35  ;;  %v520_v40 = vadd.f32 %v3080_v45, %v485_v36  ;;  %v1019_v41 = vadd.f32 %v3080_v45, %v987_v37 }
  0xd1   : > { %2489 = vst.msk [vmem:[%s3099_s27 + $0x98] sm:$0xf] %vm673_vm3, %v1146_v34  ;;  %vm1549_vm14 = vcmp.ge.f32.partialorder %v1517_v38, 0.0  ;;  %v1581_v42 = vmul.f32 0.2, %v1517_v38 }
  0xd2   : > { %vm2048_vm15 = vcmp.ge.f32.partialorder %v2016_v39, 0.0  ;;  %v2080_v43 = vmul.f32 0.2, %v2016_v39  ;;  %vm552_vm1 = vcmp.ge.f32.partialorder %v520_v40, 0.0  ;;  %v584_v46 = vmul.f32 0.2, %v520_v40 }
  0xd3   : > { %v1613_v47 = vsel %vm1549_vm14, %v1517_v38, %v1581_v42  ;;  %vm1051_vm2 = vcmp.ge.f32.partialorder %v1019_v41, 0.0  ;;  %v1083_v48 = vmul.f32 0.2, %v1019_v41  ;;  %v2844_v42 = vld [vmem:[%s3000_s14 + $0x68] sm:$0xff] }
  0xd4   : > { %v1645_v49 = vpack.c.bf16 %v1613_v47, %v1613_v47  ;;  %v2112_v50 = vsel %vm2048_vm15, %v2016_v39, %v2080_v43  ;;  %v616_v51 = vsel %vm552_vm1, %v520_v40, %v584_v46  ;;  %v1416_v52 = vpop.f32.mrf.mxu2  ;;  %v415_v60 = vpop.f32.mrf.mxu0  ;;  %v2863_v43 = vld [vmem:[%s3000_s14 + $0xe8] sm:$0xff] }
  0xd5   : > { %v1915_v53 = vpop.f32.mrf.mxu3  ;;  %v2144_v56 = vpack.c.bf16 %v2112_v50, %v2112_v50  ;;  %v648_v57 = vpack.c.bf16 %v616_v51, %v616_v51  ;;  %v1115_v58 = vsel %vm1051_vm2, %v1019_v41, %v1083_v48  ;;  %v1486_v59 = vmul.f32 %v3075_v44, %v1416_v52  ;;  %v920_v61 = vpop.f32.mrf.mxu1  ;;  %v2882_v52 = vld [vmem:[%s3000_s14 + $0x168] sm:$0xff] }
  0xd6   : > { %2645 = vst.msk [vmem:[%s3099_s27 + $0x118] sm:$0xf] %vm673_vm3, %v1645_v49  ;;  %v1147_v0 = vpack.c.bf16 %v1115_v58, %v1115_v58  ;;  %v1985_v1 = vmul.f32 %v3075_v44, %v1915_v53  ;;  %v486_v2 = vmul.f32 %v3075_v44, %v415_v60  ;;  %v988_v3 = vmul.f32 %v3075_v44, %v920_v61  ;;  %v2901_v53 = vld [vmem:[%s3000_s14 + $0x1e8] sm:$0xff] }
  0xd7   : > { %2801 = vst.msk [vmem:[%s3099_s27 + $0x198] sm:$0xf] %vm673_vm3, %v2144_v56  ;;  %v1518_v4 = vadd.f32 %v3080_v45, %v1486_v59  ;;  %2355 = vmatmul.msk.bf16.gmra.mxu0 %vm337_vm0, %v2843_v54 }
  0xd8   : > { %681 = vst.msk [vmem:[%s3099_s27 + $0x1c] sm:$0xf] %vm673_vm3, %v648_v57  ;;  %v2017_v5 = vadd.f32 %v3080_v45, %v1985_v1  ;;  %v521_v6 = vadd.f32 %v3080_v45, %v486_v2  ;;  %v1020_v7 = vadd.f32 %v3080_v45, %v988_v3  ;;  %2479 = vmatmul.msk.bf16.gmra.mxu1 %vm337_vm0, %v2862_v55 }
  0xd9   : > { %2490 = vst.msk [vmem:[%s3099_s27 + $0x9c] sm:$0xf] %vm673_vm3, %v1147_v0  ;;  %vm1550_vm4 = vcmp.ge.f32.partialorder %v1518_v4, 0.0  ;;  %v1582_v8 = vmul.f32 0.2, %v1518_v4  ;;  %2635 = vmatmul.msk.bf16.gmra.mxu2 %vm337_vm0, %v2881_v62 }
  0xda   : > { %2791 = vmatmul.msk.bf16.gmra.mxu3 %vm337_vm0, %v2900_v63  ;;  %vm2049_vm5 = vcmp.ge.f32.partialorder %v2017_v5, 0.0  ;;  %v2081_v9 = vmul.f32 0.2, %v2017_v5  ;;  %vm553_vm6 = vcmp.ge.f32.partialorder %v521_v6, 0.0  ;;  %v585_v10 = vmul.f32 0.2, %v521_v6 }
  0xdb   : > { %v1614_v11 = vsel %vm1550_vm4, %v1518_v4, %v1582_v8  ;;  %vm1052_vm7 = vcmp.ge.f32.partialorder %v1020_v7, 0.0  ;;  %v1084_v12 = vmul.f32 0.2, %v1020_v7 }
  0xdc   : > { %v1646_v13 = vpack.c.bf16 %v1614_v11, %v1614_v11  ;;  %v2113_v14 = vsel %vm2049_vm5, %v2017_v5, %v2081_v9  ;;  %v617_v15 = vsel %vm553_vm6, %v521_v6, %v585_v10  ;;  %v1419_v16 = vpop.f32.mrf.mxu2  ;;  %v417_v22 = vpop.f32.mrf.mxu0 }
  0xdd   : > { %v1918_v17 = vpop.f32.mrf.mxu3  ;;  %v2145_v18 = vpack.c.bf16 %v2113_v14, %v2113_v14  ;;  %v649_v19 = vpack.c.bf16 %v617_v15, %v617_v15  ;;  %v1116_v20 = vsel %vm1052_vm7, %v1020_v7, %v1084_v12  ;;  %v1487_v21 = vmul.f32 %v3075_v44, %v1419_v16  ;;  %v922_v23 = vpop.f32.mrf.mxu1 }
  0xde   : > { %2646 = vst.msk [vmem:[%s3099_s27 + $0x11c] sm:$0xf] %vm673_vm3, %v1646_v13  ;;  %v1148_v24 = vpack.c.bf16 %v1116_v20, %v1116_v20  ;;  %v1986_v25 = vmul.f32 %v3075_v44, %v1918_v17  ;;  %v487_v26 = vmul.f32 %v3075_v44, %v417_v22  ;;  %v989_v27 = vmul.f32 %v3075_v44, %v922_v23 }
  0xdf   : > { %2802 = vst.msk [vmem:[%s3099_s27 + $0x19c] sm:$0xf] %vm673_vm3, %v2145_v18  ;;  %v1519_v28 = vadd.f32 %v3080_v45, %v1487_v21 }
  0xe0   : > { %682 = vst.msk [vmem:[%s3099_s27 + $0x20] sm:$0xf] %vm673_vm3, %v649_v19  ;;  %v2018_v29 = vadd.f32 %v3080_v45, %v1986_v25  ;;  %v522_v30 = vadd.f32 %v3080_v45, %v487_v26  ;;  %v1021_v31 = vadd.f32 %v3080_v45, %v989_v27 }
  0xe1   : > { %2491 = vst.msk [vmem:[%s3099_s27 + $0xa0] sm:$0xf] %vm673_vm3, %v1148_v24  ;;  %vm1551_vm8 = vcmp.ge.f32.partialorder %v1519_v28, 0.0  ;;  %v1583_v32 = vmul.f32 0.2, %v1519_v28 }
  0xe2   : > { %vm2050_vm9 = vcmp.ge.f32.partialorder %v2018_v29, 0.0  ;;  %v2082_v33 = vmul.f32 0.2, %v2018_v29  ;;  %vm554_vm10 = vcmp.ge.f32.partialorder %v522_v30, 0.0  ;;  %v586_v34 = vmul.f32 0.2, %v522_v30 }
  0xe3   : > { %v1615_v35 = vsel %vm1551_vm8, %v1519_v28, %v1583_v32  ;;  %vm1053_vm11 = vcmp.ge.f32.partialorder %v1021_v31, 0.0  ;;  %v1085_v36 = vmul.f32 0.2, %v1021_v31  ;;  %v2845_v32 = vld [vmem:[%s3000_s14 + $0x70] sm:$0xff] }
  0xe4   : > { %v1647_v37 = vpack.c.bf16 %v1615_v35, %v1615_v35  ;;  %v2114_v38 = vsel %vm2050_vm9, %v2018_v29, %v2082_v33  ;;  %v618_v39 = vsel %vm554_vm10, %v522_v30, %v586_v34  ;;  %v1421_v40 = vpop.f32.mrf.mxu2  ;;  %v420_v50 = vpop.f32.mrf.mxu0  ;;  %v2864_v33 = vld [vmem:[%s3000_s14 + $0xf0] sm:$0xff] }
  0xe5   : > { %v1920_v41 = vpop.f32.mrf.mxu3  ;;  %v2146_v46 = vpack.c.bf16 %v2114_v38, %v2114_v38  ;;  %v650_v47 = vpack.c.bf16 %v618_v39, %v618_v39  ;;  %v1117_v48 = vsel %vm1053_vm11, %v1021_v31, %v1085_v36  ;;  %v1488_v49 = vmul.f32 %v3075_v44, %v1421_v40  ;;  %v925_v51 = vpop.f32.mrf.mxu1  ;;  %v2883_v40 = vld [vmem:[%s3000_s14 + $0x170] sm:$0xff] }
  0xe6   : > { %2647 = vst.msk [vmem:[%s3099_s27 + $0x120] sm:$0xf] %vm673_vm3, %v1647_v37  ;;  %v1149_v54 = vpack.c.bf16 %v1117_v48, %v1117_v48  ;;  %v1987_v55 = vmul.f32 %v3075_v44, %v1920_v41  ;;  %v488_v56 = vmul.f32 %v3075_v44, %v420_v50  ;;  %v990_v57 = vmul.f32 %v3075_v44, %v925_v51  ;;  %v2902_v41 = vld [vmem:[%s3000_s14 + $0x1f0] sm:$0xff] }
  0xe7   : > { %2803 = vst.msk [vmem:[%s3099_s27 + $0x1a0] sm:$0xf] %vm673_vm3, %v2146_v46  ;;  %v1520_v58 = vadd.f32 %v3080_v45, %v1488_v49  ;;  %2356 = vmatmul.msk.bf16.gmra.mxu0 %vm337_vm0, %v2844_v42 }
  0xe8   : > { %683 = vst.msk [vmem:[%s3099_s27 + $0x24] sm:$0xf] %vm673_vm3, %v650_v47  ;;  %v2019_v59 = vadd.f32 %v3080_v45, %v1987_v55  ;;  %v523_v60 = vadd.f32 %v3080_v45, %v488_v56  ;;  %v1022_v61 = vadd.f32 %v3080_v45, %v990_v57  ;;  %2480 = vmatmul.msk.bf16.gmra.mxu1 %vm337_vm0, %v2863_v43 }
  0xe9   : > { %2492 = vst.msk [vmem:[%s3099_s27 + $0xa4] sm:$0xf] %vm673_vm3, %v1149_v54  ;;  %vm1552_vm12 = vcmp.ge.f32.partialorder %v1520_v58, 0.0  ;;  %v1584_v62 = vmul.f32 0.2, %v1520_v58  ;;  %2636 = vmatmul.msk.bf16.gmra.mxu2 %vm337_vm0, %v2882_v52 }
  0xea   : > { %2792 = vmatmul.msk.bf16.gmra.mxu3 %vm337_vm0, %v2901_v53  ;;  %vm2051_vm13 = vcmp.ge.f32.partialorder %v2019_v59, 0.0  ;;  %v2083_v63 = vmul.f32 0.2, %v2019_v59  ;;  %vm555_vm14 = vcmp.ge.f32.partialorder %v523_v60, 0.0  ;;  %v587_v0 = vmul.f32 0.2, %v523_v60 }
  0xeb   : > { %v1616_v1 = vsel %vm1552_vm12, %v1520_v58, %v1584_v62  ;;  %vm1054_vm15 = vcmp.ge.f32.partialorder %v1022_v61, 0.0  ;;  %v1086_v2 = vmul.f32 0.2, %v1022_v61 }
  0xec   : > { %v1648_v3 = vpack.c.bf16 %v1616_v1, %v1616_v1  ;;  %v2115_v4 = vsel %vm2051_vm13, %v2019_v59, %v2083_v63  ;;  %v619_v5 = vsel %vm555_vm14, %v523_v60, %v587_v0  ;;  %v1424_v6 = vpop.f32.mrf.mxu2  ;;  %v422_v12 = vpop.f32.mrf.mxu0 }
  0xed   : > { %v1923_v7 = vpop.f32.mrf.mxu3  ;;  %v2147_v8 = vpack.c.bf16 %v2115_v4, %v2115_v4  ;;  %v651_v9 = vpack.c.bf16 %v619_v5, %v619_v5  ;;  %v1118_v10 = vsel %vm1054_vm15, %v1022_v61, %v1086_v2  ;;  %v1489_v11 = vmul.f32 %v3075_v44, %v1424_v6  ;;  %v927_v13 = vpop.f32.mrf.mxu1 }
  0xee   : > { %2648 = vst.msk [vmem:[%s3099_s27 + $0x124] sm:$0xf] %vm673_vm3, %v1648_v3  ;;  %v1150_v14 = vpack.c.bf16 %v1118_v10, %v1118_v10  ;;  %v1988_v15 = vmul.f32 %v3075_v44, %v1923_v7  ;;  %v489_v16 = vmul.f32 %v3075_v44, %v422_v12  ;;  %v991_v17 = vmul.f32 %v3075_v44, %v927_v13 }
  0xef   : > { %2804 = vst.msk [vmem:[%s3099_s27 + $0x1a4] sm:$0xf] %vm673_vm3, %v2147_v8  ;;  %v1521_v18 = vadd.f32 %v3080_v45, %v1489_v11 }
  0xf0   : > { %684 = vst.msk [vmem:[%s3099_s27 + $0x28] sm:$0xf] %vm673_vm3, %v651_v9  ;;  %v2020_v19 = vadd.f32 %v3080_v45, %v1988_v15  ;;  %v524_v20 = vadd.f32 %v3080_v45, %v489_v16  ;;  %v1023_v21 = vadd.f32 %v3080_v45, %v991_v17 }
  0xf1   : > { %2493 = vst.msk [vmem:[%s3099_s27 + $0xa8] sm:$0xf] %vm673_vm3, %v1150_v14  ;;  %vm1553_vm1 = vcmp.ge.f32.partialorder %v1521_v18, 0.0  ;;  %v1585_v22 = vmul.f32 0.2, %v1521_v18 }
  0xf2   : > { %vm2052_vm2 = vcmp.ge.f32.partialorder %v2020_v19, 0.0  ;;  %v2084_v23 = vmul.f32 0.2, %v2020_v19  ;;  %vm556_vm4 = vcmp.ge.f32.partialorder %v524_v20, 0.0  ;;  %v588_v24 = vmul.f32 0.2, %v524_v20 }
  0xf3   : > { %v1617_v25 = vsel %vm1553_vm1, %v1521_v18, %v1585_v22  ;;  %vm1055_vm5 = vcmp.ge.f32.partialorder %v1023_v21, 0.0  ;;  %v1087_v26 = vmul.f32 0.2, %v1023_v21  ;;  %v2846_v22 = vld [vmem:[%s3000_s14 + $0x78] sm:$0xff] }
  0xf4   : > { %v1649_v27 = vpack.c.bf16 %v1617_v25, %v1617_v25  ;;  %v2116_v28 = vsel %vm2052_vm2, %v2020_v19, %v2084_v23  ;;  %v620_v29 = vsel %vm556_vm4, %v524_v20, %v588_v24  ;;  %v1426_v30 = vpop.f32.mrf.mxu2  ;;  %v425_v38 = vpop.f32.mrf.mxu0  ;;  %v2865_v23 = vld [vmem:[%s3000_s14 + $0xf8] sm:$0xff] }
  0xf5   : > { %v1925_v31 = vpop.f32.mrf.mxu3  ;;  %v2148_v34 = vpack.c.bf16 %v2116_v28, %v2116_v28  ;;  %v652_v35 = vpack.c.bf16 %v620_v29, %v620_v29  ;;  %v1119_v36 = vsel %vm1055_vm5, %v1023_v21, %v1087_v26  ;;  %v1490_v37 = vmul.f32 %v3075_v44, %v1426_v30  ;;  %v930_v39 = vpop.f32.mrf.mxu1  ;;  %v2884_v30 = vld [vmem:[%s3000_s14 + $0x178] sm:$0xff] }
  0xf6   : > { %2649 = vst.msk [vmem:[%s3099_s27 + $0x128] sm:$0xf] %vm673_vm3, %v1649_v27  ;;  %v1151_v42 = vpack.c.bf16 %v1119_v36, %v1119_v36  ;;  %v1989_v43 = vmul.f32 %v3075_v44, %v1925_v31  ;;  %v490_v46 = vmul.f32 %v3075_v44, %v425_v38  ;;  %v992_v47 = vmul.f32 %v3075_v44, %v930_v39  ;;  %v2903_v31 = vld [vmem:[%s3000_s14 + $0x1f8] sm:$0xff] }
  0xf7   : > { %2805 = vst.msk [vmem:[%s3099_s27 + $0x1a8] sm:$0xf] %vm673_vm3, %v2148_v34  ;;  %v1522_v48 = vadd.f32 %v3080_v45, %v1490_v37  ;;  %2357 = vmatmul.msk.bf16.gmra.mxu0 %vm337_vm0, %v2845_v32 }
  0xf8   : > { %685 = vst.msk [vmem:[%s3099_s27 + $0x2c] sm:$0xf] %vm673_vm3, %v652_v35  ;;  %v2021_v49 = vadd.f32 %v3080_v45, %v1989_v43  ;;  %v525_v50 = vadd.f32 %v3080_v45, %v490_v46  ;;  %v1024_v51 = vadd.f32 %v3080_v45, %v992_v47  ;;  %2481 = vmatmul.msk.bf16.gmra.mxu1 %vm337_vm0, %v2864_v33 }
  0xf9   : > { %2494 = vst.msk [vmem:[%s3099_s27 + $0xac] sm:$0xf] %vm673_vm3, %v1151_v42  ;;  %vm1554_vm6 = vcmp.ge.f32.partialorder %v1522_v48, 0.0  ;;  %v1586_v52 = vmul.f32 0.2, %v1522_v48  ;;  %2637 = vmatmul.msk.bf16.gmra.mxu2 %vm337_vm0, %v2883_v40 }
  0xfa   : > { %2793 = vmatmul.msk.bf16.gmra.mxu3 %vm337_vm0, %v2902_v41  ;;  %vm2053_vm7 = vcmp.ge.f32.partialorder %v2021_v49, 0.0  ;;  %v2085_v53 = vmul.f32 0.2, %v2021_v49  ;;  %vm557_vm8 = vcmp.ge.f32.partialorder %v525_v50, 0.0  ;;  %v589_v54 = vmul.f32 0.2, %v525_v50 }
  0xfb   : > { %v1618_v55 = vsel %vm1554_vm6, %v1522_v48, %v1586_v52  ;;  %vm1056_vm9 = vcmp.ge.f32.partialorder %v1024_v51, 0.0  ;;  %v1088_v56 = vmul.f32 0.2, %v1024_v51 }
  0xfc   : > { %v1650_v57 = vpack.c.bf16 %v1618_v55, %v1618_v55  ;;  %v2117_v58 = vsel %vm2053_vm7, %v2021_v49, %v2085_v53  ;;  %v621_v59 = vsel %vm557_vm8, %v525_v50, %v589_v54  ;;  %v1429_v60 = vpop.f32.mrf.mxu2  ;;  %v427_v2 = vpop.f32.mrf.mxu0  ;;  %v3380_v53 = vld [vmem:[%s3674_s2] ss:$0 sm:$0xff] }
  0xfd   : > { %v1928_v61 = vpop.f32.mrf.mxu3  ;;  %v2149_v62 = vpack.c.bf16 %v2117_v58, %v2117_v58  ;;  %v653_v63 = vpack.c.bf16 %v621_v59, %v621_v59  ;;  %v1120_v0 = vsel %vm1056_vm9, %v1024_v51, %v1088_v56  ;;  %v1491_v1 = vmul.f32 %v3075_v44, %v1429_v60  ;;  %v932_v3 = vpop.f32.mrf.mxu1 }
  0xfe   : > { %2650 = vst.msk [vmem:[%s3099_s27 + $0x12c] sm:$0xf] %vm673_vm3, %v1650_v57  ;;  %v1152_v4 = vpack.c.bf16 %v1120_v0, %v1120_v0  ;;  %v1990_v5 = vmul.f32 %v3075_v44, %v1928_v61  ;;  %v491_v6 = vmul.f32 %v3075_v44, %v427_v2  ;;  %v993_v7 = vmul.f32 %v3075_v44, %v932_v3  ;;  %v3393_v61 = vld [vmem:[%s3675_s3] ss:$0 sm:$0xff] }
  0xff   : > { %2806 = vst.msk [vmem:[%s3099_s27 + $0x1ac] sm:$0xf] %vm673_vm3, %v2149_v62  ;;  %v1523_v8 = vadd.f32 %v3080_v45, %v1491_v1 }
 0x100   : > { %686 = vst.msk [vmem:[%s3099_s27 + $0x30] sm:$0xf] %vm673_vm3, %v653_v63  ;;  %v2022_v9 = vadd.f32 %v3080_v45, %v1990_v5  ;;  %v526_v10 = vadd.f32 %v3080_v45, %v491_v6  ;;  %v1025_v11 = vadd.f32 %v3080_v45, %v993_v7 }
 0x101   : > { %2495 = vst.msk [vmem:[%s3099_s27 + $0xb0] sm:$0xf] %vm673_vm3, %v1152_v4  ;;  %vm1555_vm10 = vcmp.ge.f32.partialorder %v1523_v8, 0.0  ;;  %v1587_v12 = vmul.f32 0.2, %v1523_v8 }
 0x102   : > { %vm2054_vm11 = vcmp.ge.f32.partialorder %v2022_v9, 0.0  ;;  %v2086_v13 = vmul.f32 0.2, %v2022_v9  ;;  %vm558_vm12 = vcmp.ge.f32.partialorder %v526_v10, 0.0  ;;  %v590_v14 = vmul.f32 0.2, %v526_v10 }
 0x103   : > { %v1619_v15 = vsel %vm1555_vm10, %v1523_v8, %v1587_v12  ;;  %vm1057_vm13 = vcmp.ge.f32.partialorder %v1025_v11, 0.0  ;;  %v1089_v16 = vmul.f32 0.2, %v1025_v11 }
 0x104   : > { %v1651_v17 = vpack.c.bf16 %v1619_v15, %v1619_v15  ;;  %v2118_v18 = vsel %vm2054_vm11, %v2022_v9, %v2086_v13  ;;  %v622_v19 = vsel %vm558_vm12, %v526_v10, %v590_v14  ;;  %v1431_v20 = vpop.f32.mrf.mxu2  ;;  %v430_v28 = vpop.f32.mrf.mxu0 }
 0x105   : > { %v1930_v21 = vpop.f32.mrf.mxu3  ;;  %v2150_v24 = vpack.c.bf16 %v2118_v18, %v2118_v18  ;;  %v654_v25 = vpack.c.bf16 %v622_v19, %v622_v19  ;;  %v1121_v26 = vsel %vm1057_vm13, %v1025_v11, %v1089_v16  ;;  %v1492_v27 = vmul.f32 %v3075_v44, %v1431_v20  ;;  %v935_v29 = vpop.f32.mrf.mxu1 }
 0x106   : > { %2651 = vst.msk [vmem:[%s3099_s27 + $0x130] sm:$0xf] %vm673_vm3, %v1651_v17  ;;  %v1153_v32 = vpack.c.bf16 %v1121_v26, %v1121_v26  ;;  %v1991_v33 = vmul.f32 %v3075_v44, %v1930_v21  ;;  %v492_v34 = vmul.f32 %v3075_v44, %v430_v28  ;;  %v994_v35 = vmul.f32 %v3075_v44, %v935_v29 }
 0x107   : > { %2807 = vst.msk [vmem:[%s3099_s27 + $0x1b0] sm:$0xf] %vm673_vm3, %v2150_v24  ;;  %v1524_v36 = vadd.f32 %v3080_v45, %v1492_v27  ;;  %2358 = vmatmul.msk.bf16.gmra.mxu0 %vm337_vm0, %v2846_v22 }
 0x108   : > { %687 = vst.msk [vmem:[%s3099_s27 + $0x34] sm:$0xf] %vm673_vm3, %v654_v25  ;;  %v2023_v37 = vadd.f32 %v3080_v45, %v1991_v33  ;;  %v527_v38 = vadd.f32 %v3080_v45, %v492_v34  ;;  %v1026_v39 = vadd.f32 %v3080_v45, %v994_v35  ;;  %2482 = vmatmul.msk.bf16.gmra.mxu1 %vm337_vm0, %v2865_v23 }
 0x109   : > { %2496 = vst.msk [vmem:[%s3099_s27 + $0xb4] sm:$0xf] %vm673_vm3, %v1153_v32  ;;  %vm1556_vm14 = vcmp.ge.f32.partialorder %v1524_v36, 0.0  ;;  %v1588_v44 = vmul.f32 0.2, %v1524_v36  ;;  %2638 = vmatmul.msk.bf16.gmra.mxu2 %vm337_vm0, %v2884_v30 }
 0x10a   : > { %2794 = vmatmul.msk.bf16.gmra.mxu3 %vm337_vm0, %v2903_v31  ;;  %vm2055_vm15 = vcmp.ge.f32.partialorder %v2023_v37, 0.0  ;;  %v2087_v40 = vmul.f32 0.2, %v2023_v37  ;;  %vm559_vm1 = vcmp.ge.f32.partialorder %v527_v38, 0.0  ;;  %v591_v41 = vmul.f32 0.2, %v527_v38 }
 0x10b   : > { %v1620_v42 = vsel %vm1556_vm14, %v1524_v36, %v1588_v44  ;;  %vm1058_vm2 = vcmp.ge.f32.partialorder %v1026_v39, 0.0  ;;  %v1090_v45 = vmul.f32 0.2, %v1026_v39 }
 0x10c   : > { %v1652_v43 = vpack.c.bf16 %v1620_v42, %v1620_v42  ;;  %v2119_v46 = vsel %vm2055_vm15, %v2023_v37, %v2087_v40  ;;  %v623_v47 = vsel %vm559_vm1, %v527_v38, %v591_v41  ;;  %v1434_v48 = vpop.f32.mrf.mxu2  ;;  %v432_v55 = vpop.f32.mrf.mxu0 }
 0x10d   : > { %v1933_v49 = vpop.f32.mrf.mxu3  ;;  %v2151_v50 = vpack.c.bf16 %v2119_v46, %v2119_v46  ;;  %v655_v51 = vpack.c.bf16 %v623_v47, %v623_v47  ;;  %v1122_v52 = vsel %vm1058_vm2, %v1026_v39, %v1090_v45  ;;  %v1493_v54 = vmul.f32 %v3380_v53, %v1434_v48  ;;  %v937_v56 = vpop.f32.mrf.mxu1 }
 0x10e   : > { %2652 = vst.msk [vmem:[%s3099_s27 + $0x134] sm:$0xf] %vm673_vm3, %v1652_v43  ;;  %v1154_v57 = vpack.c.bf16 %v1122_v52, %v1122_v52  ;;  %v1992_v58 = vmul.f32 %v3380_v53, %v1933_v49  ;;  %v493_v59 = vmul.f32 %v3380_v53, %v432_v55  ;;  %v995_v60 = vmul.f32 %v3380_v53, %v937_v56 }
 0x10f   : > { %2808 = vst.msk [vmem:[%s3099_s27 + $0x1b4] sm:$0xf] %vm673_vm3, %v2151_v50  ;;  %v1525_v62 = vadd.f32 %v3393_v61, %v1493_v54 }
 0x110   : > { %688 = vst.msk [vmem:[%s3099_s27 + $0x38] sm:$0xf] %vm673_vm3, %v655_v51  ;;  %v2024_v63 = vadd.f32 %v3393_v61, %v1992_v58  ;;  %v528_v0 = vadd.f32 %v3393_v61, %v493_v59  ;;  %v1027_v1 = vadd.f32 %v3393_v61, %v995_v60 }
 0x111   : > { %2497 = vst.msk [vmem:[%s3099_s27 + $0xb8] sm:$0xf] %vm673_vm3, %v1154_v57  ;;  %vm1557_vm0 = vcmp.ge.f32.partialorder %v1525_v62, 0.0  ;;  %v1589_v2 = vmul.f32 0.2, %v1525_v62 }
 0x112   : > { %vm2056_vm4 = vcmp.ge.f32.partialorder %v2024_v63, 0.0  ;;  %v2088_v3 = vmul.f32 0.2, %v2024_v63  ;;  %vm560_vm5 = vcmp.ge.f32.partialorder %v528_v0, 0.0  ;;  %v592_v4 = vmul.f32 0.2, %v528_v0 }
 0x113   : > { %v1621_v5 = vsel %vm1557_vm0, %v1525_v62, %v1589_v2  ;;  %vm1059_vm6 = vcmp.ge.f32.partialorder %v1027_v1, 0.0  ;;  %v1091_v6 = vmul.f32 0.2, %v1027_v1 }
 0x114   : > { %v1653_v7 = vpack.c.bf16 %v1621_v5, %v1621_v5  ;;  %v2120_v8 = vsel %vm2056_vm4, %v2024_v63, %v2088_v3  ;;  %v624_v9 = vsel %vm560_vm5, %v528_v0, %v592_v4  ;;  %v1436_v10 = vpop.f32.mrf.mxu2  ;;  %v435_v16 = vpop.f32.mrf.mxu0 }
 0x115   : > { %v1935_v11 = vpop.f32.mrf.mxu3  ;;  %v2152_v12 = vpack.c.bf16 %v2120_v8, %v2120_v8  ;;  %v656_v13 = vpack.c.bf16 %v624_v9, %v624_v9  ;;  %v1123_v14 = vsel %vm1059_vm6, %v1027_v1, %v1091_v6  ;;  %v1494_v15 = vmul.f32 %v3380_v53, %v1436_v10  ;;  %v940_v17 = vpop.f32.mrf.mxu1 }
 0x116   : > { %2653 = vst.msk [vmem:[%s3099_s27 + $0x138] sm:$0xf] %vm673_vm3, %v1653_v7  ;;  %v1155_v18 = vpack.c.bf16 %v1123_v14, %v1123_v14  ;;  %v1993_v19 = vmul.f32 %v3380_v53, %v1935_v11  ;;  %v494_v20 = vmul.f32 %v3380_v53, %v435_v16  ;;  %v996_v21 = vmul.f32 %v3380_v53, %v940_v17 }
 0x117   : > { %2809 = vst.msk [vmem:[%s3099_s27 + $0x1b8] sm:$0xf] %vm673_vm3, %v2152_v12  ;;  %v1526_v22 = vadd.f32 %v3393_v61, %v1494_v15 }
 0x118   : > { %689 = vst.msk [vmem:[%s3099_s27 + $0x3c] sm:$0xf] %vm673_vm3, %v656_v13  ;;  %v2025_v23 = vadd.f32 %v3393_v61, %v1993_v19  ;;  %v529_v24 = vadd.f32 %v3393_v61, %v494_v20  ;;  %v1028_v25 = vadd.f32 %v3393_v61, %v996_v21 }
 0x119   : > { %2498 = vst.msk [vmem:[%s3099_s27 + $0xbc] sm:$0xf] %vm673_vm3, %v1155_v18  ;;  %vm1558_vm7 = vcmp.ge.f32.partialorder %v1526_v22, 0.0  ;;  %v1590_v26 = vmul.f32 0.2, %v1526_v22 }
 0x11a   : > { %vm2057_vm8 = vcmp.ge.f32.partialorder %v2025_v23, 0.0  ;;  %v2089_v27 = vmul.f32 0.2, %v2025_v23  ;;  %vm561_vm9 = vcmp.ge.f32.partialorder %v529_v24, 0.0  ;;  %v593_v28 = vmul.f32 0.2, %v529_v24 }
 0x11b   : > { %v1622_v29 = vsel %vm1558_vm7, %v1526_v22, %v1590_v26  ;;  %vm1060_vm10 = vcmp.ge.f32.partialorder %v1028_v25, 0.0  ;;  %v1092_v30 = vmul.f32 0.2, %v1028_v25 }
 0x11c   : > { %v1654_v31 = vpack.c.bf16 %v1622_v29, %v1622_v29  ;;  %v2121_v32 = vsel %vm2057_vm8, %v2025_v23, %v2089_v27  ;;  %v625_v33 = vsel %vm561_vm9, %v529_v24, %v593_v28  ;;  %v1439_v34 = vpop.f32.mrf.mxu2  ;;  %v437_v44 = vpop.f32.mrf.mxu0 }
 0x11d   : > { %v1938_v35 = vpop.f32.mrf.mxu3  ;;  %v2153_v36 = vpack.c.bf16 %v2121_v32, %v2121_v32  ;;  %v657_v37 = vpack.c.bf16 %v625_v33, %v625_v33  ;;  %v1124_v38 = vsel %vm1060_vm10, %v1028_v25, %v1092_v30  ;;  %v1495_v39 = vmul.f32 %v3380_v53, %v1439_v34  ;;  %v942_v40 = vpop.f32.mrf.mxu1 }
 0x11e   : > { %2654 = vst.msk [vmem:[%s3099_s27 + $0x13c] sm:$0xf] %vm673_vm3, %v1654_v31  ;;  %v1156_v41 = vpack.c.bf16 %v1124_v38, %v1124_v38  ;;  %v1994_v42 = vmul.f32 %v3380_v53, %v1938_v35  ;;  %v495_v45 = vmul.f32 %v3380_v53, %v437_v44  ;;  %v997_v43 = vmul.f32 %v3380_v53, %v942_v40 }
 0x11f   : > { %2810 = vst.msk [vmem:[%s3099_s27 + $0x1bc] sm:$0xf] %vm673_vm3, %v2153_v36  ;;  %v1527_v46 = vadd.f32 %v3393_v61, %v1495_v39 }
 0x120   : > { %690 = vst.msk [vmem:[%s3099_s27 + $0x40] sm:$0xf] %vm673_vm3, %v657_v37  ;;  %v2026_v47 = vadd.f32 %v3393_v61, %v1994_v42  ;;  %v530_v48 = vadd.f32 %v3393_v61, %v495_v45  ;;  %v1029_v49 = vadd.f32 %v3393_v61, %v997_v43 }
 0x121   : > { %2499 = vst.msk [vmem:[%s3099_s27 + $0xc0] sm:$0xf] %vm673_vm3, %v1156_v41  ;;  %vm1559_vm11 = vcmp.ge.f32.partialorder %v1527_v46, 0.0  ;;  %v1591_v50 = vmul.f32 0.2, %v1527_v46 }
 0x122   : > { %vm2058_vm12 = vcmp.ge.f32.partialorder %v2026_v47, 0.0  ;;  %v2090_v51 = vmul.f32 0.2, %v2026_v47  ;;  %vm562_vm13 = vcmp.ge.f32.partialorder %v530_v48, 0.0  ;;  %v594_v52 = vmul.f32 0.2, %v530_v48 }
 0x123   : > { %v1623_v54 = vsel %vm1559_vm11, %v1527_v46, %v1591_v50  ;;  %vm1061_vm14 = vcmp.ge.f32.partialorder %v1029_v49, 0.0  ;;  %v1093_v55 = vmul.f32 0.2, %v1029_v49 }
 0x124   : > { %v1655_v56 = vpack.c.bf16 %v1623_v54, %v1623_v54  ;;  %v2122_v57 = vsel %vm2058_vm12, %v2026_v47, %v2090_v51  ;;  %v626_v58 = vsel %vm562_vm13, %v530_v48, %v594_v52  ;;  %v1441_v59 = vpop.f32.mrf.mxu2  ;;  %v440_v2 = vpop.f32.mrf.mxu0 }
 0x125   : > { %v1940_v60 = vpop.f32.mrf.mxu3  ;;  %v2154_v62 = vpack.c.bf16 %v2122_v57, %v2122_v57  ;;  %v658_v63 = vpack.c.bf16 %v626_v58, %v626_v58  ;;  %v1125_v0 = vsel %vm1061_vm14, %v1029_v49, %v1093_v55  ;;  %v1496_v1 = vmul.f32 %v3380_v53, %v1441_v59  ;;  %v945_v3 = vpop.f32.mrf.mxu1 }
 0x126   : > { %2655 = vst.msk [vmem:[%s3099_s27 + $0x140] sm:$0xf] %vm673_vm3, %v1655_v56  ;;  %v1157_v4 = vpack.c.bf16 %v1125_v0, %v1125_v0  ;;  %v1995_v5 = vmul.f32 %v3380_v53, %v1940_v60  ;;  %v496_v6 = vmul.f32 %v3380_v53, %v440_v2  ;;  %v998_v7 = vmul.f32 %v3380_v53, %v945_v3 }
 0x127   : > { %2811 = vst.msk [vmem:[%s3099_s27 + $0x1c0] sm:$0xf] %vm673_vm3, %v2154_v62  ;;  %v1528_v8 = vadd.f32 %v3393_v61, %v1496_v1 }
 0x128   : > { %691 = vst.msk [vmem:[%s3099_s27 + $0x44] sm:$0xf] %vm673_vm3, %v658_v63  ;;  %v2027_v9 = vadd.f32 %v3393_v61, %v1995_v5  ;;  %v531_v10 = vadd.f32 %v3393_v61, %v496_v6  ;;  %v1030_v11 = vadd.f32 %v3393_v61, %v998_v7 }
 0x129   : > { %2500 = vst.msk [vmem:[%s3099_s27 + $0xc4] sm:$0xf] %vm673_vm3, %v1157_v4  ;;  %vm1560_vm15 = vcmp.ge.f32.partialorder %v1528_v8, 0.0  ;;  %v1592_v12 = vmul.f32 0.2, %v1528_v8 }
 0x12a   : > { %vm2059_vm1 = vcmp.ge.f32.partialorder %v2027_v9, 0.0  ;;  %v2091_v13 = vmul.f32 0.2, %v2027_v9  ;;  %vm563_vm2 = vcmp.ge.f32.partialorder %v531_v10, 0.0  ;;  %v595_v14 = vmul.f32 0.2, %v531_v10 }
 0x12b   : > { %v1624_v15 = vsel %vm1560_vm15, %v1528_v8, %v1592_v12  ;;  %vm1062_vm0 = vcmp.ge.f32.partialorder %v1030_v11, 0.0  ;;  %v1094_v16 = vmul.f32 0.2, %v1030_v11 }
 0x12c   : > { %v1656_v17 = vpack.c.bf16 %v1624_v15, %v1624_v15  ;;  %v2123_v18 = vsel %vm2059_vm1, %v2027_v9, %v2091_v13  ;;  %v627_v19 = vsel %vm563_vm2, %v531_v10, %v595_v14  ;;  %v1444_v20 = vpop.f32.mrf.mxu2  ;;  %v442_v26 = vpop.f32.mrf.mxu0 }
 0x12d   : > { %v1943_v21 = vpop.f32.mrf.mxu3  ;;  %v2155_v22 = vpack.c.bf16 %v2123_v18, %v2123_v18  ;;  %v659_v23 = vpack.c.bf16 %v627_v19, %v627_v19  ;;  %v1126_v24 = vsel %vm1062_vm0, %v1030_v11, %v1094_v16  ;;  %v1497_v25 = vmul.f32 %v3380_v53, %v1444_v20  ;;  %v947_v27 = vpop.f32.mrf.mxu1 }
 0x12e   : > { %2656 = vst.msk [vmem:[%s3099_s27 + $0x144] sm:$0xf] %vm673_vm3, %v1656_v17  ;;  %v1158_v28 = vpack.c.bf16 %v1126_v24, %v1126_v24  ;;  %v1996_v29 = vmul.f32 %v3380_v53, %v1943_v21  ;;  %v497_v30 = vmul.f32 %v3380_v53, %v442_v26  ;;  %v999_v31 = vmul.f32 %v3380_v53, %v947_v27 }
 0x12f   : > { %2812 = vst.msk [vmem:[%s3099_s27 + $0x1c4] sm:$0xf] %vm673_vm3, %v2155_v22  ;;  %v1529_v32 = vadd.f32 %v3393_v61, %v1497_v25 }
 0x130   : > { %692 = vst.msk [vmem:[%s3099_s27 + $0x48] sm:$0xf] %vm673_vm3, %v659_v23  ;;  %v2028_v33 = vadd.f32 %v3393_v61, %v1996_v29  ;;  %v532_v34 = vadd.f32 %v3393_v61, %v497_v30  ;;  %v1031_v35 = vadd.f32 %v3393_v61, %v999_v31 }
 0x131   : > { %2501 = vst.msk [vmem:[%s3099_s27 + $0xc8] sm:$0xf] %vm673_vm3, %v1158_v28  ;;  %vm1561_vm4 = vcmp.ge.f32.partialorder %v1529_v32, 0.0  ;;  %v1593_v36 = vmul.f32 0.2, %v1529_v32 }
 0x132   : > { %vm2060_vm5 = vcmp.ge.f32.partialorder %v2028_v33, 0.0  ;;  %v2092_v37 = vmul.f32 0.2, %v2028_v33  ;;  %vm564_vm6 = vcmp.ge.f32.partialorder %v532_v34, 0.0  ;;  %v596_v38 = vmul.f32 0.2, %v532_v34 }
 0x133   : > { %v1625_v39 = vsel %vm1561_vm4, %v1529_v32, %v1593_v36  ;;  %vm1063_vm7 = vcmp.ge.f32.partialorder %v1031_v35, 0.0  ;;  %v1095_v44 = vmul.f32 0.2, %v1031_v35 }
 0x134   : > { %v1657_v40 = vpack.c.bf16 %v1625_v39, %v1625_v39  ;;  %v2124_v41 = vsel %vm2060_vm5, %v2028_v33, %v2092_v37  ;;  %v628_v42 = vsel %vm564_vm6, %v532_v34, %v596_v38  ;;  %v1446_v45 = vpop.f32.mrf.mxu2  ;;  %v445_v50 = vpop.f32.mrf.mxu0 }
 0x135   : > { %v1945_v43 = vpop.f32.mrf.mxu3  ;;  %v2156_v46 = vpack.c.bf16 %v2124_v41, %v2124_v41  ;;  %v660_v47 = vpack.c.bf16 %v628_v42, %v628_v42  ;;  %v1127_v48 = vsel %vm1063_vm7, %v1031_v35, %v1095_v44  ;;  %v1498_v49 = vmul.f32 %v3380_v53, %v1446_v45  ;;  %v950_v51 = vpop.f32.mrf.mxu1 }
 0x136   : > { %2657 = vst.msk [vmem:[%s3099_s27 + $0x148] sm:$0xf] %vm673_vm3, %v1657_v40  ;;  %v1159_v52 = vpack.c.bf16 %v1127_v48, %v1127_v48  ;;  %v1997_v54 = vmul.f32 %v3380_v53, %v1945_v43  ;;  %v498_v55 = vmul.f32 %v3380_v53, %v445_v50  ;;  %v1000_v56 = vmul.f32 %v3380_v53, %v950_v51 }
 0x137   : > { %2813 = vst.msk [vmem:[%s3099_s27 + $0x1c8] sm:$0xf] %vm673_vm3, %v2156_v46  ;;  %v1530_v57 = vadd.f32 %v3393_v61, %v1498_v49 }
 0x138   : > { %693 = vst.msk [vmem:[%s3099_s27 + $0x4c] sm:$0xf] %vm673_vm3, %v660_v47  ;;  %v2029_v58 = vadd.f32 %v3393_v61, %v1997_v54  ;;  %v533_v59 = vadd.f32 %v3393_v61, %v498_v55  ;;  %v1032_v60 = vadd.f32 %v3393_v61, %v1000_v56 }
 0x139   : > { %2502 = vst.msk [vmem:[%s3099_s27 + $0xcc] sm:$0xf] %vm673_vm3, %v1159_v52  ;;  %vm1562_vm8 = vcmp.ge.f32.partialorder %v1530_v57, 0.0  ;;  %v1594_v62 = vmul.f32 0.2, %v1530_v57 }
 0x13a   : > { %vm2061_vm9 = vcmp.ge.f32.partialorder %v2029_v58, 0.0  ;;  %v2093_v63 = vmul.f32 0.2, %v2029_v58  ;;  %vm565_vm10 = vcmp.ge.f32.partialorder %v533_v59, 0.0  ;;  %v597_v0 = vmul.f32 0.2, %v533_v59 }
 0x13b   : > { %v1626_v1 = vsel %vm1562_vm8, %v1530_v57, %v1594_v62  ;;  %vm1064_vm11 = vcmp.ge.f32.partialorder %v1032_v60, 0.0  ;;  %v1096_v2 = vmul.f32 0.2, %v1032_v60 }
 0x13c   : > { %v1658_v3 = vpack.c.bf16 %v1626_v1, %v1626_v1  ;;  %v2125_v4 = vsel %vm2061_vm9, %v2029_v58, %v2093_v63  ;;  %v629_v5 = vsel %vm565_vm10, %v533_v59, %v597_v0  ;;  %v1449_v6 = vpop.f32.mrf.mxu2  ;;  %v447_v12 = vpop.f32.mrf.mxu0 }
 0x13d   : > { %v1948_v7 = vpop.f32.mrf.mxu3  ;;  %v2157_v8 = vpack.c.bf16 %v2125_v4, %v2125_v4  ;;  %v661_v9 = vpack.c.bf16 %v629_v5, %v629_v5  ;;  %v1128_v10 = vsel %vm1064_vm11, %v1032_v60, %v1096_v2  ;;  %v1499_v11 = vmul.f32 %v3380_v53, %v1449_v6  ;;  %v952_v13 = vpop.f32.mrf.mxu1 }
 0x13e   : > { %2658 = vst.msk [vmem:[%s3099_s27 + $0x14c] sm:$0xf] %vm673_vm3, %v1658_v3  ;;  %v1160_v14 = vpack.c.bf16 %v1128_v10, %v1128_v10  ;;  %v1998_v15 = vmul.f32 %v3380_v53, %v1948_v7  ;;  %v499_v16 = vmul.f32 %v3380_v53, %v447_v12  ;;  %v1001_v17 = vmul.f32 %v3380_v53, %v952_v13 }
 0x13f   : > { %2814 = vst.msk [vmem:[%s3099_s27 + $0x1cc] sm:$0xf] %vm673_vm3, %v2157_v8  ;;  %v1531_v18 = vadd.f32 %v3393_v61, %v1499_v11 }
 0x140   : > { %694 = vst.msk [vmem:[%s3099_s27 + $0x50] sm:$0xf] %vm673_vm3, %v661_v9  ;;  %v2030_v19 = vadd.f32 %v3393_v61, %v1998_v15  ;;  %v534_v20 = vadd.f32 %v3393_v61, %v499_v16  ;;  %v1033_v21 = vadd.f32 %v3393_v61, %v1001_v17 }
 0x141   : > { %2503 = vst.msk [vmem:[%s3099_s27 + $0xd0] sm:$0xf] %vm673_vm3, %v1160_v14  ;;  %vm1563_vm12 = vcmp.ge.f32.partialorder %v1531_v18, 0.0  ;;  %v1595_v22 = vmul.f32 0.2, %v1531_v18 }
 0x142   : > { %vm2062_vm13 = vcmp.ge.f32.partialorder %v2030_v19, 0.0  ;;  %v2094_v23 = vmul.f32 0.2, %v2030_v19  ;;  %vm566_vm14 = vcmp.ge.f32.partialorder %v534_v20, 0.0  ;;  %v598_v24 = vmul.f32 0.2, %v534_v20 }
 0x143   : > { %v1627_v25 = vsel %vm1563_vm12, %v1531_v18, %v1595_v22  ;;  %vm1065_vm15 = vcmp.ge.f32.partialorder %v1033_v21, 0.0  ;;  %v1097_v26 = vmul.f32 0.2, %v1033_v21 }
 0x144   : > { %v1659_v27 = vpack.c.bf16 %v1627_v25, %v1627_v25  ;;  %v2126_v28 = vsel %vm2062_vm13, %v2030_v19, %v2094_v23  ;;  %v630_v29 = vsel %vm566_vm14, %v534_v20, %v598_v24  ;;  %v1451_v30 = vpop.f32.mrf.mxu2  ;;  %v450_v36 = vpop.f32.mrf.mxu0 }
 0x145   : > { %v1950_v31 = vpop.f32.mrf.mxu3  ;;  %v2158_v32 = vpack.c.bf16 %v2126_v28, %v2126_v28  ;;  %v662_v33 = vpack.c.bf16 %v630_v29, %v630_v29  ;;  %v1129_v34 = vsel %vm1065_vm15, %v1033_v21, %v1097_v26  ;;  %v1500_v35 = vmul.f32 %v3380_v53, %v1451_v30  ;;  %v955_v37 = vpop.f32.mrf.mxu1 }
 0x146   : > { %2659 = vst.msk [vmem:[%s3099_s27 + $0x150] sm:$0xf] %vm673_vm3, %v1659_v27  ;;  %v1161_v38 = vpack.c.bf16 %v1129_v34, %v1129_v34  ;;  %v1999_v39 = vmul.f32 %v3380_v53, %v1950_v31  ;;  %v500_v44 = vmul.f32 %v3380_v53, %v450_v36  ;;  %v1002_v40 = vmul.f32 %v3380_v53, %v955_v37 }
 0x147   : > { %2815 = vst.msk [vmem:[%s3099_s27 + $0x1d0] sm:$0xf] %vm673_vm3, %v2158_v32  ;;  %v1532_v41 = vadd.f32 %v3393_v61, %v1500_v35 }
 0x148   : > { %695 = vst.msk [vmem:[%s3099_s27 + $0x54] sm:$0xf] %vm673_vm3, %v662_v33  ;;  %v2031_v42 = vadd.f32 %v3393_v61, %v1999_v39  ;;  %v535_v45 = vadd.f32 %v3393_v61, %v500_v44  ;;  %v1034_v43 = vadd.f32 %v3393_v61, %v1002_v40 }
 0x149   : > { %2504 = vst.msk [vmem:[%s3099_s27 + $0xd4] sm:$0xf] %vm673_vm3, %v1161_v38  ;;  %vm1564_vm1 = vcmp.ge.f32.partialorder %v1532_v41, 0.0  ;;  %v1596_v46 = vmul.f32 0.2, %v1532_v41 }
 0x14a   : > { %vm2063_vm2 = vcmp.ge.f32.partialorder %v2031_v42, 0.0  ;;  %v2095_v47 = vmul.f32 0.2, %v2031_v42  ;;  %vm567_vm0 = vcmp.ge.f32.partialorder %v535_v45, 0.0  ;;  %v599_v48 = vmul.f32 0.2, %v535_v45 }
 0x14b   : > { %v1628_v49 = vsel %vm1564_vm1, %v1532_v41, %v1596_v46  ;;  %vm1066_vm4 = vcmp.ge.f32.partialorder %v1034_v43, 0.0  ;;  %v1098_v50 = vmul.f32 0.2, %v1034_v43 }
 0x14c   : > { %v1660_v51 = vpack.c.bf16 %v1628_v49, %v1628_v49  ;;  %v2127_v52 = vsel %vm2063_vm2, %v2031_v42, %v2095_v47  ;;  %v631_v54 = vsel %vm567_vm0, %v535_v45, %v599_v48  ;;  %v1454_v55 = vpop.f32.mrf.mxu2  ;;  %v452_v62 = vpop.f32.mrf.mxu0 }
 0x14d   : > { %v1953_v56 = vpop.f32.mrf.mxu3  ;;  %v2159_v57 = vpack.c.bf16 %v2127_v52, %v2127_v52  ;;  %v663_v58 = vpack.c.bf16 %v631_v54, %v631_v54  ;;  %v1130_v59 = vsel %vm1066_vm4, %v1034_v43, %v1098_v50  ;;  %v1501_v60 = vmul.f32 %v3380_v53, %v1454_v55  ;;  %v957_v63 = vpop.f32.mrf.mxu1 }
 0x14e   : > { %2660 = vst.msk [vmem:[%s3099_s27 + $0x154] sm:$0xf] %vm673_vm3, %v1660_v51  ;;  %v1162_v0 = vpack.c.bf16 %v1130_v59, %v1130_v59  ;;  %v2000_v1 = vmul.f32 %v3380_v53, %v1953_v56  ;;  %v501_v2 = vmul.f32 %v3380_v53, %v452_v62  ;;  %v1003_v3 = vmul.f32 %v3380_v53, %v957_v63 }
 0x14f   : > { %2816 = vst.msk [vmem:[%s3099_s27 + $0x1d4] sm:$0xf] %vm673_vm3, %v2159_v57  ;;  %v1533_v4 = vadd.f32 %v3393_v61, %v1501_v60 }
 0x150   : > { %696 = vst.msk [vmem:[%s3099_s27 + $0x58] sm:$0xf] %vm673_vm3, %v663_v58  ;;  %v2032_v5 = vadd.f32 %v3393_v61, %v2000_v1  ;;  %v536_v6 = vadd.f32 %v3393_v61, %v501_v2  ;;  %v1035_v7 = vadd.f32 %v3393_v61, %v1003_v3 }
 0x151   : > { %2505 = vst.msk [vmem:[%s3099_s27 + $0xd8] sm:$0xf] %vm673_vm3, %v1162_v0  ;;  %vm1565_vm5 = vcmp.ge.f32.partialorder %v1533_v4, 0.0  ;;  %v1597_v8 = vmul.f32 0.2, %v1533_v4 }
 0x152   : > { %vm2064_vm6 = vcmp.ge.f32.partialorder %v2032_v5, 0.0  ;;  %v2096_v9 = vmul.f32 0.2, %v2032_v5  ;;  %vm568_vm7 = vcmp.ge.f32.partialorder %v536_v6, 0.0  ;;  %v600_v10 = vmul.f32 0.2, %v536_v6 }
 0x153   : > { %v1629_v11 = vsel %vm1565_vm5, %v1533_v4, %v1597_v8  ;;  %vm1067_vm8 = vcmp.ge.f32.partialorder %v1035_v7, 0.0  ;;  %v1099_v12 = vmul.f32 0.2, %v1035_v7 }
 0x154   : > { %v1661_v13 = vpack.c.bf16 %v1629_v11, %v1629_v11  ;;  %v2128_v14 = vsel %vm2064_vm6, %v2032_v5, %v2096_v9  ;;  %v632_v15 = vsel %vm568_vm7, %v536_v6, %v600_v10  ;;  %v1456_v16 = vpop.f32.mrf.mxu2  ;;  %v455_v22 = vpop.f32.mrf.mxu0 }
 0x155   : > { %v1955_v17 = vpop.f32.mrf.mxu3  ;;  %v2160_v18 = vpack.c.bf16 %v2128_v14, %v2128_v14  ;;  %v664_v19 = vpack.c.bf16 %v632_v15, %v632_v15  ;;  %v1131_v20 = vsel %vm1067_vm8, %v1035_v7, %v1099_v12  ;;  %v1502_v21 = vmul.f32 %v3380_v53, %v1456_v16  ;;  %v960_v23 = vpop.f32.mrf.mxu1 }
 0x156   : > { %2661 = vst.msk [vmem:[%s3099_s27 + $0x158] sm:$0xf] %vm673_vm3, %v1661_v13  ;;  %v1163_v24 = vpack.c.bf16 %v1131_v20, %v1131_v20  ;;  %v2001_v25 = vmul.f32 %v3380_v53, %v1955_v17  ;;  %v502_v26 = vmul.f32 %v3380_v53, %v455_v22  ;;  %v1004_v27 = vmul.f32 %v3380_v53, %v960_v23 }
 0x157   : > { %2817 = vst.msk [vmem:[%s3099_s27 + $0x1d8] sm:$0xf] %vm673_vm3, %v2160_v18  ;;  %v1534_v28 = vadd.f32 %v3393_v61, %v1502_v21 }
 0x158   : > { %697 = vst.msk [vmem:[%s3099_s27 + $0x5c] sm:$0xf] %vm673_vm3, %v664_v19  ;;  %v2033_v29 = vadd.f32 %v3393_v61, %v2001_v25  ;;  %v537_v30 = vadd.f32 %v3393_v61, %v502_v26  ;;  %v1036_v31 = vadd.f32 %v3393_v61, %v1004_v27 }
 0x159   : > { %2506 = vst.msk [vmem:[%s3099_s27 + $0xdc] sm:$0xf] %vm673_vm3, %v1163_v24  ;;  %vm1566_vm9 = vcmp.ge.f32.partialorder %v1534_v28, 0.0  ;;  %v1598_v32 = vmul.f32 0.2, %v1534_v28 }
 0x15a   : > { %vm2065_vm10 = vcmp.ge.f32.partialorder %v2033_v29, 0.0  ;;  %v2097_v33 = vmul.f32 0.2, %v2033_v29  ;;  %vm569_vm11 = vcmp.ge.f32.partialorder %v537_v30, 0.0  ;;  %v601_v34 = vmul.f32 0.2, %v537_v30 }
 0x15b   : > { %v1630_v35 = vsel %vm1566_vm9, %v1534_v28, %v1598_v32  ;;  %vm1068_vm12 = vcmp.ge.f32.partialorder %v1036_v31, 0.0  ;;  %v1100_v36 = vmul.f32 0.2, %v1036_v31 }
 0x15c   : > { %v1662_v37 = vpack.c.bf16 %v1630_v35, %v1630_v35  ;;  %v2129_v38 = vsel %vm2065_vm10, %v2033_v29, %v2097_v33  ;;  %v633_v39 = vsel %vm569_vm11, %v537_v30, %v601_v34  ;;  %v1459_v44 = vpop.f32.mrf.mxu2  ;;  %v457_v46 = vpop.f32.mrf.mxu0 }
 0x15d   : > { %v1958_v40 = vpop.f32.mrf.mxu3  ;;  %v2161_v41 = vpack.c.bf16 %v2129_v38, %v2129_v38  ;;  %v665_v42 = vpack.c.bf16 %v633_v39, %v633_v39  ;;  %v1132_v45 = vsel %vm1068_vm12, %v1036_v31, %v1100_v36  ;;  %v1503_v43 = vmul.f32 %v3380_v53, %v1459_v44  ;;  %v962_v47 = vpop.f32.mrf.mxu1 }
 0x15e   : > { %2662 = vst.msk [vmem:[%s3099_s27 + $0x15c] sm:$0xf] %vm673_vm3, %v1662_v37  ;;  %v1164_v48 = vpack.c.bf16 %v1132_v45, %v1132_v45  ;;  %v2002_v49 = vmul.f32 %v3380_v53, %v1958_v40  ;;  %v503_v50 = vmul.f32 %v3380_v53, %v457_v46  ;;  %v1005_v51 = vmul.f32 %v3380_v53, %v962_v47 }
 0x15f   : > { %2818 = vst.msk [vmem:[%s3099_s27 + $0x1dc] sm:$0xf] %vm673_vm3, %v2161_v41  ;;  %v1535_v52 = vadd.f32 %v3393_v61, %v1503_v43 }
 0x160   : > { %698 = vst.msk [vmem:[%s3099_s27 + $0x60] sm:$0xf] %vm673_vm3, %v665_v42  ;;  %v2034_v54 = vadd.f32 %v3393_v61, %v2002_v49  ;;  %v538_v55 = vadd.f32 %v3393_v61, %v503_v50  ;;  %v1037_v56 = vadd.f32 %v3393_v61, %v1005_v51 }
 0x161   : > { %2507 = vst.msk [vmem:[%s3099_s27 + $0xe0] sm:$0xf] %vm673_vm3, %v1164_v48  ;;  %vm1567_vm13 = vcmp.ge.f32.partialorder %v1535_v52, 0.0  ;;  %v1599_v57 = vmul.f32 0.2, %v1535_v52 }
 0x162   : > { %vm2066_vm14 = vcmp.ge.f32.partialorder %v2034_v54, 0.0  ;;  %v2098_v58 = vmul.f32 0.2, %v2034_v54  ;;  %vm570_vm15 = vcmp.ge.f32.partialorder %v538_v55, 0.0  ;;  %v602_v59 = vmul.f32 0.2, %v538_v55 }
 0x163   : > { %v1631_v60 = vsel %vm1567_vm13, %v1535_v52, %v1599_v57  ;;  %vm1069_vm1 = vcmp.ge.f32.partialorder %v1037_v56, 0.0  ;;  %v1101_v62 = vmul.f32 0.2, %v1037_v56 }
 0x164   : > { %v1663_v63 = vpack.c.bf16 %v1631_v60, %v1631_v60  ;;  %v2130_v0 = vsel %vm2066_vm14, %v2034_v54, %v2098_v58  ;;  %v634_v1 = vsel %vm570_vm15, %v538_v55, %v602_v59  ;;  %v1461_v2 = vpop.f32.mrf.mxu2  ;;  %v460_v8 = vpop.f32.mrf.mxu0 }
 0x165   : > { %v1960_v3 = vpop.f32.mrf.mxu3  ;;  %v2162_v4 = vpack.c.bf16 %v2130_v0, %v2130_v0  ;;  %v666_v5 = vpack.c.bf16 %v634_v1, %v634_v1  ;;  %v1133_v6 = vsel %vm1069_vm1, %v1037_v56, %v1101_v62  ;;  %v1504_v7 = vmul.f32 %v3380_v53, %v1461_v2  ;;  %v965_v9 = vpop.f32.mrf.mxu1 }
 0x166   : > { %2663 = vst.msk [vmem:[%s3099_s27 + $0x160] sm:$0xf] %vm673_vm3, %v1663_v63  ;;  %v1165_v10 = vpack.c.bf16 %v1133_v6, %v1133_v6  ;;  %v2003_v11 = vmul.f32 %v3380_v53, %v1960_v3  ;;  %v504_v12 = vmul.f32 %v3380_v53, %v460_v8  ;;  %v1006_v13 = vmul.f32 %v3380_v53, %v965_v9 }
 0x167   : > { %2819 = vst.msk [vmem:[%s3099_s27 + $0x1e0] sm:$0xf] %vm673_vm3, %v2162_v4  ;;  %v1536_v14 = vadd.f32 %v3393_v61, %v1504_v7 }
 0x168   : > { %699 = vst.msk [vmem:[%s3099_s27 + $0x64] sm:$0xf] %vm673_vm3, %v666_v5  ;;  %v2035_v15 = vadd.f32 %v3393_v61, %v2003_v11  ;;  %v539_v16 = vadd.f32 %v3393_v61, %v504_v12  ;;  %v1038_v17 = vadd.f32 %v3393_v61, %v1006_v13 }
 0x169   : > { %2508 = vst.msk [vmem:[%s3099_s27 + $0xe4] sm:$0xf] %vm673_vm3, %v1165_v10  ;;  %vm1568_vm2 = vcmp.ge.f32.partialorder %v1536_v14, 0.0  ;;  %v1600_v18 = vmul.f32 0.2, %v1536_v14 }
 0x16a   : > { %vm2067_vm0 = vcmp.ge.f32.partialorder %v2035_v15, 0.0  ;;  %v2099_v19 = vmul.f32 0.2, %v2035_v15  ;;  %vm571_vm4 = vcmp.ge.f32.partialorder %v539_v16, 0.0  ;;  %v603_v20 = vmul.f32 0.2, %v539_v16 }
 0x16b   : > { %v1632_v21 = vsel %vm1568_vm2, %v1536_v14, %v1600_v18  ;;  %vm1070_vm5 = vcmp.ge.f32.partialorder %v1038_v17, 0.0  ;;  %v1102_v22 = vmul.f32 0.2, %v1038_v17 }
 0x16c   : > { %v1664_v23 = vpack.c.bf16 %v1632_v21, %v1632_v21  ;;  %v2131_v24 = vsel %vm2067_vm0, %v2035_v15, %v2099_v19  ;;  %v635_v25 = vsel %vm571_vm4, %v539_v16, %v603_v20  ;;  %v1464_v26 = vpop.f32.mrf.mxu2  ;;  %v462_v32 = vpop.f32.mrf.mxu0 }
 0x16d   : > { %v1963_v27 = vpop.f32.mrf.mxu3  ;;  %v2163_v28 = vpack.c.bf16 %v2131_v24, %v2131_v24  ;;  %v667_v29 = vpack.c.bf16 %v635_v25, %v635_v25  ;;  %v1134_v30 = vsel %vm1070_vm5, %v1038_v17, %v1102_v22  ;;  %v1505_v31 = vmul.f32 %v3380_v53, %v1464_v26  ;;  %v967_v33 = vpop.f32.mrf.mxu1 }
 0x16e   : > { %2664 = vst.msk [vmem:[%s3099_s27 + $0x164] sm:$0xf] %vm673_vm3, %v1664_v23  ;;  %v1166_v34 = vpack.c.bf16 %v1134_v30, %v1134_v30  ;;  %v2004_v35 = vmul.f32 %v3380_v53, %v1963_v27  ;;  %v505_v36 = vmul.f32 %v3380_v53, %v462_v32  ;;  %v1007_v37 = vmul.f32 %v3380_v53, %v967_v33 }
 0x16f   : > { %2820 = vst.msk [vmem:[%s3099_s27 + $0x1e4] sm:$0xf] %vm673_vm3, %v2163_v28  ;;  %v1537_v38 = vadd.f32 %v3393_v61, %v1505_v31 }
 0x170   : > { %700 = vst.msk [vmem:[%s3099_s27 + $0x68] sm:$0xf] %vm673_vm3, %v667_v29  ;;  %v2036_v39 = vadd.f32 %v3393_v61, %v2004_v35  ;;  %v540_v44 = vadd.f32 %v3393_v61, %v505_v36  ;;  %v1039_v40 = vadd.f32 %v3393_v61, %v1007_v37 }
 0x171   : > { %2509 = vst.msk [vmem:[%s3099_s27 + $0xe8] sm:$0xf] %vm673_vm3, %v1166_v34  ;;  %vm1569_vm6 = vcmp.ge.f32.partialorder %v1537_v38, 0.0  ;;  %v1601_v41 = vmul.f32 0.2, %v1537_v38 }
 0x172   : > { %vm2068_vm7 = vcmp.ge.f32.partialorder %v2036_v39, 0.0  ;;  %v2100_v42 = vmul.f32 0.2, %v2036_v39  ;;  %vm572_vm8 = vcmp.ge.f32.partialorder %v540_v44, 0.0  ;;  %v604_v45 = vmul.f32 0.2, %v540_v44 }
 0x173   : > { %v1633_v43 = vsel %vm1569_vm6, %v1537_v38, %v1601_v41  ;;  %vm1071_vm9 = vcmp.ge.f32.partialorder %v1039_v40, 0.0  ;;  %v1103_v46 = vmul.f32 0.2, %v1039_v40 }
 0x174   : > { %v1665_v47 = vpack.c.bf16 %v1633_v43, %v1633_v43  ;;  %v2132_v48 = vsel %vm2068_vm7, %v2036_v39, %v2100_v42  ;;  %v636_v49 = vsel %vm572_vm8, %v540_v44, %v604_v45  ;;  %v1466_v50 = vpop.f32.mrf.mxu2  ;;  %v465_v57 = vpop.f32.mrf.mxu0 }
 0x175   : > { %v1965_v51 = vpop.f32.mrf.mxu3  ;;  %v2164_v52 = vpack.c.bf16 %v2132_v48, %v2132_v48  ;;  %v668_v54 = vpack.c.bf16 %v636_v49, %v636_v49  ;;  %v1135_v55 = vsel %vm1071_vm9, %v1039_v40, %v1103_v46  ;;  %v1506_v56 = vmul.f32 %v3380_v53, %v1466_v50  ;;  %v970_v58 = vpop.f32.mrf.mxu1 }
 0x176   : > { %2665 = vst.msk [vmem:[%s3099_s27 + $0x168] sm:$0xf] %vm673_vm3, %v1665_v47  ;;  %v1167_v59 = vpack.c.bf16 %v1135_v55, %v1135_v55  ;;  %v2005_v60 = vmul.f32 %v3380_v53, %v1965_v51  ;;  %v506_v62 = vmul.f32 %v3380_v53, %v465_v57  ;;  %v1008_v63 = vmul.f32 %v3380_v53, %v970_v58 }
 0x177   : > { %2821 = vst.msk [vmem:[%s3099_s27 + $0x1e8] sm:$0xf] %vm673_vm3, %v2164_v52  ;;  %v1538_v0 = vadd.f32 %v3393_v61, %v1506_v56 }
 0x178   : > { %701 = vst.msk [vmem:[%s3099_s27 + $0x6c] sm:$0xf] %vm673_vm3, %v668_v54  ;;  %v2037_v1 = vadd.f32 %v3393_v61, %v2005_v60  ;;  %v541_v2 = vadd.f32 %v3393_v61, %v506_v62  ;;  %v1040_v3 = vadd.f32 %v3393_v61, %v1008_v63 }
 0x179   : > { %2510 = vst.msk [vmem:[%s3099_s27 + $0xec] sm:$0xf] %vm673_vm3, %v1167_v59  ;;  %vm1570_vm10 = vcmp.ge.f32.partialorder %v1538_v0, 0.0  ;;  %v1602_v4 = vmul.f32 0.2, %v1538_v0 }
 0x17a   : > { %vm2069_vm11 = vcmp.ge.f32.partialorder %v2037_v1, 0.0  ;;  %v2101_v5 = vmul.f32 0.2, %v2037_v1  ;;  %vm573_vm12 = vcmp.ge.f32.partialorder %v541_v2, 0.0  ;;  %v605_v6 = vmul.f32 0.2, %v541_v2 }
 0x17b   : > { %v1634_v7 = vsel %vm1570_vm10, %v1538_v0, %v1602_v4  ;;  %vm1072_vm13 = vcmp.ge.f32.partialorder %v1040_v3, 0.0  ;;  %v1104_v8 = vmul.f32 0.2, %v1040_v3 }
 0x17c   : > { %v1666_v9 = vpack.c.bf16 %v1634_v7, %v1634_v7  ;;  %v2133_v10 = vsel %vm2069_vm11, %v2037_v1, %v2101_v5  ;;  %v637_v11 = vsel %vm573_vm12, %v541_v2, %v605_v6  ;;  %v1469_v12 = vpop.f32.mrf.mxu2  ;;  %v467_v18 = vpop.f32.mrf.mxu0  ;;  %v2919_v1 = vld [vmem:[%s3674_s2] ss:$0 sm:$0xff] }
 0x17d   : > { %v1968_v13 = vpop.f32.mrf.mxu3  ;;  %v2165_v14 = vpack.c.bf16 %v2133_v10, %v2133_v10  ;;  %v669_v15 = vpack.c.bf16 %v637_v11, %v637_v11  ;;  %v1136_v16 = vsel %vm1072_vm13, %v1040_v3, %v1104_v8  ;;  %v1507_v17 = vmul.f32 %v3380_v53, %v1469_v12  ;;  %v972_v19 = vpop.f32.mrf.mxu1 }
 0x17e   : > { %2666 = vst.msk [vmem:[%s3099_s27 + $0x16c] sm:$0xf] %vm673_vm3, %v1666_v9  ;;  %v1168_v20 = vpack.c.bf16 %v1136_v16, %v1136_v16  ;;  %v2006_v21 = vmul.f32 %v3380_v53, %v1968_v13  ;;  %v507_v22 = vmul.f32 %v3380_v53, %v467_v18  ;;  %v1009_v23 = vmul.f32 %v3380_v53, %v972_v19  ;;  %v2920_v9 = vld [vmem:[%s3675_s3] ss:$0 sm:$0xff] }
 0x17f   : > { %2822 = vst.msk [vmem:[%s3099_s27 + $0x1ec] sm:$0xf] %vm673_vm3, %v2165_v14  ;;  %v1539_v24 = vadd.f32 %v3393_v61, %v1507_v17 }
 0x180   : > { %702 = vst.msk [vmem:[%s3099_s27 + $0x70] sm:$0xf] %vm673_vm3, %v669_v15  ;;  %v2038_v25 = vadd.f32 %v3393_v61, %v2006_v21  ;;  %v542_v26 = vadd.f32 %v3393_v61, %v507_v22  ;;  %v1041_v27 = vadd.f32 %v3393_v61, %v1009_v23 }
 0x181   : > { %2511 = vst.msk [vmem:[%s3099_s27 + $0xf0] sm:$0xf] %vm673_vm3, %v1168_v20  ;;  %vm1571_vm14 = vcmp.ge.f32.partialorder %v1539_v24, 0.0  ;;  %v1603_v28 = vmul.f32 0.2, %v1539_v24 }
 0x182   : > { %vm2070_vm15 = vcmp.ge.f32.partialorder %v2038_v25, 0.0  ;;  %v2102_v29 = vmul.f32 0.2, %v2038_v25  ;;  %vm574_vm1 = vcmp.ge.f32.partialorder %v542_v26, 0.0  ;;  %v606_v30 = vmul.f32 0.2, %v542_v26 }
 0x183   : > { %v1635_v31 = vsel %vm1571_vm14, %v1539_v24, %v1603_v28  ;;  %vm1073_vm2 = vcmp.ge.f32.partialorder %v1041_v27, 0.0  ;;  %v1105_v32 = vmul.f32 0.2, %v1041_v27 }
 0x184   : > { %v1667_v33 = vpack.c.bf16 %v1635_v31, %v1635_v31  ;;  %v2134_v34 = vsel %vm2070_vm15, %v2038_v25, %v2102_v29  ;;  %v638_v35 = vsel %vm574_vm1, %v542_v26, %v606_v30  ;;  %v1471_v36 = vpop.f32.mrf.mxu2  ;;  %v470_v41 = vpop.f32.mrf.mxu0 }
 0x185   : > { %v1970_v37 = vpop.f32.mrf.mxu3  ;;  %v2166_v38 = vpack.c.bf16 %v2134_v34, %v2134_v34  ;;  %v670_v39 = vpack.c.bf16 %v638_v35, %v638_v35  ;;  %v1137_v44 = vsel %vm1073_vm2, %v1041_v27, %v1105_v32  ;;  %v1508_v40 = vmul.f32 %v3380_v53, %v1471_v36  ;;  %v975_v42 = vpop.f32.mrf.mxu1 }
 0x186   : > { %2667 = vst.msk [vmem:[%s3099_s27 + $0x170] sm:$0xf] %vm673_vm3, %v1667_v33  ;;  %v1169_v45 = vpack.c.bf16 %v1137_v44, %v1137_v44  ;;  %v2007_v43 = vmul.f32 %v3380_v53, %v1970_v37  ;;  %v508_v46 = vmul.f32 %v3380_v53, %v470_v41  ;;  %v1010_v47 = vmul.f32 %v3380_v53, %v975_v42 }
 0x187   : > { %2823 = vst.msk [vmem:[%s3099_s27 + $0x1f0] sm:$0xf] %vm673_vm3, %v2166_v38  ;;  %v1540_v48 = vadd.f32 %v3393_v61, %v1508_v40 }
 0x188   : > { %703 = vst.msk [vmem:[%s3099_s27 + $0x74] sm:$0xf] %vm673_vm3, %v670_v39  ;;  %v2039_v49 = vadd.f32 %v3393_v61, %v2007_v43  ;;  %v543_v50 = vadd.f32 %v3393_v61, %v508_v46  ;;  %v1042_v51 = vadd.f32 %v3393_v61, %v1010_v47 }
 0x189   : > { %2512 = vst.msk [vmem:[%s3099_s27 + $0xf4] sm:$0xf] %vm673_vm3, %v1169_v45  ;;  %vm1572_vm0 = vcmp.ge.f32.partialorder %v1540_v48, 0.0  ;;  %v1604_v52 = vmul.f32 0.2, %v1540_v48 }
 0x18a   : > { %vm2071_vm4 = vcmp.ge.f32.partialorder %v2039_v49, 0.0  ;;  %v2103_v54 = vmul.f32 0.2, %v2039_v49  ;;  %vm575_vm5 = vcmp.ge.f32.partialorder %v543_v50, 0.0  ;;  %v607_v53 = vmul.f32 0.2, %v543_v50 }
 0x18b   : > { %v1636_v55 = vsel %vm1572_vm0, %v1540_v48, %v1604_v52  ;;  %vm1074_vm6 = vcmp.ge.f32.partialorder %v1042_v51, 0.0  ;;  %v1106_v56 = vmul.f32 0.2, %v1042_v51 }
 0x18c   : > { %v1668_v57 = vpack.c.bf16 %v1636_v55, %v1636_v55  ;;  %v2135_v58 = vsel %vm2071_vm4, %v2039_v49, %v2103_v54  ;;  %v639_v59 = vsel %vm575_vm5, %v543_v50, %v607_v53  ;;  %v1474_v60 = vpop.f32.mrf.mxu2  ;;  %v472_v3 = vpop.f32.mrf.mxu0 }
 0x18d   : > { %v1973_v62 = vpop.f32.mrf.mxu3  ;;  %v2167_v61 = vpack.c.bf16 %v2135_v58, %v2135_v58  ;;  %v671_v63 = vpack.c.bf16 %v639_v59, %v639_v59  ;;  %v1138_v0 = vsel %vm1074_vm6, %v1042_v51, %v1106_v56  ;;  %v1509_v2 = vmul.f32 %v2919_v1, %v1474_v60  ;;  %v977_v4 = vpop.f32.mrf.mxu1 }
 0x18e   : > { %2668 = vst.msk [vmem:[%s3099_s27 + $0x174] sm:$0xf] %vm673_vm3, %v1668_v57  ;;  %v1170_v5 = vpack.c.bf16 %v1138_v0, %v1138_v0  ;;  %v2008_v6 = vmul.f32 %v2919_v1, %v1973_v62  ;;  %v509_v7 = vmul.f32 %v2919_v1, %v472_v3  ;;  %v1011_v8 = vmul.f32 %v2919_v1, %v977_v4 }
 0x18f   : > { %2824 = vst.msk [vmem:[%s3099_s27 + $0x1f4] sm:$0xf] %vm673_vm3, %v2167_v61  ;;  %v1541_v10 = vadd.f32 %v2920_v9, %v1509_v2 }
 0x190   : > { %704 = vst.msk [vmem:[%s3099_s27 + $0x78] sm:$0xf] %vm673_vm3, %v671_v63  ;;  %v2040_v11 = vadd.f32 %v2920_v9, %v2008_v6  ;;  %v544_v12 = vadd.f32 %v2920_v9, %v509_v7  ;;  %v1043_v13 = vadd.f32 %v2920_v9, %v1011_v8 }
 0x191   : > { %2513 = vst.msk [vmem:[%s3099_s27 + $0xf8] sm:$0xf] %vm673_vm3, %v1170_v5  ;;  %vm1573_vm7 = vcmp.ge.f32.partialorder %v1541_v10, 0.0  ;;  %v1605_v14 = vmul.f32 0.2, %v1541_v10 }
 0x192   : > { %vm2072_vm8 = vcmp.ge.f32.partialorder %v2040_v11, 0.0  ;;  %v2104_v15 = vmul.f32 0.2, %v2040_v11  ;;  %vm576_vm9 = vcmp.ge.f32.partialorder %v544_v12, 0.0  ;;  %v608_v16 = vmul.f32 0.2, %v544_v12 }
 0x193   : > { %v1637_v17 = vsel %vm1573_vm7, %v1541_v10, %v1605_v14  ;;  %vm1075_vm10 = vcmp.ge.f32.partialorder %v1043_v13, 0.0  ;;  %v1107_v18 = vmul.f32 0.2, %v1043_v13 }
 0x194   : > { %v1669_v19 = vpack.c.bf16 %v1637_v17, %v1637_v17  ;;  %v2136_v20 = vsel %vm2072_vm8, %v2040_v11, %v2104_v15  ;;  %v640_v21 = vsel %vm576_vm9, %v544_v12, %v608_v16  ;;  %v1476_v22 = vpop.f32.mrf.mxu2 }
 0x195   : > { %v1975_v23 = vpop.f32.mrf.mxu3  ;;  %v2168_v24 = vpack.c.bf16 %v2136_v20, %v2136_v20  ;;  %v672_v25 = vpack.c.bf16 %v640_v21, %v640_v21  ;;  %v1139_v26 = vsel %vm1075_vm10, %v1043_v13, %v1107_v18  ;;  %v1510_v27 = vmul.f32 %v2919_v1, %v1476_v22 }
 0x196   : > { %2669 = vst.msk [vmem:[%s3099_s27 + $0x178] sm:$0xf] %vm673_vm3, %v1669_v19  ;;  %v1171_v28 = vpack.c.bf16 %v1139_v26, %v1139_v26  ;;  %v2009_v29 = vmul.f32 %v2919_v1, %v1975_v23 }
 0x197   : > { %2825 = vst.msk [vmem:[%s3099_s27 + $0x1f8] sm:$0xf] %vm673_vm3, %v2168_v24  ;;  %v1542_v30 = vadd.f32 %v2920_v9, %v1510_v27 }
 0x198   : > { %705 = vst.msk [vmem:[%s3099_s27 + $0x7c] sm:$0xf] %vm673_vm3, %v672_v25  ;;  %v2041_v31 = vadd.f32 %v2920_v9, %v2009_v29 }
 0x199   : > { %2514 = vst.msk [vmem:[%s3099_s27 + $0xfc] sm:$0xf] %vm673_vm3, %v1171_v28  ;;  %vm1574_vm11 = vcmp.ge.f32.partialorder %v1542_v30, 0.0  ;;  %v1606_v32 = vmul.f32 0.2, %v1542_v30 }
 0x19a   : > { %vm2073_vm12 = vcmp.ge.f32.partialorder %v2041_v31, 0.0  ;;  %v2105_v33 = vmul.f32 0.2, %v2041_v31 }
 0x19b   : > { %v1638_v34 = vsel %vm1574_vm11, %v1542_v30, %v1606_v32 }
 0x19c   : > { %v1670_v35 = vpack.c.bf16 %v1638_v34, %v1638_v34  ;;  %v2137_v36 = vsel %vm2073_vm12, %v2041_v31, %v2105_v33 }
 0x19d   : > { %v2169_v37 = vpack.c.bf16 %v2137_v36, %v2137_v36 }
 0x19e   : > { %2670 = vst.msk [vmem:[%s3099_s27 + $0x17c] sm:$0xf] %vm673_vm3, %v1670_v35 }
 0x19f   : > { %2826 = vst.msk [vmem:[%s3099_s27 + $0x1fc] sm:$0xf] %vm673_vm3, %v2169_v37 }
 0x1a0 PF: > { %s14_s15 = sadd.s32 1, %s2927_s15  }
 0x1a1   : > { %p11_p4 = scmp.ge.s32.totalorder %s14_s15, 4  }
 0x1a3   :  { %13 = sbr.rel (!%p11_p4) target bundleno = 1 (0x1), region = 72 }

</bundles_post_ra>
